<compile_context>
chip_gen: v5e
topology: v5e:2x2
jax: 0.10.0
libtpu: 0.0.40
codegen_flags: <defaults>
</compile_context>

<pallas_src>
import jax
import jax.numpy as jnp
from jax.experimental import pallas as pl
from jax.experimental.pallas import tpu as pltpu


TM = 256  # output rows (pooled positions) per conv-kernel grid step; multiple of 8


# ---------------------------------------------------------------------------
# Pallas kernels
# ---------------------------------------------------------------------------
def conv_bn_relu_pool_kernel(p_ref, w_ref, s_ref, t_ref, o_ref):
    # p_ref: (1, 4*tm, K) bf16  -- rows [a*tm:(a+1)*tm] are pool-window a's patches
    # w_ref: (K, C) bf16 flattened conv weights (conv bias folded into t)
    # s_ref/t_ref: (1, C) f32 BN affine (bias folded:  relu(max(y)*s + t))
    # o_ref: (tm, C) bf16
    tm = o_ref.shape[0]
    # Single MXU matmul over all 4 pool positions (f32 accumulation).
    y = jnp.dot(p_ref[0], w_ref[...], preferred_element_type=jnp.float32)
    # 2x2 max-pool: max over the 4 aligned row groups (VPU).
    m = jnp.maximum(jnp.maximum(y[0 * tm:1 * tm], y[1 * tm:2 * tm]),
                    jnp.maximum(y[2 * tm:3 * tm], y[3 * tm:4 * tm]))
    # Folded conv-bias + eval BatchNorm + ReLU, applied once after the max
    # (valid since the BN scale is positive). Epilogue stays in f32.
    o_ref[...] = jnp.maximum(m * s_ref[...] + t_ref[...], 0.0).astype(o_ref.dtype)


def mlp_head_kernel(x_ref, w1_ref, b1_ref, w2_ref, b2_ref, o_ref):
    # x_ref: (N, 3872) bf16 (NHWC flatten), w1: (3872, 64) bf16, b1: (1, 64) f32,
    # w2: (1, 64) f32 (second Linear weights as a row vector), b2: (1, 1) f32.
    h = jnp.dot(x_ref[...], w1_ref[...], preferred_element_type=jnp.float32)
    h = h + b1_ref[...]
    # Second Linear (64 -> 1) as multiply + lane reduction (avoids a 1-lane operand).
    z = jnp.sum(h * w2_ref[...], axis=1, keepdims=True) + b2_ref[...]
    o_ref[...] = 1.0 / (1.0 + jnp.exp(-z))          # Sigmoid (EUP exp), f32


# ---------------------------------------------------------------------------
# pallas_call wrappers
# ---------------------------------------------------------------------------
def _prep_patch_tiles(p4, tm):
    """(4, M, K) pool-fused patches -> (nt, 4*tm, K): per M-tile, the 4 pool
    groups are stacked along rows so each grid step does one big matmul."""
    _, M, K = p4.shape
    nt = pl.cdiv(M, tm)
    Mp = nt * tm
    p4 = jnp.pad(p4, ((0, 0), (0, Mp - M), (0, 0)))
    p4 = p4.reshape(4, nt, tm, K).transpose(1, 0, 2, 3).reshape(nt, 4 * tm, K)
    return p4, nt


def conv_bn_relu_pool(p4, w, s, t, tm=TM):
    pg, nt = _prep_patch_tiles(p4, tm)
    K = pg.shape[-1]
    C = w.shape[1]
    return pl.pallas_call(
        conv_bn_relu_pool_kernel,
        out_shape=jax.ShapeDtypeStruct((nt * tm, C), jnp.bfloat16),
        grid=(nt,),
        in_specs=[
            pl.BlockSpec((1, 4 * tm, K), lambda i: (i, 0, 0)),   # patch tile
            pl.BlockSpec((K, C), lambda i: (0, 0)),              # weights (broadcast)
            pl.BlockSpec((1, C), lambda i: (0, 0)),              # BN scale
            pl.BlockSpec((1, C), lambda i: (0, 0)),              # BN shift (+ bias)
        ],
        out_specs=pl.BlockSpec((tm, C), lambda i: (i, 0)),
        compiler_params=pltpu.CompilerParams(
            dimension_semantics=("parallel",)),                  # v7x: 2 TCs
    )(pg, w, s, t)


def mlp_head(x, w1, b1, w2, b2):
    vmem = [pl.BlockSpec(memory_space=pltpu.MemorySpace.VMEM) for _ in range(5)]
    return pl.pallas_call(
        mlp_head_kernel,
        out_shape=jax.ShapeDtypeStruct((x.shape[0], 1), jnp.float32),
        in_specs=vmem,
        out_specs=pl.BlockSpec(memory_space=pltpu.MemorySpace.VMEM),
    )(x, w1, b1, w2, b2)


# ---------------------------------------------------------------------------
# Glue: layout plumbing (padding, pool-fused im2col, NHWC flatten)
# ---------------------------------------------------------------------------
def pool_fused_im2col(xp, ho, wo, K):
    """xp: (N, Hp, Wp, C) padded NHWC -> (4, N*ho*wo, K*K*C) patches.

    Row m of group (a, b) holds the K*K*C receptive field of the conv output at
    spatial position (2i + a, 2j + b), i.e. the (a, b) member of the 2x2
    max-pool window of pooled output position (i, j). Feature order (kh, kw, c)
    matches the conv weights flattened as (kh, kw, cin, cout)."""
    N, _, _, C = xp.shape
    groups = []
    for a in range(2):
        for b in range(2):
            cols = []
            for kh in range(K):
                for kw in range(K):
                    r0, c0 = a + kh, b + kw
                    sl = xp[:, r0:r0 + 2 * (ho - 1) + 1:2,
                               c0:c0 + 2 * (wo - 1) + 1:2, :]
                    cols.append(sl)
            pat = jnp.concatenate(cols, axis=-1)            # (N, ho, wo, K*K*C)
            groups.append(pat.reshape(N * ho * wo, K * K * C))
    return jnp.stack(groups, axis=0)


def deepseed_forward(x_nchw, params):
    N = x_nchw.shape[0]
    x = jnp.transpose(x_nchw, (0, 2, 3, 1)).astype(jnp.bfloat16)  # NCHW -> NHWC, bf16
    # --- block 1: conv(4,s1,p1)+BN+ReLU+maxpool2  (48 -> 47 -> 23) ----------
    xp = jnp.pad(x, ((0, 0), (1, 1), (1, 1), (0, 0)))
    p1 = pool_fused_im2col(xp, 23, 23, 4)
    y1 = conv_bn_relu_pool(p1, params['w1'], params['s1'], params['t1'])
    y1 = y1[:N * 23 * 23].reshape(N, 23, 23, -1)                  # bf16
    # --- block 2: conv(4,s1,p1)+BN+ReLU+maxpool2  (23 -> 22 -> 11) ----------
    yp = jnp.pad(y1, ((0, 0), (1, 1), (1, 1), (0, 0)))
    p2 = pool_fused_im2col(yp, 11, 11, 4)
    y2 = conv_bn_relu_pool(p2, params['w2'], params['s2'], params['t2'])
    # --- Flatten: fw1's rows were permuted to NHWC order at init, so the
    #     flatten is a free contiguous reshape (no transpose). ---------------
    flat = y2[:N * 11 * 11].reshape(N, 32 * 11 * 11)              # bf16
    return mlp_head(flat, params['fw1'], params['fb1'],
                    params['fw2'], params['fb2'])


# ---------------------------------------------------------------------------
# Deterministic parameter init (shapes from the module's __init__)
# ---------------------------------------------------------------------------
def init_params(key, in_dim, out_dim):
    ks = jax.random.split(key, 8)

    def conv_w(k, cin, cout):
        # PyTorch layout (Cout, Cin, KH, KW) -> (KH, KW, Cin, Cout) -> 2D
        w = jax.random.normal(k, (cout, cin, 4, 4), jnp.float32) * 0.05
        return jnp.transpose(w, (2, 3, 1, 0)).reshape(4 * 4 * cin, cout)

    w1 = conv_w(ks[0], in_dim, out_dim)
    b1 = jax.random.normal(ks[1], (1, out_dim), jnp.float32) * 0.05
    w2 = conv_w(ks[2], out_dim, out_dim)
    b2 = jax.random.normal(ks[3], (1, out_dim), jnp.float32) * 0.05

    # BatchNorm2d (eval): gamma=1, beta=0, running_mean=0, running_var=1
    eps = 1e-5
    gamma = jnp.ones((1, out_dim), jnp.float32)
    beta = jnp.zeros((1, out_dim), jnp.float32)
    rmean = jnp.zeros((1, out_dim), jnp.float32)
    rvar = jnp.ones((1, out_dim), jnp.float32)
    scale = gamma / jnp.sqrt(rvar + eps)
    shift = beta - rmean * scale
    # Fold conv bias into BN shift: (y+b)*s + t == y*s + (s*b + t).
    # (Applying affine+ReLU once after the max is valid because scale > 0;
    #  guard this if gamma could become negative.)
    t1 = b1 * scale + shift
    t2 = b2 * scale + shift

    # Linear head. fw1 generated in PyTorch layout (64, 32*11*11) with NCHW
    # column order, then rows permuted to NHWC order so the flatten is free.
    fw1_pt = jax.random.normal(ks[4], (64, 32 * 11 * 11), jnp.float32) * 0.02
    fw1 = (fw1_pt.T.reshape(out_dim, 11, 11, 64)
                  .transpose(1, 2, 0, 3).reshape(32 * 11 * 11, 64))
    fb1 = jax.random.normal(ks[5], (1, 64), jnp.float32) * 0.02
    fw2 = jax.random.normal(ks[6], (1, 64), jnp.float32) * 0.05   # PyTorch (1,64)
    fb2 = jax.random.normal(ks[7], (1, 1), jnp.float32) * 0.05

    return dict(
        w1=w1.astype(jnp.bfloat16), s1=scale, t1=t1,
        w2=w2.astype(jnp.bfloat16), s2=scale, t2=t2,
        fw1=fw1.astype(jnp.bfloat16), fb1=fb1, fw2=fw2, fb2=fb2)


if __name__ == "__main__":
    key = jax.random.PRNGKey(0)
    kx, kp = jax.random.split(key)
    # out_dim=32 and 48x48 input spatial are forced by Linear(32*11*11, 64)
    in_dim, out_dim = 4, 32
    x = jax.random.normal(kx, (2, in_dim, 48, 48), jnp.float32)   # NCHW input
    params = init_params(kp, in_dim, out_dim)

    fwd = jax.jit(deepseed_forward)
    out = jax.block_until_ready(fwd(x, params))
    assert out.shape == (2, 1) and out.dtype == jnp.float32
    assert bool(jnp.all((out >= 0.0) & (out <= 1.0)))
    print("KERNEL_OK")
</pallas_src>

<mosaic_0001>
module attributes {stable_mosaic.version = 11 : i64} {
  func.func @conv_bn_relu_pool_kernel(%arg0: i32, %arg1: memref<1x1024x64xbf16, #tpu.memory_space<vmem>>, %arg2: memref<64x32xbf16, #tpu.memory_space<vmem>>, %arg3: memref<1x32xf32, #tpu.memory_space<vmem>>, %arg4: memref<1x32xf32, #tpu.memory_space<vmem>>, %arg5: memref<256x32xbf16, #tpu.memory_space<vmem>>) attributes {dimension_semantics = [#tpu.dimension_semantics<parallel>], iteration_bounds = array<i64: 5>, scalar_prefetch = 0 : i64, scratch_operands = 0 : i64, tpu.core_type = #tpu.core_type<tc>, window_params = [{transform_indices = @transform_0, window_bounds = array<i64: 1, 1024, 64>}, {pipeline_mode = #tpu.pipeline_mode<synchronous>, transform_indices = @transform_1, window_bounds = array<i64: 64, 32>}, {pipeline_mode = #tpu.pipeline_mode<synchronous>, transform_indices = @transform_2, window_bounds = array<i64: 1, 32>}, {pipeline_mode = #tpu.pipeline_mode<synchronous>, transform_indices = @transform_3, window_bounds = array<i64: 1, 32>}, {transform_indices = @transform_4, window_bounds = array<i64: 256, 32>}]} {
    %c0 = arith.constant 0 : index
    %c0_0 = arith.constant 0 : index
    %c0_1 = arith.constant 0 : index
    %0 = vector.load %arg1[%c0, %c0_0, %c0_1] : memref<1x1024x64xbf16, #tpu.memory_space<vmem>>, vector<1x1024x64xbf16>
    %1 = vector.shape_cast %0 : vector<1x1024x64xbf16> to vector<1024x64xbf16>
    %c0_2 = arith.constant 0 : index
    %c0_3 = arith.constant 0 : index
    %2 = vector.load %arg2[%c0_2, %c0_3] : memref<64x32xbf16, #tpu.memory_space<vmem>>, vector<64x32xbf16>
    %cst = arith.constant dense<0.000000e+00> : vector<1024x32xf32>
    %3 = tpu.matmul %1, %2, %cst {dimension_numbers = #tpu.dot_dimension_numbers<[1], [0], [0], [1], [0, 0, 1, 1], [], []>} : vector<1024x64xbf16>, vector<64x32xbf16>, vector<1024x32xf32> -> vector<1024x32xf32>
    %4 = vector.extract_strided_slice %3 {offsets = [0, 0], sizes = [256, 32], strides = [1, 1]} : vector<1024x32xf32> to vector<256x32xf32>
    %5 = vector.extract_strided_slice %3 {offsets = [256, 0], sizes = [256, 32], strides = [1, 1]} : vector<1024x32xf32> to vector<256x32xf32>
    %6 = arith.maximumf %4, %5 : vector<256x32xf32>
    %7 = vector.extract_strided_slice %3 {offsets = [512, 0], sizes = [256, 32], strides = [1, 1]} : vector<1024x32xf32> to vector<256x32xf32>
    %8 = vector.extract_strided_slice %3 {offsets = [768, 0], sizes = [256, 32], strides = [1, 1]} : vector<1024x32xf32> to vector<256x32xf32>
    %9 = arith.maximumf %7, %8 : vector<256x32xf32>
    %10 = arith.maximumf %6, %9 : vector<256x32xf32>
    %c0_4 = arith.constant 0 : index
    %c0_5 = arith.constant 0 : index
    %11 = vector.load %arg3[%c0_4, %c0_5] : memref<1x32xf32, #tpu.memory_space<vmem>>, vector<1x32xf32>
    %12 = vector.broadcast %11 : vector<1x32xf32> to vector<256x32xf32>
    %13 = arith.mulf %10, %12 : vector<256x32xf32>
    %c0_6 = arith.constant 0 : index
    %c0_7 = arith.constant 0 : index
    %14 = vector.load %arg4[%c0_6, %c0_7] : memref<1x32xf32, #tpu.memory_space<vmem>>, vector<1x32xf32>
    %15 = vector.broadcast %14 : vector<1x32xf32> to vector<256x32xf32>
    %16 = arith.addf %13, %15 : vector<256x32xf32>
    %cst_8 = arith.constant 0.000000e+00 : f32
    %17 = vector.broadcast %cst_8 : f32 to vector<256x32xf32>
    %18 = arith.maximumf %16, %17 : vector<256x32xf32>
    %19 = arith.truncf %18 : vector<256x32xf32> to vector<256x32xbf16>
    %c0_9 = arith.constant 0 : index
    %c0_10 = arith.constant 0 : index
    %20 = vector.load %arg5[%c0_9, %c0_10] : memref<256x32xbf16, #tpu.memory_space<vmem>>, vector<256x32xbf16>
    tpu.vector_store %arg5[%c0_9, %c0_10], %19 {strides = array<i32>} : memref<256x32xbf16, #tpu.memory_space<vmem>>, vector<256x32xbf16>,
    return
  }
  func.func @transform_0(%arg0: i32) -> (i32, i32, i32) {
    %c0_i32 = arith.constant 0 : i32
    %c0_i32_0 = arith.constant 0 : i32
    %c0_i32_1 = arith.constant 0 : i32
    return %arg0, %c0_i32, %c0_i32_0 : i32, i32, i32
  }
  func.func @transform_1(%arg0: i32) -> (i32, i32) {
    %c0_i32 = arith.constant 0 : i32
    %c0_i32_0 = arith.constant 0 : i32
    %c0_i32_1 = arith.constant 0 : i32
    return %c0_i32, %c0_i32_0 : i32, i32
  }
  func.func @transform_2(%arg0: i32) -> (i32, i32) {
    %c0_i32 = arith.constant 0 : i32
    %c0_i32_0 = arith.constant 0 : i32
    %c0_i32_1 = arith.constant 0 : i32
    return %c0_i32, %c0_i32_0 : i32, i32
  }
  func.func @transform_3(%arg0: i32) -> (i32, i32) {
    %c0_i32 = arith.constant 0 : i32
    %c0_i32_0 = arith.constant 0 : i32
    %c0_i32_1 = arith.constant 0 : i32
    return %c0_i32, %c0_i32_0 : i32, i32
  }
  func.func @transform_4(%arg0: i32) -> (i32, i32) {
    %c0_i32 = arith.constant 0 : i32
    %c0_i32_0 = arith.constant 0 : i32
    return %arg0, %c0_i32 : i32, i32
  }
}

module attributes {stable_mosaic.version = 11 : i64} {
  func.func @conv_bn_relu_pool_kernel(%arg0: i32, %arg1: memref<1x1024x512xbf16, #tpu.memory_space<vmem>>, %arg2: memref<512x32xbf16, #tpu.memory_space<vmem>>, %arg3: memref<1x32xf32, #tpu.memory_space<vmem>>, %arg4: memref<1x32xf32, #tpu.memory_space<vmem>>, %arg5: memref<256x32xbf16, #tpu.memory_space<vmem>>) attributes {dimension_semantics = [#tpu.dimension_semantics<parallel>], iteration_bounds = array<i64: 1>, scalar_prefetch = 0 : i64, scratch_operands = 0 : i64, tpu.core_type = #tpu.core_type<tc>, window_params = [{transform_indices = @transform_0, window_bounds = array<i64: 1, 1024, 512>}, {pipeline_mode = #tpu.pipeline_mode<synchronous>, transform_indices = @transform_1, window_bounds = array<i64: 512, 32>}, {pipeline_mode = #tpu.pipeline_mode<synchronous>, transform_indices = @transform_2, window_bounds = array<i64: 1, 32>}, {pipeline_mode = #tpu.pipeline_mode<synchronous>, transform_indices = @transform_3, window_bounds = array<i64: 1, 32>}, {transform_indices = @transform_4, window_bounds = array<i64: 256, 32>}]} {
    %c0 = arith.constant 0 : index
    %c0_0 = arith.constant 0 : index
    %c0_1 = arith.constant 0 : index
    %0 = vector.load %arg1[%c0, %c0_0, %c0_1] : memref<1x1024x512xbf16, #tpu.memory_space<vmem>>, vector<1x1024x512xbf16>
    %1 = vector.shape_cast %0 : vector<1x1024x512xbf16> to vector<1024x512xbf16>
    %c0_2 = arith.constant 0 : index
    %c0_3 = arith.constant 0 : index
    %2 = vector.load %arg2[%c0_2, %c0_3] : memref<512x32xbf16, #tpu.memory_space<vmem>>, vector<512x32xbf16>
    %cst = arith.constant dense<0.000000e+00> : vector<1024x32xf32>
    %3 = tpu.matmul %1, %2, %cst {dimension_numbers = #tpu.dot_dimension_numbers<[1], [0], [0], [1], [0, 0, 1, 1], [], []>} : vector<1024x512xbf16>, vector<512x32xbf16>, vector<1024x32xf32> -> vector<1024x32xf32>
    %4 = vector.extract_strided_slice %3 {offsets = [0, 0], sizes = [256, 32], strides = [1, 1]} : vector<1024x32xf32> to vector<256x32xf32>
    %5 = vector.extract_strided_slice %3 {offsets = [256, 0], sizes = [256, 32], strides = [1, 1]} : vector<1024x32xf32> to vector<256x32xf32>
    %6 = arith.maximumf %4, %5 : vector<256x32xf32>
    %7 = vector.extract_strided_slice %3 {offsets = [512, 0], sizes = [256, 32], strides = [1, 1]} : vector<1024x32xf32> to vector<256x32xf32>
    %8 = vector.extract_strided_slice %3 {offsets = [768, 0], sizes = [256, 32], strides = [1, 1]} : vector<1024x32xf32> to vector<256x32xf32>
    %9 = arith.maximumf %7, %8 : vector<256x32xf32>
    %10 = arith.maximumf %6, %9 : vector<256x32xf32>
    %c0_4 = arith.constant 0 : index
    %c0_5 = arith.constant 0 : index
    %11 = vector.load %arg3[%c0_4, %c0_5] : memref<1x32xf32, #tpu.memory_space<vmem>>, vector<1x32xf32>
    %12 = vector.broadcast %11 : vector<1x32xf32> to vector<256x32xf32>
    %13 = arith.mulf %10, %12 : vector<256x32xf32>
    %c0_6 = arith.constant 0 : index
    %c0_7 = arith.constant 0 : index
    %14 = vector.load %arg4[%c0_6, %c0_7] : memref<1x32xf32, #tpu.memory_space<vmem>>, vector<1x32xf32>
    %15 = vector.broadcast %14 : vector<1x32xf32> to vector<256x32xf32>
    %16 = arith.addf %13, %15 : vector<256x32xf32>
    %cst_8 = arith.constant 0.000000e+00 : f32
    %17 = vector.broadcast %cst_8 : f32 to vector<256x32xf32>
    %18 = arith.maximumf %16, %17 : vector<256x32xf32>
    %19 = arith.truncf %18 : vector<256x32xf32> to vector<256x32xbf16>
    %c0_9 = arith.constant 0 : index
    %c0_10 = arith.constant 0 : index
    %20 = vector.load %arg5[%c0_9, %c0_10] : memref<256x32xbf16, #tpu.memory_space<vmem>>, vector<256x32xbf16>
    tpu.vector_store %arg5[%c0_9, %c0_10], %19 {strides = array<i32>} : memref<256x32xbf16, #tpu.memory_space<vmem>>, vector<256x32xbf16>,
    return
  }
  func.func @transform_0(%arg0: i32) -> (i32, i32, i32) {
    %c0_i32 = arith.constant 0 : i32
    %c0_i32_0 = arith.constant 0 : i32
    %c0_i32_1 = arith.constant 0 : i32
    return %arg0, %c0_i32, %c0_i32_0 : i32, i32, i32
  }
  func.func @transform_1(%arg0: i32) -> (i32, i32) {
    %c0_i32 = arith.constant 0 : i32
    %c0_i32_0 = arith.constant 0 : i32
    %c0_i32_1 = arith.constant 0 : i32
    return %c0_i32, %c0_i32_0 : i32, i32
  }
  func.func @transform_2(%arg0: i32) -> (i32, i32) {
    %c0_i32 = arith.constant 0 : i32
    %c0_i32_0 = arith.constant 0 : i32
    %c0_i32_1 = arith.constant 0 : i32
    return %c0_i32, %c0_i32_0 : i32, i32
  }
  func.func @transform_3(%arg0: i32) -> (i32, i32) {
    %c0_i32 = arith.constant 0 : i32
    %c0_i32_0 = arith.constant 0 : i32
    %c0_i32_1 = arith.constant 0 : i32
    return %c0_i32, %c0_i32_0 : i32, i32
  }
  func.func @transform_4(%arg0: i32) -> (i32, i32) {
    %c0_i32 = arith.constant 0 : i32
    %c0_i32_0 = arith.constant 0 : i32
    return %arg0, %c0_i32 : i32, i32
  }
}

module attributes {stable_mosaic.version = 11 : i64} {
  func.func @mlp_head_kernel(%arg0: memref<2x3872xbf16, #tpu.memory_space<vmem>>, %arg1: memref<3872x64xbf16, #tpu.memory_space<vmem>>, %arg2: memref<1x64xf32, #tpu.memory_space<vmem>>, %arg3: memref<1x64xf32, #tpu.memory_space<vmem>>, %arg4: memref<1x1xf32, #tpu.memory_space<vmem>>, %arg5: memref<2x1xf32, #tpu.memory_space<vmem>>) attributes {dimension_semantics = [], scalar_prefetch = 0 : i64, scratch_operands = 0 : i64, tpu.core_type = #tpu.core_type<tc>} {
    %c0 = arith.constant 0 : index
    %c0_0 = arith.constant 0 : index
    %0 = vector.load %arg0[%c0, %c0_0] : memref<2x3872xbf16, #tpu.memory_space<vmem>>, vector<2x3872xbf16>
    %c0_1 = arith.constant 0 : index
    %c0_2 = arith.constant 0 : index
    %1 = vector.load %arg1[%c0_1, %c0_2] : memref<3872x64xbf16, #tpu.memory_space<vmem>>, vector<3872x64xbf16>
    %cst = arith.constant dense<0.000000e+00> : vector<2x64xf32>
    %2 = tpu.matmul %0, %1, %cst {dimension_numbers = #tpu.dot_dimension_numbers<[1], [0], [0], [1], [0, 0, 1, 1], [], []>} : vector<2x3872xbf16>, vector<3872x64xbf16>, vector<2x64xf32> -> vector<2x64xf32>
    %c0_3 = arith.constant 0 : index
    %c0_4 = arith.constant 0 : index
    %3 = vector.load %arg2[%c0_3, %c0_4] : memref<1x64xf32, #tpu.memory_space<vmem>>, vector<1x64xf32>
    %4 = vector.broadcast %3 : vector<1x64xf32> to vector<2x64xf32>
    %5 = arith.addf %2, %4 : vector<2x64xf32>
    %c0_5 = arith.constant 0 : index
    %c0_6 = arith.constant 0 : index
    %6 = vector.load %arg3[%c0_5, %c0_6] : memref<1x64xf32, #tpu.memory_space<vmem>>, vector<1x64xf32>
    %7 = vector.broadcast %6 : vector<1x64xf32> to vector<2x64xf32>
    %8 = arith.mulf %5, %7 : vector<2x64xf32>
    %cst_7 = arith.constant dense<0.000000e+00> : vector<2xf32>
    %9 = vector.multi_reduction <add>, %8, %cst_7 [1] : vector<2x64xf32> to vector<2xf32>
    %10 = vector.shape_cast %9 : vector<2xf32> to vector<2x1xf32>
    %c0_8 = arith.constant 0 : index
    %c0_9 = arith.constant 0 : index
    %11 = vector.load %arg4[%c0_8, %c0_9] : memref<1x1xf32, #tpu.memory_space<vmem>>, vector<1x1xf32>
    %12 = vector.broadcast %11 : vector<1x1xf32> to vector<2x1xf32>
    %13 = arith.addf %10, %12 : vector<2x1xf32>
    %cst_10 = arith.constant 0.000000e+00 : f32
    %14 = vector.broadcast %cst_10 : f32 to vector<2x1xf32>
    %15 = arith.subf %14, %13 : vector<2x1xf32>
    %16 = math.exp %15 : vector<2x1xf32>
    %cst_11 = arith.constant 1.000000e+00 : f32
    %17 = vector.broadcast %cst_11 : f32 to vector<2x1xf32>
    %18 = arith.addf %17, %16 : vector<2x1xf32>
    %cst_12 = arith.constant 1.000000e+00 : f32
    %19 = vector.broadcast %cst_12 : f32 to vector<2x1xf32>
    %20 = arith.divf %19, %18 : vector<2x1xf32>
    %c0_13 = arith.constant 0 : index
    %c0_14 = arith.constant 0 : index
    %21 = vector.load %arg5[%c0_13, %c0_14] : memref<2x1xf32, #tpu.memory_space<vmem>>, vector<2x1xf32>
    tpu.vector_store %arg5[%c0_13, %c0_14], %20 {strides = array<i32>} : memref<2x1xf32, #tpu.memory_space<vmem>>, vector<2x1xf32>,
    return
  }
}

</mosaic_0001>

<bundles_post_ra>
// kernel: deepseed_forward.3
= control target key start
LH: loop header
LB: loop body
LE: loop exit
PB: predicated region body
PF: predicated region fallthrough
CT: control target
= control target key end

     0   :  { %s1994_s15 = smov 0   ;;  %s2298_s0 = inlined_call_operand.vmem [shape: bf16[5,1024,64], index: 0, kind: input, shape index: {}]   ;;  %s2299_s1 = inlined_call_operand.vmem [shape: bf16[64,32], index: 1, kind: input, shape index: {}]   ;;  %s2300_s2 = inlined_call_operand.vmem [shape: f32[1,32], index: 2, kind: input, shape index: {}]   ;;  %s2301_s3 = inlined_call_operand.vmem [shape: f32[1,32], index: 3, kind: input, shape index: {}]   ;;  %s2302_s4 = inlined_call_operand.vmem [shape: bf16[1280,32], index: 4, kind: output, shape index: {}]  }
   0x1 LB: > { %s2000_s16 = sadd.s32 4294967295, %s1967_s15   ;;  %p1527_p0 = scmp.ge.s32.totalorder %s1967_s15, 1  ;;  %s1967_s15 = sphi %s1994_s15, %s14_s15  }
   0x2   : > { %p162_p1 = scmp.lt.s32.totalorder %s1967_s15, 6 }
   0x4   : > { %p163_p2 = pnand %p1527_p0, %p162_p1 }
   0x5   : > { %p188_p3 = scmp.lt.s32.totalorder (!%p163_p2), %s2000_s16, 4  ;;  %s1530_s30 = sshll.u32 (!%p163_p2), %s2000_s16, 5 }
   0x6   : > { %166 = sbr.rel (%p163_p2) target bundleno = 421 (0x1a5), region = 36  ;;  %p194_p4 = scmp.lt.s32.totalorder (!%p163_p2), %s1530_s30, 159 }
   0xb   : > { %v1938_v0 = vld [vmem:[%s2299_s1 + $0x18] sm:$0xff]  ;;  %v1937_v1 = vld [vmem:[%s2299_s1 + $0x10] sm:$0xff]  ;;  %s189_s21 = scalar_select %p188_p3, %s2000_s16, 4  ;;  %v1936_v2 = vld [vmem:[%s2299_s1 + $0x8] sm:$0xff]  ;;  %vm680_vm0 = vcmask 523264   ;;  %vm1434_vm1 = vcmask 257024  }
   0xc   : > { %877 = vmatpush.bf16.msra.mxu0 %v1938_v0  ;;  %1939 = vmatpush.bf16.msra.mxu1 %v1938_v0  ;;  %v1935_v3 = vld [vmem:[%s2299_s1] sm:$0xff]  ;;  %s2304_s30 = smov (!%p194_p4, %s1530_s30), 159 }
   0xd   : > { %1940 = vmatpush.bf16.msra.mxu2 %v1938_v0  ;;  %1941 = vmatpush.bf16.msra.mxu3 %v1938_v0  ;;  %s1870_s24 = sshll.u32 %s189_s21, 9  ;;  %v2099_v46 = vld [vmem:[%s2300_s2] ss:$0 sm:$0xff]  ;;  %s1531_s9 = sshll.u32 %s2304_s30, 2 }
   0xe   : > { %s2021_s29 = scalar_lea.vmem %s2298_s0, %s1870_s24  ;;  %v2104_v50 = vld [vmem:[%s2301_s3] ss:$0 sm:$0xff]  ;;  %s2115_s12 = scalar_lea.vmem %s2302_s4, %s1531_s9 }
   0xf   : > { %v1871_v4 = vld [vmem:[%s2021_s29] sm:$0xff]  ;;  %v1872_v8 = vld [vmem:[%s2021_s29 + $0x8] sm:$0xff]  ;;  %v1873_v12 = vld [vmem:[%s2021_s29 + $0x10] sm:$0xff] }
  0x10   : > { %878 = vmatpush.bf16.msra.mxu0 %v1937_v1  ;;  %1942 = vmatpush.bf16.msra.mxu1 %v1937_v1  ;;  %v1887_v5 = vld [vmem:[%s2021_s29 + $0x80] sm:$0xff]  ;;  %v1888_v9 = vld [vmem:[%s2021_s29 + $0x88] sm:$0xff]  ;;  %v1889_v13 = vld [vmem:[%s2021_s29 + $0x90] sm:$0xff] }
  0x11   : > { %1943 = vmatpush.bf16.msra.mxu2 %v1937_v1  ;;  %1944 = vmatpush.bf16.msra.mxu3 %v1937_v1  ;;  %v1903_v6 = vld [vmem:[%s2021_s29 + $0x100] sm:$0xff]  ;;  %v1904_v10 = vld [vmem:[%s2021_s29 + $0x108] sm:$0xff]  ;;  %v1905_v14 = vld [vmem:[%s2021_s29 + $0x110] sm:$0xff] }
  0x12   : > { %v1919_v7 = vld [vmem:[%s2021_s29 + $0x180] sm:$0xff]  ;;  %v1920_v11 = vld [vmem:[%s2021_s29 + $0x188] sm:$0xff]  ;;  %v1921_v15 = vld [vmem:[%s2021_s29 + $0x190] sm:$0xff] }
  0x13   : > { %v1874_v16 = vld [vmem:[%s2021_s29 + $0x18] sm:$0xff]  ;;  %v1875_v20 = vld [vmem:[%s2021_s29 + $0x20] sm:$0xff]  ;;  %v1876_v24 = vld [vmem:[%s2021_s29 + $0x28] sm:$0xff] }
  0x14   : > { %879 = vmatpush.bf16.msra.mxu0 %v1936_v2  ;;  %1945 = vmatpush.bf16.msra.mxu1 %v1936_v2  ;;  %v1890_v17 = vld [vmem:[%s2021_s29 + $0x98] sm:$0xff]  ;;  %v1891_v21 = vld [vmem:[%s2021_s29 + $0xa0] sm:$0xff]  ;;  %v1892_v25 = vld [vmem:[%s2021_s29 + $0xa8] sm:$0xff] }
  0x15   : > { %1946 = vmatpush.bf16.msra.mxu2 %v1936_v2  ;;  %1947 = vmatpush.bf16.msra.mxu3 %v1936_v2  ;;  %v1906_v18 = vld [vmem:[%s2021_s29 + $0x118] sm:$0xff]  ;;  %v1907_v22 = vld [vmem:[%s2021_s29 + $0x120] sm:$0xff]  ;;  %v1908_v26 = vld [vmem:[%s2021_s29 + $0x128] sm:$0xff] }
  0x16   : > { %v1922_v19 = vld [vmem:[%s2021_s29 + $0x198] sm:$0xff]  ;;  %v1923_v23 = vld [vmem:[%s2021_s29 + $0x1a0] sm:$0xff]  ;;  %v1924_v27 = vld [vmem:[%s2021_s29 + $0x1a8] sm:$0xff] }
  0x17   : > { %v1877_v28 = vld [vmem:[%s2021_s29 + $0x30] sm:$0xff]  ;;  %v1878_v32 = vld [vmem:[%s2021_s29 + $0x38] sm:$0xff]  ;;  %v1879_v36 = vld [vmem:[%s2021_s29 + $0x40] sm:$0xff] }
  0x18   : > { %880 = vmatpush.bf16.msra.mxu0 %v1935_v3  ;;  %1948 = vmatpush.bf16.msra.mxu1 %v1935_v3  ;;  %v1893_v29 = vld [vmem:[%s2021_s29 + $0xb0] sm:$0xff]  ;;  %v1894_v33 = vld [vmem:[%s2021_s29 + $0xb8] sm:$0xff]  ;;  %v1895_v37 = vld [vmem:[%s2021_s29 + $0xc0] sm:$0xff] }
  0x19   : > { %1949 = vmatpush.bf16.msra.mxu2 %v1935_v3  ;;  %1950 = vmatpush.bf16.msra.mxu3 %v1935_v3  ;;  %v1909_v30 = vld [vmem:[%s2021_s29 + $0x130] sm:$0xff]  ;;  %v1910_v34 = vld [vmem:[%s2021_s29 + $0x138] sm:$0xff]  ;;  %v1911_v40 = vld [vmem:[%s2021_s29 + $0x140] sm:$0xff] }
  0x1a   : > { %v1925_v31 = vld [vmem:[%s2021_s29 + $0x1b0] sm:$0xff]  ;;  %v1926_v35 = vld [vmem:[%s2021_s29 + $0x1b8] sm:$0xff]  ;;  %v1927_v41 = vld [vmem:[%s2021_s29 + $0x1c0] sm:$0xff] }
  0x1b   : > { %1804 = vmatmul.msk.bf16.vlgmr.msra.gmra.mxu0 %vm680_vm0, %v1871_v4  ;;  %1820 = vmatmul.msk.bf16.vlgmr.msra.gmra.mxu1 %vm680_vm0, %v1887_v5  ;;  %v1880_v55 = vld [vmem:[%s2021_s29 + $0x48] sm:$0xff] }
  0x1c   : > { %1836 = vmatmul.msk.bf16.vlgmr.msra.gmra.mxu2 %vm680_vm0, %v1903_v6  ;;  %1852 = vmatmul.msk.bf16.vlgmr.msra.gmra.mxu3 %vm680_vm0, %v1919_v7  ;;  %v1896_v56 = vld [vmem:[%s2021_s29 + $0xc8] sm:$0xff] }
  0x1d   : > { %v1912_v62 = vld [vmem:[%s2021_s29 + $0x148] sm:$0xff] }
  0x1e   : > { %v1928_v63 = vld [vmem:[%s2021_s29 + $0x1c8] sm:$0xff] }
  0x2b   : > { %1805 = vmatmul.msk.bf16.gmra.mxu0 %vm680_vm0, %v1872_v8  ;;  %1821 = vmatmul.msk.bf16.gmra.mxu1 %vm680_vm0, %v1888_v9 }
  0x2c   : > { %1837 = vmatmul.msk.bf16.gmra.mxu2 %vm680_vm0, %v1904_v10  ;;  %1853 = vmatmul.msk.bf16.gmra.mxu3 %vm680_vm0, %v1920_v11 }
  0x3b   : > { %1806 = vmatmul.msk.bf16.gmra.mxu0 %vm680_vm0, %v1873_v12  ;;  %1822 = vmatmul.msk.bf16.gmra.mxu1 %vm680_vm0, %v1889_v13 }
  0x3c   : > { %1838 = vmatmul.msk.bf16.gmra.mxu2 %vm680_vm0, %v1905_v14  ;;  %1854 = vmatmul.msk.bf16.gmra.mxu3 %vm680_vm0, %v1921_v15 }
  0x4b   : > { %1807 = vmatmul.msk.bf16.gmra.mxu0 %vm680_vm0, %v1874_v16  ;;  %1823 = vmatmul.msk.bf16.gmra.mxu1 %vm680_vm0, %v1890_v17  ;;  %v1881_v17 = vld [vmem:[%s2021_s29 + $0x50] sm:$0xff] }
  0x4c   : > { %1839 = vmatmul.msk.bf16.gmra.mxu2 %vm680_vm0, %v1906_v18  ;;  %1855 = vmatmul.msk.bf16.gmra.mxu3 %vm680_vm0, %v1922_v19  ;;  %v1897_v18 = vld [vmem:[%s2021_s29 + $0xd0] sm:$0xff] }
  0x5b   : > { %1808 = vmatmul.msk.bf16.gmra.mxu0 %vm680_vm0, %v1875_v20  ;;  %1824 = vmatmul.msk.bf16.gmra.mxu1 %vm680_vm0, %v1891_v21 }
  0x5c   : > { %1840 = vmatmul.msk.bf16.gmra.mxu2 %vm680_vm0, %v1907_v22  ;;  %1856 = vmatmul.msk.bf16.gmra.mxu3 %vm680_vm0, %v1923_v23 }
  0x6b   : > { %1809 = vmatmul.msk.bf16.gmra.mxu0 %vm680_vm0, %v1876_v24  ;;  %1825 = vmatmul.msk.bf16.gmra.mxu1 %vm680_vm0, %v1892_v25  ;;  %v1913_v24 = vld [vmem:[%s2021_s29 + $0x150] sm:$0xff] }
  0x6c   : > { %1841 = vmatmul.msk.bf16.gmra.mxu2 %vm680_vm0, %v1908_v26  ;;  %1857 = vmatmul.msk.bf16.gmra.mxu3 %vm680_vm0, %v1924_v27  ;;  %v1929_v25 = vld [vmem:[%s2021_s29 + $0x1d0] sm:$0xff] }
  0x7b   : > { %1810 = vmatmul.msk.bf16.gmra.mxu0 %vm680_vm0, %v1877_v28  ;;  %1826 = vmatmul.msk.bf16.gmra.mxu1 %vm680_vm0, %v1893_v29 }
  0x7c   : > { %1842 = vmatmul.msk.bf16.gmra.mxu2 %vm680_vm0, %v1909_v30  ;;  %1858 = vmatmul.msk.bf16.gmra.mxu3 %vm680_vm0, %v1925_v31 }
  0x8b   : > { %1811 = vmatmul.msk.bf16.gmra.mxu0 %vm680_vm0, %v1878_v32  ;;  %1827 = vmatmul.msk.bf16.gmra.mxu1 %vm680_vm0, %v1894_v33 }
  0x8c   : > { %1843 = vmatmul.msk.bf16.gmra.mxu2 %vm680_vm0, %v1910_v34  ;;  %1859 = vmatmul.msk.bf16.gmra.mxu3 %vm680_vm0, %v1926_v35 }
  0x98   : > { %v882_v38 = vpop.f32.mrf.mxu0  ;;  %v962_v39 = vpop.f32.mrf.mxu1 }
  0x99   : > { %v1202_v42 = vmax.f32 %v882_v38, %v962_v39 }
  0x9b   : > { %1812 = vmatmul.msk.bf16.gmra.mxu0 %vm680_vm0, %v1879_v36  ;;  %1828 = vmatmul.msk.bf16.gmra.mxu1 %vm680_vm0, %v1895_v37 }
  0x9c   : > { %1844 = vmatmul.msk.bf16.gmra.mxu2 %vm680_vm0, %v1911_v40  ;;  %1860 = vmatmul.msk.bf16.gmra.mxu3 %vm680_vm0, %v1927_v41 }
  0x9f   : > { %v1042_v43 = vpop.f32.mrf.mxu2  ;;  %v1122_v44 = vpop.f32.mrf.mxu3 }
  0xa0   : > { %v1234_v45 = vmax.f32 %v1042_v43, %v1122_v44  ;;  %v884_v47 = vpop.f32.mrf.mxu0  ;;  %v964_v48 = vpop.f32.mrf.mxu1  ;;  %v1882_v43 = vld [vmem:[%s2021_s29 + $0x58] sm:$0xff] }
  0xa1   : > { %v1203_v58 = vmax.f32 %v884_v47, %v964_v48  ;;  %v1898_v44 = vld [vmem:[%s2021_s29 + $0xd8] sm:$0xff] }
  0xa2   : > { %v1266_v49 = vmax.f32 %v1202_v42, %v1234_v45 }
  0xa4   : > { %v1302_v51 = vmul.f32 %v2099_v46, %v1266_v49 }
  0xa6   : > { %v1338_v52 = vadd.f32 %v2104_v50, %v1302_v51 }
  0xa7   : > { %v1044_v53 = vpop.f32.mrf.mxu2  ;;  %v1124_v54 = vpop.f32.mrf.mxu3 }
  0xa8   : > { %v1370_v57 = vmax.f32 %v1338_v52, 0.0  ;;  %v1235_v59 = vmax.f32 %v1044_v53, %v1124_v54  ;;  %v887_v60 = vpop.f32.mrf.mxu0  ;;  %v967_v61 = vpop.f32.mrf.mxu1  ;;  %v1914_v52 = vld [vmem:[%s2021_s29 + $0x158] sm:$0xff] }
  0xa9   : > { %v1204_v4 = vmax.f32 %v887_v60, %v967_v61  ;;  %v1930_v53 = vld [vmem:[%s2021_s29 + $0x1d8] sm:$0xff] }
  0xaa   : > { %v1402_v0 = vpack.c.bf16 %v1370_v57, %v1370_v57  ;;  %v1267_v1 = vmax.f32 %v1203_v58, %v1235_v59 }
  0xab   : > { %1813 = vmatmul.msk.bf16.gmra.mxu0 %vm680_vm0, %v1880_v55  ;;  %1829 = vmatmul.msk.bf16.gmra.mxu1 %vm680_vm0, %v1896_v56 }
  0xac   : > { %1435 = vst.msk [vmem:[%s2115_s12] sm:$0xf] %vm1434_vm1, %v1402_v0  ;;  %v1303_v2 = vmul.f32 %v2099_v46, %v1267_v1  ;;  %1845 = vmatmul.msk.bf16.gmra.mxu2 %vm680_vm0, %v1912_v62  ;;  %1861 = vmatmul.msk.bf16.gmra.mxu3 %vm680_vm0, %v1928_v63 }
  0xae   : > { %v1339_v3 = vadd.f32 %v2104_v50, %v1303_v2 }
  0xaf   : > { %v1047_v5 = vpop.f32.mrf.mxu2  ;;  %v1127_v6 = vpop.f32.mrf.mxu3 }
  0xb0   : > { %v1371_v7 = vmax.f32 %v1339_v3, 0.0  ;;  %v1236_v8 = vmax.f32 %v1047_v5, %v1127_v6  ;;  %v889_v9 = vpop.f32.mrf.mxu0  ;;  %v969_v10 = vpop.f32.mrf.mxu1 }
  0xb1   : > { %v1205_v20 = vmax.f32 %v889_v9, %v969_v10 }
  0xb2   : > { %v1403_v11 = vpack.c.bf16 %v1371_v7, %v1371_v7  ;;  %v1268_v12 = vmax.f32 %v1204_v4, %v1236_v8  ;;  %v1883_v7 = vld [vmem:[%s2021_s29 + $0x60] sm:$0xff] }
  0xb3   : > { %v1899_v8 = vld [vmem:[%s2021_s29 + $0xe0] sm:$0xff] }
  0xb4   : > { %1436 = vst.msk [vmem:[%s2115_s12 + $0x4] sm:$0xf] %vm1434_vm1, %v1403_v11  ;;  %v1304_v13 = vmul.f32 %v2099_v46, %v1268_v12 }
  0xb6   : > { %v1340_v14 = vadd.f32 %v2104_v50, %v1304_v13 }
  0xb7   : > { %v1049_v15 = vpop.f32.mrf.mxu2  ;;  %v1129_v16 = vpop.f32.mrf.mxu3 }
  0xb8   : > { %v1372_v19 = vmax.f32 %v1340_v14, 0.0  ;;  %v1237_v21 = vmax.f32 %v1049_v15, %v1129_v16  ;;  %v892_v22 = vpop.f32.mrf.mxu0  ;;  %v972_v23 = vpop.f32.mrf.mxu1  ;;  %v1915_v14 = vld [vmem:[%s2021_s29 + $0x160] sm:$0xff] }
  0xb9   : > { %v1206_v30 = vmax.f32 %v892_v22, %v972_v23  ;;  %v1931_v15 = vld [vmem:[%s2021_s29 + $0x1e0] sm:$0xff] }
  0xba   : > { %v1404_v26 = vpack.c.bf16 %v1372_v19, %v1372_v19  ;;  %v1269_v27 = vmax.f32 %v1205_v20, %v1237_v21 }
  0xbb   : > { %1814 = vmatmul.msk.bf16.gmra.mxu0 %vm680_vm0, %v1881_v17  ;;  %1830 = vmatmul.msk.bf16.gmra.mxu1 %vm680_vm0, %v1897_v18 }
  0xbc   : > { %1437 = vst.msk [vmem:[%s2115_s12 + $0x8] sm:$0xf] %vm1434_vm1, %v1404_v26  ;;  %v1305_v28 = vmul.f32 %v2099_v46, %v1269_v27  ;;  %1846 = vmatmul.msk.bf16.gmra.mxu2 %vm680_vm0, %v1913_v24  ;;  %1862 = vmatmul.msk.bf16.gmra.mxu3 %vm680_vm0, %v1929_v25 }
  0xbe   : > { %v1341_v29 = vadd.f32 %v2104_v50, %v1305_v28 }
  0xbf   : > { %v1052_v31 = vpop.f32.mrf.mxu2  ;;  %v1132_v32 = vpop.f32.mrf.mxu3 }
  0xc0   : > { %v1373_v33 = vmax.f32 %v1341_v29, 0.0  ;;  %v1238_v34 = vmax.f32 %v1052_v31, %v1132_v32  ;;  %v894_v35 = vpop.f32.mrf.mxu0  ;;  %v974_v36 = vpop.f32.mrf.mxu1 }
  0xc1   : > { %v1207_v47 = vmax.f32 %v894_v35, %v974_v36 }
  0xc2   : > { %v1405_v37 = vpack.c.bf16 %v1373_v33, %v1373_v33  ;;  %v1270_v38 = vmax.f32 %v1206_v30, %v1238_v34  ;;  %v1884_v33 = vld [vmem:[%s2021_s29 + $0x68] sm:$0xff] }
  0xc3   : > { %v1900_v34 = vld [vmem:[%s2021_s29 + $0xe8] sm:$0xff] }
  0xc4   : > { %1438 = vst.msk [vmem:[%s2115_s12 + $0xc] sm:$0xf] %vm1434_vm1, %v1405_v37  ;;  %v1306_v39 = vmul.f32 %v2099_v46, %v1270_v38 }
  0xc6   : > { %v1342_v40 = vadd.f32 %v2104_v50, %v1306_v39 }
  0xc7   : > { %v1054_v41 = vpop.f32.mrf.mxu2  ;;  %v1134_v42 = vpop.f32.mrf.mxu3 }
  0xc8   : > { %v1374_v45 = vmax.f32 %v1342_v40, 0.0  ;;  %v1239_v48 = vmax.f32 %v1054_v41, %v1134_v42  ;;  %v897_v49 = vpop.f32.mrf.mxu0  ;;  %v977_v51 = vpop.f32.mrf.mxu1  ;;  %v1916_v40 = vld [vmem:[%s2021_s29 + $0x168] sm:$0xff] }
  0xc9   : > { %v1208_v58 = vmax.f32 %v897_v49, %v977_v51  ;;  %v1932_v41 = vld [vmem:[%s2021_s29 + $0x1e8] sm:$0xff] }
  0xca   : > { %v1406_v54 = vpack.c.bf16 %v1374_v45, %v1374_v45  ;;  %v1271_v55 = vmax.f32 %v1207_v47, %v1239_v48 }
  0xcb   : > { %1815 = vmatmul.msk.bf16.gmra.mxu0 %vm680_vm0, %v1882_v43  ;;  %1831 = vmatmul.msk.bf16.gmra.mxu1 %vm680_vm0, %v1898_v44 }
  0xcc   : > { %1439 = vst.msk [vmem:[%s2115_s12 + $0x10] sm:$0xf] %vm1434_vm1, %v1406_v54  ;;  %v1307_v56 = vmul.f32 %v2099_v46, %v1271_v55  ;;  %1847 = vmatmul.msk.bf16.gmra.mxu2 %vm680_vm0, %v1914_v52  ;;  %1863 = vmatmul.msk.bf16.gmra.mxu3 %vm680_vm0, %v1930_v53 }
  0xce   : > { %v1343_v57 = vadd.f32 %v2104_v50, %v1307_v56 }
  0xcf   : > { %v1057_v59 = vpop.f32.mrf.mxu2  ;;  %v1137_v60 = vpop.f32.mrf.mxu3 }
  0xd0   : > { %v1375_v61 = vmax.f32 %v1343_v57, 0.0  ;;  %v1240_v62 = vmax.f32 %v1057_v59, %v1137_v60  ;;  %v899_v63 = vpop.f32.mrf.mxu0  ;;  %v979_v0 = vpop.f32.mrf.mxu1 }
  0xd1   : > { %v1209_v10 = vmax.f32 %v899_v63, %v979_v0 }
  0xd2   : > { %v1407_v1 = vpack.c.bf16 %v1375_v61, %v1375_v61  ;;  %v1272_v2 = vmax.f32 %v1208_v58, %v1240_v62  ;;  %v1885_v61 = vld [vmem:[%s2021_s29 + $0x70] sm:$0xff] }
  0xd3   : > { %v1901_v62 = vld [vmem:[%s2021_s29 + $0xf0] sm:$0xff] }
  0xd4   : > { %1440 = vst.msk [vmem:[%s2115_s12 + $0x14] sm:$0xf] %vm1434_vm1, %v1407_v1  ;;  %v1308_v3 = vmul.f32 %v2099_v46, %v1272_v2 }
  0xd6   : > { %v1344_v4 = vadd.f32 %v2104_v50, %v1308_v3 }
  0xd7   : > { %v1059_v5 = vpop.f32.mrf.mxu2  ;;  %v1139_v6 = vpop.f32.mrf.mxu3 }
  0xd8   : > { %v1376_v9 = vmax.f32 %v1344_v4, 0.0  ;;  %v1241_v11 = vmax.f32 %v1059_v5, %v1139_v6  ;;  %v902_v12 = vpop.f32.mrf.mxu0  ;;  %v982_v13 = vpop.f32.mrf.mxu1  ;;  %v1917_v4 = vld [vmem:[%s2021_s29 + $0x170] sm:$0xff] }
  0xd9   : > { %v1210_v20 = vmax.f32 %v902_v12, %v982_v13  ;;  %v1933_v5 = vld [vmem:[%s2021_s29 + $0x1f0] sm:$0xff] }
  0xda   : > { %v1408_v16 = vpack.c.bf16 %v1376_v9, %v1376_v9  ;;  %v1273_v17 = vmax.f32 %v1209_v10, %v1241_v11 }
  0xdb   : > { %1816 = vmatmul.msk.bf16.gmra.mxu0 %vm680_vm0, %v1883_v7  ;;  %1832 = vmatmul.msk.bf16.gmra.mxu1 %vm680_vm0, %v1899_v8 }
  0xdc   : > { %1441 = vst.msk [vmem:[%s2115_s12 + $0x18] sm:$0xf] %vm1434_vm1, %v1408_v16  ;;  %v1309_v18 = vmul.f32 %v2099_v46, %v1273_v17  ;;  %1848 = vmatmul.msk.bf16.gmra.mxu2 %vm680_vm0, %v1915_v14  ;;  %1864 = vmatmul.msk.bf16.gmra.mxu3 %vm680_vm0, %v1931_v15 }
  0xde   : > { %v1345_v19 = vadd.f32 %v2104_v50, %v1309_v18 }
  0xdf   : > { %v1062_v21 = vpop.f32.mrf.mxu2  ;;  %v1142_v22 = vpop.f32.mrf.mxu3 }
  0xe0   : > { %v1377_v23 = vmax.f32 %v1345_v19, 0.0  ;;  %v1242_v24 = vmax.f32 %v1062_v21, %v1142_v22  ;;  %v904_v25 = vpop.f32.mrf.mxu0  ;;  %v984_v26 = vpop.f32.mrf.mxu1 }
  0xe1   : > { %v1211_v36 = vmax.f32 %v904_v25, %v984_v26 }
  0xe2   : > { %v1409_v27 = vpack.c.bf16 %v1377_v23, %v1377_v23  ;;  %v1274_v28 = vmax.f32 %v1210_v20, %v1242_v24  ;;  %v1886_v23 = vld [vmem:[%s2021_s29 + $0x78] sm:$0xff] }
  0xe3   : > { %v1902_v24 = vld [vmem:[%s2021_s29 + $0xf8] sm:$0xff] }
  0xe4   : > { %1442 = vst.msk [vmem:[%s2115_s12 + $0x1c] sm:$0xf] %vm1434_vm1, %v1409_v27  ;;  %v1310_v29 = vmul.f32 %v2099_v46, %v1274_v28 }
  0xe6   : > { %v1346_v30 = vadd.f32 %v2104_v50, %v1310_v29 }
  0xe7   : > { %v1064_v31 = vpop.f32.mrf.mxu2  ;;  %v1144_v32 = vpop.f32.mrf.mxu3 }
  0xe8   : > { %v1378_v35 = vmax.f32 %v1346_v30, 0.0  ;;  %v1243_v37 = vmax.f32 %v1064_v31, %v1144_v32  ;;  %v907_v38 = vpop.f32.mrf.mxu0  ;;  %v987_v39 = vpop.f32.mrf.mxu1  ;;  %v1918_v30 = vld [vmem:[%s2021_s29 + $0x178] sm:$0xff] }
  0xe9   : > { %v1212_v47 = vmax.f32 %v907_v38, %v987_v39  ;;  %v1934_v31 = vld [vmem:[%s2021_s29 + $0x1f8] sm:$0xff] }
  0xea   : > { %v1410_v42 = vpack.c.bf16 %v1378_v35, %v1378_v35  ;;  %v1275_v43 = vmax.f32 %v1211_v36, %v1243_v37 }
  0xeb   : > { %1817 = vmatmul.msk.bf16.gmra.mxu0 %vm680_vm0, %v1884_v33  ;;  %1833 = vmatmul.msk.bf16.gmra.mxu1 %vm680_vm0, %v1900_v34 }
  0xec   : > { %1443 = vst.msk [vmem:[%s2115_s12 + $0x20] sm:$0xf] %vm1434_vm1, %v1410_v42  ;;  %v1311_v44 = vmul.f32 %v2099_v46, %v1275_v43  ;;  %1849 = vmatmul.msk.bf16.gmra.mxu2 %vm680_vm0, %v1916_v40  ;;  %1865 = vmatmul.msk.bf16.gmra.mxu3 %vm680_vm0, %v1932_v41 }
  0xee   : > { %v1347_v45 = vadd.f32 %v2104_v50, %v1311_v44 }
  0xef   : > { %v1067_v48 = vpop.f32.mrf.mxu2  ;;  %v1147_v49 = vpop.f32.mrf.mxu3 }
  0xf0   : > { %v1379_v51 = vmax.f32 %v1347_v45, 0.0  ;;  %v1244_v52 = vmax.f32 %v1067_v48, %v1147_v49  ;;  %v909_v53 = vpop.f32.mrf.mxu0  ;;  %v989_v54 = vpop.f32.mrf.mxu1 }
  0xf1   : > { %v1213_v0 = vmax.f32 %v909_v53, %v989_v54 }
  0xf2   : > { %v1411_v55 = vpack.c.bf16 %v1379_v51, %v1379_v51  ;;  %v1276_v56 = vmax.f32 %v1212_v47, %v1244_v52 }
  0xf4   : > { %1444 = vst.msk [vmem:[%s2115_s12 + $0x24] sm:$0xf] %vm1434_vm1, %v1411_v55  ;;  %v1312_v57 = vmul.f32 %v2099_v46, %v1276_v56 }
  0xf6   : > { %v1348_v58 = vadd.f32 %v2104_v50, %v1312_v57 }
  0xf7   : > { %v1069_v59 = vpop.f32.mrf.mxu2  ;;  %v1149_v60 = vpop.f32.mrf.mxu3 }
  0xf8   : > { %v1380_v63 = vmax.f32 %v1348_v58, 0.0  ;;  %v1245_v1 = vmax.f32 %v1069_v59, %v1149_v60  ;;  %v912_v2 = vpop.f32.mrf.mxu0  ;;  %v992_v3 = vpop.f32.mrf.mxu1 }
  0xf9   : > { %v1214_v10 = vmax.f32 %v912_v2, %v992_v3 }
  0xfa   : > { %v1412_v6 = vpack.c.bf16 %v1380_v63, %v1380_v63  ;;  %v1277_v7 = vmax.f32 %v1213_v0, %v1245_v1 }
  0xfb   : > { %1818 = vmatmul.msk.bf16.gmra.mxu0 %vm680_vm0, %v1885_v61  ;;  %1834 = vmatmul.msk.bf16.gmra.mxu1 %vm680_vm0, %v1901_v62 }
  0xfc   : > { %1445 = vst.msk [vmem:[%s2115_s12 + $0x28] sm:$0xf] %vm1434_vm1, %v1412_v6  ;;  %v1313_v8 = vmul.f32 %v2099_v46, %v1277_v7  ;;  %1850 = vmatmul.msk.bf16.gmra.mxu2 %vm680_vm0, %v1917_v4  ;;  %1866 = vmatmul.msk.bf16.gmra.mxu3 %vm680_vm0, %v1933_v5 }
  0xfe   : > { %v1349_v9 = vadd.f32 %v2104_v50, %v1313_v8 }
  0xff   : > { %v1072_v11 = vpop.f32.mrf.mxu2  ;;  %v1152_v12 = vpop.f32.mrf.mxu3 }
 0x100   : > { %v1381_v13 = vmax.f32 %v1349_v9, 0.0  ;;  %v1246_v14 = vmax.f32 %v1072_v11, %v1152_v12  ;;  %v914_v15 = vpop.f32.mrf.mxu0  ;;  %v994_v16 = vpop.f32.mrf.mxu1 }
 0x101   : > { %v1215_v26 = vmax.f32 %v914_v15, %v994_v16 }
 0x102   : > { %v1413_v17 = vpack.c.bf16 %v1381_v13, %v1381_v13  ;;  %v1278_v18 = vmax.f32 %v1214_v10, %v1246_v14 }
 0x104   : > { %1446 = vst.msk [vmem:[%s2115_s12 + $0x2c] sm:$0xf] %vm1434_vm1, %v1413_v17  ;;  %v1314_v19 = vmul.f32 %v2099_v46, %v1278_v18 }
 0x106   : > { %v1350_v20 = vadd.f32 %v2104_v50, %v1314_v19 }
 0x107   : > { %v1074_v21 = vpop.f32.mrf.mxu2  ;;  %v1154_v22 = vpop.f32.mrf.mxu3 }
 0x108   : > { %v1382_v25 = vmax.f32 %v1350_v20, 0.0  ;;  %v1247_v27 = vmax.f32 %v1074_v21, %v1154_v22  ;;  %v917_v28 = vpop.f32.mrf.mxu0  ;;  %v997_v29 = vpop.f32.mrf.mxu1 }
 0x109   : > { %v1216_v36 = vmax.f32 %v917_v28, %v997_v29 }
 0x10a   : > { %v1414_v32 = vpack.c.bf16 %v1382_v25, %v1382_v25  ;;  %v1279_v33 = vmax.f32 %v1215_v26, %v1247_v27 }
 0x10b   : > { %1819 = vmatmul.msk.bf16.gmra.mxu0 %vm680_vm0, %v1886_v23  ;;  %1835 = vmatmul.msk.bf16.gmra.mxu1 %vm680_vm0, %v1902_v24 }
 0x10c   : > { %1447 = vst.msk [vmem:[%s2115_s12 + $0x30] sm:$0xf] %vm1434_vm1, %v1414_v32  ;;  %v1315_v34 = vmul.f32 %v2099_v46, %v1279_v33  ;;  %1851 = vmatmul.msk.bf16.gmra.mxu2 %vm680_vm0, %v1918_v30  ;;  %1867 = vmatmul.msk.bf16.gmra.mxu3 %vm680_vm0, %v1934_v31 }
 0x10e   : > { %v1351_v35 = vadd.f32 %v2104_v50, %v1315_v34 }
 0x10f   : > { %v1077_v37 = vpop.f32.mrf.mxu2  ;;  %v1157_v38 = vpop.f32.mrf.mxu3 }
 0x110   : > { %v1383_v39 = vmax.f32 %v1351_v35, 0.0  ;;  %v1248_v40 = vmax.f32 %v1077_v37, %v1157_v38  ;;  %v919_v41 = vpop.f32.mrf.mxu0  ;;  %v999_v42 = vpop.f32.mrf.mxu1 }
 0x111   : > { %v1217_v52 = vmax.f32 %v919_v41, %v999_v42 }
 0x112   : > { %v1415_v43 = vpack.c.bf16 %v1383_v39, %v1383_v39  ;;  %v1280_v44 = vmax.f32 %v1216_v36, %v1248_v40 }
 0x114   : > { %1448 = vst.msk [vmem:[%s2115_s12 + $0x34] sm:$0xf] %vm1434_vm1, %v1415_v43  ;;  %v1316_v45 = vmul.f32 %v2099_v46, %v1280_v44 }
 0x116   : > { %v1352_v47 = vadd.f32 %v2104_v50, %v1316_v45 }
 0x117   : > { %v1079_v48 = vpop.f32.mrf.mxu2  ;;  %v1159_v49 = vpop.f32.mrf.mxu3 }
 0x118   : > { %v1384_v51 = vmax.f32 %v1352_v47, 0.0  ;;  %v1249_v53 = vmax.f32 %v1079_v48, %v1159_v49  ;;  %v922_v54 = vpop.f32.mrf.mxu0  ;;  %v1002_v55 = vpop.f32.mrf.mxu1 }
 0x119   : > { %v1218_v60 = vmax.f32 %v922_v54, %v1002_v55 }
 0x11a   : > { %v1416_v56 = vpack.c.bf16 %v1384_v51, %v1384_v51  ;;  %v1281_v57 = vmax.f32 %v1217_v52, %v1249_v53 }
 0x11c   : > { %1449 = vst.msk [vmem:[%s2115_s12 + $0x38] sm:$0xf] %vm1434_vm1, %v1416_v56  ;;  %v1317_v58 = vmul.f32 %v2099_v46, %v1281_v57 }
 0x11e   : > { %v1353_v59 = vadd.f32 %v2104_v50, %v1317_v58 }
 0x11f   : > { %v1082_v61 = vpop.f32.mrf.mxu2  ;;  %v1162_v62 = vpop.f32.mrf.mxu3 }
 0x120   : > { %v1385_v63 = vmax.f32 %v1353_v59, 0.0  ;;  %v1250_v0 = vmax.f32 %v1082_v61, %v1162_v62  ;;  %v924_v1 = vpop.f32.mrf.mxu0  ;;  %v1004_v2 = vpop.f32.mrf.mxu1 }
 0x121   : > { %v1219_v10 = vmax.f32 %v924_v1, %v1004_v2 }
 0x122   : > { %v1417_v3 = vpack.c.bf16 %v1385_v63, %v1385_v63  ;;  %v1282_v4 = vmax.f32 %v1218_v60, %v1250_v0 }
 0x124   : > { %1450 = vst.msk [vmem:[%s2115_s12 + $0x3c] sm:$0xf] %vm1434_vm1, %v1417_v3  ;;  %v1318_v5 = vmul.f32 %v2099_v46, %v1282_v4 }
 0x126   : > { %v1354_v6 = vadd.f32 %v2104_v50, %v1318_v5 }
 0x127   : > { %v1084_v7 = vpop.f32.mrf.mxu2  ;;  %v1164_v8 = vpop.f32.mrf.mxu3 }
 0x128   : > { %v1386_v9 = vmax.f32 %v1354_v6, 0.0  ;;  %v1251_v11 = vmax.f32 %v1084_v7, %v1164_v8  ;;  %v927_v12 = vpop.f32.mrf.mxu0  ;;  %v1007_v13 = vpop.f32.mrf.mxu1 }
 0x129   : > { %v1220_v18 = vmax.f32 %v927_v12, %v1007_v13 }
 0x12a   : > { %v1418_v14 = vpack.c.bf16 %v1386_v9, %v1386_v9  ;;  %v1283_v15 = vmax.f32 %v1219_v10, %v1251_v11 }
 0x12c   : > { %1451 = vst.msk [vmem:[%s2115_s12 + $0x40] sm:$0xf] %vm1434_vm1, %v1418_v14  ;;  %v1319_v16 = vmul.f32 %v2099_v46, %v1283_v15 }
 0x12e   : > { %v1355_v17 = vadd.f32 %v2104_v50, %v1319_v16 }
 0x12f   : > { %v1087_v19 = vpop.f32.mrf.mxu2  ;;  %v1167_v20 = vpop.f32.mrf.mxu3 }
 0x130   : > { %v1387_v21 = vmax.f32 %v1355_v17, 0.0  ;;  %v1252_v22 = vmax.f32 %v1087_v19, %v1167_v20  ;;  %v929_v23 = vpop.f32.mrf.mxu0  ;;  %v1009_v24 = vpop.f32.mrf.mxu1 }
 0x131   : > { %v1221_v32 = vmax.f32 %v929_v23, %v1009_v24 }
 0x132   : > { %v1419_v25 = vpack.c.bf16 %v1387_v21, %v1387_v21  ;;  %v1284_v26 = vmax.f32 %v1220_v18, %v1252_v22 }
 0x134   : > { %1452 = vst.msk [vmem:[%s2115_s12 + $0x44] sm:$0xf] %vm1434_vm1, %v1419_v25  ;;  %v1320_v27 = vmul.f32 %v2099_v46, %v1284_v26 }
 0x136   : > { %v1356_v28 = vadd.f32 %v2104_v50, %v1320_v27 }
 0x137   : > { %v1089_v29 = vpop.f32.mrf.mxu2  ;;  %v1169_v30 = vpop.f32.mrf.mxu3 }
 0x138   : > { %v1388_v31 = vmax.f32 %v1356_v28, 0.0  ;;  %v1253_v33 = vmax.f32 %v1089_v29, %v1169_v30  ;;  %v932_v34 = vpop.f32.mrf.mxu0  ;;  %v1012_v35 = vpop.f32.mrf.mxu1 }
 0x139   : > { %v1222_v40 = vmax.f32 %v932_v34, %v1012_v35 }
 0x13a   : > { %v1420_v36 = vpack.c.bf16 %v1388_v31, %v1388_v31  ;;  %v1285_v37 = vmax.f32 %v1221_v32, %v1253_v33 }
 0x13c   : > { %1453 = vst.msk [vmem:[%s2115_s12 + $0x48] sm:$0xf] %vm1434_vm1, %v1420_v36  ;;  %v1321_v38 = vmul.f32 %v2099_v46, %v1285_v37 }
 0x13e   : > { %v1357_v39 = vadd.f32 %v2104_v50, %v1321_v38 }
 0x13f   : > { %v1092_v41 = vpop.f32.mrf.mxu2  ;;  %v1172_v42 = vpop.f32.mrf.mxu3 }
 0x140   : > { %v1389_v43 = vmax.f32 %v1357_v39, 0.0  ;;  %v1254_v44 = vmax.f32 %v1092_v41, %v1172_v42  ;;  %v934_v45 = vpop.f32.mrf.mxu0  ;;  %v1014_v47 = vpop.f32.mrf.mxu1 }
 0x141   : > { %v1223_v56 = vmax.f32 %v934_v45, %v1014_v47 }
 0x142   : > { %v1421_v48 = vpack.c.bf16 %v1389_v43, %v1389_v43  ;;  %v1286_v49 = vmax.f32 %v1222_v40, %v1254_v44 }
 0x144   : > { %1454 = vst.msk [vmem:[%s2115_s12 + $0x4c] sm:$0xf] %vm1434_vm1, %v1421_v48  ;;  %v1322_v51 = vmul.f32 %v2099_v46, %v1286_v49 }
 0x146   : > { %v1358_v52 = vadd.f32 %v2104_v50, %v1322_v51 }
 0x147   : > { %v1094_v53 = vpop.f32.mrf.mxu2  ;;  %v1174_v54 = vpop.f32.mrf.mxu3 }
 0x148   : > { %v1390_v55 = vmax.f32 %v1358_v52, 0.0  ;;  %v1255_v57 = vmax.f32 %v1094_v53, %v1174_v54  ;;  %v937_v58 = vpop.f32.mrf.mxu0  ;;  %v1017_v59 = vpop.f32.mrf.mxu1 }
 0x149   : > { %v1224_v0 = vmax.f32 %v937_v58, %v1017_v59 }
 0x14a   : > { %v1422_v60 = vpack.c.bf16 %v1390_v55, %v1390_v55  ;;  %v1287_v61 = vmax.f32 %v1223_v56, %v1255_v57 }
 0x14c   : > { %1455 = vst.msk [vmem:[%s2115_s12 + $0x50] sm:$0xf] %vm1434_vm1, %v1422_v60  ;;  %v1323_v62 = vmul.f32 %v2099_v46, %v1287_v61 }
 0x14e   : > { %v1359_v63 = vadd.f32 %v2104_v50, %v1323_v62 }
 0x14f   : > { %v1097_v1 = vpop.f32.mrf.mxu2  ;;  %v1177_v2 = vpop.f32.mrf.mxu3 }
 0x150   : > { %v1391_v3 = vmax.f32 %v1359_v63, 0.0  ;;  %v1256_v4 = vmax.f32 %v1097_v1, %v1177_v2  ;;  %v939_v5 = vpop.f32.mrf.mxu0  ;;  %v1019_v6 = vpop.f32.mrf.mxu1 }
 0x151   : > { %v1225_v14 = vmax.f32 %v939_v5, %v1019_v6 }
 0x152   : > { %v1423_v7 = vpack.c.bf16 %v1391_v3, %v1391_v3  ;;  %v1288_v8 = vmax.f32 %v1224_v0, %v1256_v4 }
 0x154   : > { %1456 = vst.msk [vmem:[%s2115_s12 + $0x54] sm:$0xf] %vm1434_vm1, %v1423_v7  ;;  %v1324_v9 = vmul.f32 %v2099_v46, %v1288_v8 }
 0x156   : > { %v1360_v10 = vadd.f32 %v2104_v50, %v1324_v9 }
 0x157   : > { %v1099_v11 = vpop.f32.mrf.mxu2  ;;  %v1179_v12 = vpop.f32.mrf.mxu3 }
 0x158   : > { %v1392_v13 = vmax.f32 %v1360_v10, 0.0  ;;  %v1257_v15 = vmax.f32 %v1099_v11, %v1179_v12  ;;  %v942_v16 = vpop.f32.mrf.mxu0  ;;  %v1022_v17 = vpop.f32.mrf.mxu1 }
 0x159   : > { %v1226_v22 = vmax.f32 %v942_v16, %v1022_v17 }
 0x15a   : > { %v1424_v18 = vpack.c.bf16 %v1392_v13, %v1392_v13  ;;  %v1289_v19 = vmax.f32 %v1225_v14, %v1257_v15 }
 0x15c   : > { %1457 = vst.msk [vmem:[%s2115_s12 + $0x58] sm:$0xf] %vm1434_vm1, %v1424_v18  ;;  %v1325_v20 = vmul.f32 %v2099_v46, %v1289_v19 }
 0x15e   : > { %v1361_v21 = vadd.f32 %v2104_v50, %v1325_v20 }
 0x15f   : > { %v1102_v23 = vpop.f32.mrf.mxu2  ;;  %v1182_v24 = vpop.f32.mrf.mxu3 }
 0x160   : > { %v1393_v25 = vmax.f32 %v1361_v21, 0.0  ;;  %v1258_v26 = vmax.f32 %v1102_v23, %v1182_v24  ;;  %v944_v27 = vpop.f32.mrf.mxu0  ;;  %v1024_v28 = vpop.f32.mrf.mxu1 }
 0x161   : > { %v1227_v36 = vmax.f32 %v944_v27, %v1024_v28 }
 0x162   : > { %v1425_v29 = vpack.c.bf16 %v1393_v25, %v1393_v25  ;;  %v1290_v30 = vmax.f32 %v1226_v22, %v1258_v26 }
 0x164   : > { %1458 = vst.msk [vmem:[%s2115_s12 + $0x5c] sm:$0xf] %vm1434_vm1, %v1425_v29  ;;  %v1326_v31 = vmul.f32 %v2099_v46, %v1290_v30 }
 0x166   : > { %v1362_v32 = vadd.f32 %v2104_v50, %v1326_v31 }
 0x167   : > { %v1104_v33 = vpop.f32.mrf.mxu2  ;;  %v1184_v34 = vpop.f32.mrf.mxu3 }
 0x168   : > { %v1394_v35 = vmax.f32 %v1362_v32, 0.0  ;;  %v1259_v37 = vmax.f32 %v1104_v33, %v1184_v34  ;;  %v947_v38 = vpop.f32.mrf.mxu0  ;;  %v1027_v39 = vpop.f32.mrf.mxu1 }
 0x169   : > { %v1228_v44 = vmax.f32 %v947_v38, %v1027_v39 }
 0x16a   : > { %v1426_v40 = vpack.c.bf16 %v1394_v35, %v1394_v35  ;;  %v1291_v41 = vmax.f32 %v1227_v36, %v1259_v37 }
 0x16c   : > { %1459 = vst.msk [vmem:[%s2115_s12 + $0x60] sm:$0xf] %vm1434_vm1, %v1426_v40  ;;  %v1327_v42 = vmul.f32 %v2099_v46, %v1291_v41 }
 0x16e   : > { %v1363_v43 = vadd.f32 %v2104_v50, %v1327_v42 }
 0x16f   : > { %v1107_v45 = vpop.f32.mrf.mxu2  ;;  %v1187_v47 = vpop.f32.mrf.mxu3 }
 0x170   : > { %v1395_v48 = vmax.f32 %v1363_v43, 0.0  ;;  %v1260_v49 = vmax.f32 %v1107_v45, %v1187_v47  ;;  %v949_v51 = vpop.f32.mrf.mxu0  ;;  %v1029_v52 = vpop.f32.mrf.mxu1 }
 0x171   : > { %v1229_v60 = vmax.f32 %v949_v51, %v1029_v52 }
 0x172   : > { %v1427_v53 = vpack.c.bf16 %v1395_v48, %v1395_v48  ;;  %v1292_v54 = vmax.f32 %v1228_v44, %v1260_v49 }
 0x174   : > { %1460 = vst.msk [vmem:[%s2115_s12 + $0x64] sm:$0xf] %vm1434_vm1, %v1427_v53  ;;  %v1328_v55 = vmul.f32 %v2099_v46, %v1292_v54 }
 0x176   : > { %v1364_v56 = vadd.f32 %v2104_v50, %v1328_v55 }
 0x177   : > { %v1109_v57 = vpop.f32.mrf.mxu2  ;;  %v1189_v58 = vpop.f32.mrf.mxu3 }
 0x178   : > { %v1396_v59 = vmax.f32 %v1364_v56, 0.0  ;;  %v1261_v61 = vmax.f32 %v1109_v57, %v1189_v58  ;;  %v952_v62 = vpop.f32.mrf.mxu0  ;;  %v1032_v63 = vpop.f32.mrf.mxu1 }
 0x179   : > { %v1230_v4 = vmax.f32 %v952_v62, %v1032_v63 }
 0x17a   : > { %v1428_v0 = vpack.c.bf16 %v1396_v59, %v1396_v59  ;;  %v1293_v1 = vmax.f32 %v1229_v60, %v1261_v61 }
 0x17c   : > { %1461 = vst.msk [vmem:[%s2115_s12 + $0x68] sm:$0xf] %vm1434_vm1, %v1428_v0  ;;  %v1329_v2 = vmul.f32 %v2099_v46, %v1293_v1 }
 0x17e   : > { %v1365_v3 = vadd.f32 %v2104_v50, %v1329_v2 }
 0x17f   : > { %v1112_v5 = vpop.f32.mrf.mxu2  ;;  %v1192_v6 = vpop.f32.mrf.mxu3 }
 0x180   : > { %v1397_v7 = vmax.f32 %v1365_v3, 0.0  ;;  %v1262_v8 = vmax.f32 %v1112_v5, %v1192_v6  ;;  %v954_v9 = vpop.f32.mrf.mxu0  ;;  %v1034_v10 = vpop.f32.mrf.mxu1 }
 0x181   : > { %v1231_v18 = vmax.f32 %v954_v9, %v1034_v10 }
 0x182   : > { %v1429_v11 = vpack.c.bf16 %v1397_v7, %v1397_v7  ;;  %v1294_v12 = vmax.f32 %v1230_v4, %v1262_v8 }
 0x184   : > { %1462 = vst.msk [vmem:[%s2115_s12 + $0x6c] sm:$0xf] %vm1434_vm1, %v1429_v11  ;;  %v1330_v13 = vmul.f32 %v2099_v46, %v1294_v12 }
 0x186   : > { %v1366_v14 = vadd.f32 %v2104_v50, %v1330_v13 }
 0x187   : > { %v1114_v15 = vpop.f32.mrf.mxu2  ;;  %v1194_v16 = vpop.f32.mrf.mxu3 }
 0x188   : > { %v1398_v17 = vmax.f32 %v1366_v14, 0.0  ;;  %v1263_v19 = vmax.f32 %v1114_v15, %v1194_v16  ;;  %v957_v22 = vpop.f32.mrf.mxu0  ;;  %v1037_v23 = vpop.f32.mrf.mxu1 }
 0x189   : > { %v1232_v26 = vmax.f32 %v957_v22, %v1037_v23 }
 0x18a   : > { %v1430_v20 = vpack.c.bf16 %v1398_v17, %v1398_v17  ;;  %v1295_v21 = vmax.f32 %v1231_v18, %v1263_v19 }
 0x18c   : > { %1463 = vst.msk [vmem:[%s2115_s12 + $0x70] sm:$0xf] %vm1434_vm1, %v1430_v20  ;;  %v1331_v24 = vmul.f32 %v2099_v46, %v1295_v21 }
 0x18e   : > { %v1367_v25 = vadd.f32 %v2104_v50, %v1331_v24 }
 0x18f   : > { %v1117_v27 = vpop.f32.mrf.mxu2  ;;  %v1197_v28 = vpop.f32.mrf.mxu3 }
 0x190   : > { %v1399_v29 = vmax.f32 %v1367_v25, 0.0  ;;  %v1264_v30 = vmax.f32 %v1117_v27, %v1197_v28  ;;  %v959_v34 = vpop.f32.mrf.mxu0  ;;  %v1039_v35 = vpop.f32.mrf.mxu1 }
 0x191   : > { %v1233_v40 = vmax.f32 %v959_v34, %v1039_v35 }
 0x192   : > { %v1431_v31 = vpack.c.bf16 %v1399_v29, %v1399_v29  ;;  %v1296_v32 = vmax.f32 %v1232_v26, %v1264_v30 }
 0x194   : > { %1464 = vst.msk [vmem:[%s2115_s12 + $0x74] sm:$0xf] %vm1434_vm1, %v1431_v31  ;;  %v1332_v33 = vmul.f32 %v2099_v46, %v1296_v32 }
 0x196   : > { %v1368_v36 = vadd.f32 %v2104_v50, %v1332_v33 }
 0x197   : > { %v1119_v37 = vpop.f32.mrf.mxu2  ;;  %v1199_v38 = vpop.f32.mrf.mxu3 }
 0x198   : > { %v1400_v39 = vmax.f32 %v1368_v36, 0.0  ;;  %v1265_v41 = vmax.f32 %v1119_v37, %v1199_v38 }
 0x19a   : > { %v1432_v42 = vpack.c.bf16 %v1400_v39, %v1400_v39  ;;  %v1297_v43 = vmax.f32 %v1233_v40, %v1265_v41 }
 0x19c   : > { %1465 = vst.msk [vmem:[%s2115_s12 + $0x78] sm:$0xf] %vm1434_vm1, %v1432_v42  ;;  %v1333_v44 = vmul.f32 %v2099_v46, %v1297_v43 }
 0x19e   : > { %v1369_v45 = vadd.f32 %v2104_v50, %v1333_v44 }
 0x1a0   : > { %v1401_v47 = vmax.f32 %v1369_v45, 0.0 }
 0x1a2   : > { %v1433_v48 = vpack.c.bf16 %v1401_v47, %v1401_v47 }
 0x1a4   : > { %1466 = vst.msk [vmem:[%s2115_s12 + $0x7c] sm:$0xf] %vm1434_vm1, %v1433_v48 }
 0x1a5 PF: > { %s14_s15 = sadd.s32 1, %s1967_s15  }
 0x1a6   : > { %p11_p5 = scmp.ge.s32.totalorder %s14_s15, 7  }
 0x1a8   :  { %13 = sbr.rel (!%p11_p5) target bundleno = 1 (0x1), region = 66 }

// kernel: deepseed_forward.4
= control target key start
LH: loop header
LB: loop body
LE: loop exit
PB: predicated region body
PF: predicated region fallthrough
CT: control target
= control target key end

     0   :  { %vm3357_vm0 = vcmask 257024   ;;  %s7080_s1 = inlined_call_operand.vmem [shape: bf16[512,32], index: 1, kind: input, shape index: {}]   ;;  %s7081_s0 = inlined_call_operand.vmem [shape: bf16[1,1024,512], index: 0, kind: input, shape index: {}]   ;;  %s7082_s2 = inlined_call_operand.vmem [shape: f32[1,32], index: 2, kind: input, shape index: {}]   ;;  %s7083_s3 = inlined_call_operand.vmem [shape: f32[1,32], index: 3, kind: input, shape index: {}]   ;;  %s7084_s4 = inlined_call_operand.vmem [shape: bf16[256,32], index: 4, kind: output, shape index: {}]  }
   0x1   :  { %v4809_v0 = vld [vmem:[%s7080_s1 + $0x38] sm:$0xff]  ;;  %v4808_v4 = vld [vmem:[%s7080_s1 + $0x30] sm:$0xff]  ;;  %v4807_v8 = vld [vmem:[%s7080_s1 + $0x28] sm:$0xff] }
   0x2   :  { %v4817_v1 = vld [vmem:[%s7080_s1 + $0x78] sm:$0xff]  ;;  %1809 = vmatpush.bf16.msra.mxu0 %v4809_v0  ;;  %v4816_v5 = vld [vmem:[%s7080_s1 + $0x70] sm:$0xff]  ;;  %v4815_v9 = vld [vmem:[%s7080_s1 + $0x68] sm:$0xff] }
   0x3   :  { %v4825_v2 = vld [vmem:[%s7080_s1 + $0xb8] sm:$0xff]  ;;  %2138 = vmatpush.bf16.msra.mxu1 %v4817_v1  ;;  %v4824_v6 = vld [vmem:[%s7080_s1 + $0xb0] sm:$0xff]  ;;  %v4823_v10 = vld [vmem:[%s7080_s1 + $0xa8] sm:$0xff] }
   0x4   :  { %v4833_v3 = vld [vmem:[%s7080_s1 + $0xf8] sm:$0xff]  ;;  %2467 = vmatpush.bf16.msra.mxu2 %v4825_v2  ;;  %v4832_v7 = vld [vmem:[%s7080_s1 + $0xf0] sm:$0xff]  ;;  %v4831_v11 = vld [vmem:[%s7080_s1 + $0xe8] sm:$0xff] }
   0x5   :  { %2796 = vmatpush.bf16.msra.mxu3 %v4833_v3  ;;  %v4806_v12 = vld [vmem:[%s7080_s1 + $0x20] sm:$0xff]  ;;  %v4805_v16 = vld [vmem:[%s7080_s1 + $0x18] sm:$0xff]  ;;  %v4804_v20 = vld [vmem:[%s7080_s1 + $0x10] sm:$0xff] }
   0x6   :  { %1810 = vmatpush.bf16.msra.mxu0 %v4808_v4  ;;  %v4814_v13 = vld [vmem:[%s7080_s1 + $0x60] sm:$0xff]  ;;  %v4813_v17 = vld [vmem:[%s7080_s1 + $0x58] sm:$0xff]  ;;  %v4812_v21 = vld [vmem:[%s7080_s1 + $0x50] sm:$0xff] }
   0x7   :  { %2139 = vmatpush.bf16.msra.mxu1 %v4816_v5  ;;  %v4822_v14 = vld [vmem:[%s7080_s1 + $0xa0] sm:$0xff]  ;;  %v4821_v18 = vld [vmem:[%s7080_s1 + $0x98] sm:$0xff]  ;;  %v4820_v22 = vld [vmem:[%s7080_s1 + $0x90] sm:$0xff] }
   0x8   :  { %2468 = vmatpush.bf16.msra.mxu2 %v4824_v6  ;;  %v4830_v15 = vld [vmem:[%s7080_s1 + $0xe0] sm:$0xff]  ;;  %v4829_v19 = vld [vmem:[%s7080_s1 + $0xd8] sm:$0xff]  ;;  %v4828_v23 = vld [vmem:[%s7080_s1 + $0xd0] sm:$0xff] }
   0x9   :  { %2797 = vmatpush.bf16.msra.mxu3 %v4832_v7  ;;  %v4803_v24 = vld [vmem:[%s7080_s1 + $0x8] sm:$0xff]  ;;  %v4802_v28 = vld [vmem:[%s7080_s1] sm:$0xff]  ;;  %v4548_v33 = vld [vmem:[%s7081_s0 + $0xc] sm:$0xf0] }
   0xa   :  { %1811 = vmatpush.bf16.msra.mxu0 %v4807_v8  ;;  %v4811_v25 = vld [vmem:[%s7080_s1 + $0x48] sm:$0xff]  ;;  %v4810_v29 = vld [vmem:[%s7080_s1 + $0x40] sm:$0xff]  ;;  %v3398_v35 = vld [vmem:[%s7081_s0 + $0x10] sm:$0xf0] }
   0xb   :  { %2140 = vmatpush.bf16.msra.mxu1 %v4815_v9  ;;  %v4819_v26 = vld [vmem:[%s7080_s1 + $0x88] sm:$0xff]  ;;  %v4818_v30 = vld [vmem:[%s7080_s1 + $0x80] sm:$0xff]  ;;  %v4549_v37 = vld [vmem:[%s7081_s0 + $0x14] sm:$0xf0] }
   0xc   :  { %2469 = vmatpush.bf16.msra.mxu2 %v4823_v10  ;;  %v4827_v27 = vld [vmem:[%s7080_s1 + $0xc8] sm:$0xff]  ;;  %v4826_v31 = vld [vmem:[%s7080_s1 + $0xc0] sm:$0xff]  ;;  %v3406_v39 = vld [vmem:[%s7081_s0 + $0x18] sm:$0xf0] }
   0xd   :  { %2798 = vmatpush.bf16.msra.mxu3 %v4831_v11  ;;  %v3396_v32 = vld [vmem:[%s7081_s0] sm:$0xf]  ;;  %v4546_v34 = vld [vmem:[%s7081_s0 + $0x4] sm:$0xf]  ;;  %v3404_v36 = vld [vmem:[%s7081_s0 + $0x8] sm:$0xf] }
   0xe   :  { %1812 = vmatpush.bf16.msra.mxu0 %v4806_v12  ;;  %v4547_v38 = vld [vmem:[%s7081_s0 + $0xc] sm:$0xf]  ;;  %v3397_v40 = vor.u32 %v4548_v33, %v3396_v32  ;;  %v3401_v41 = vor.u32 %v4546_v34, %v3398_v35  ;;  %v3405_v42 = vor.u32 %v4549_v37, %v3404_v36  ;;  %v3412_v44 = vld [vmem:[%s7081_s0 + $0x20] sm:$0xf]  ;;  %v4552_v45 = vld [vmem:[%s7081_s0 + $0x2c] sm:$0xf0] }
   0xf   :  { %2141 = vmatpush.bf16.msra.mxu1 %v4814_v13  ;;  %v3409_v43 = vor.u32 %v4547_v38, %v3406_v39  ;;  %v4550_v46 = vld [vmem:[%s7081_s0 + $0x24] sm:$0xf]  ;;  %v3414_v47 = vld [vmem:[%s7081_s0 + $0x30] sm:$0xf0]  ;;  %v3420_v48 = vld [vmem:[%s7081_s0 + $0x28] sm:$0xf]  ;;  %v3413_v52 = vor.u32 %v4552_v45, %v3412_v44 }
  0x10   :  { %2470 = vmatpush.bf16.msra.mxu2 %v4822_v14  ;;  %v4553_v49 = vld [vmem:[%s7081_s0 + $0x34] sm:$0xf0]  ;;  %v4551_v50 = vld [vmem:[%s7081_s0 + $0x2c] sm:$0xf]  ;;  %v3422_v51 = vld [vmem:[%s7081_s0 + $0x38] sm:$0xf0]  ;;  %v3417_v53 = vor.u32 %v4550_v46, %v3414_v47 }
  0x11   :  { %2799 = vmatpush.bf16.msra.mxu3 %v4830_v15  ;;  %v3421_v54 = vor.u32 %v4553_v49, %v3420_v48  ;;  %v3425_v55 = vor.u32 %v4551_v50, %v3422_v51  ;;  %v3428_v56 = vld [vmem:[%s7081_s0 + $0x40] sm:$0xf]  ;;  %v4556_v57 = vld [vmem:[%s7081_s0 + $0x4c] sm:$0xf0]  ;;  %v4554_v58 = vld [vmem:[%s7081_s0 + $0x44] sm:$0xf] }
  0x12   :  { %1813 = vmatpush.bf16.msra.mxu0 %v4805_v16  ;;  %v3430_v59 = vld [vmem:[%s7081_s0 + $0x50] sm:$0xf0]  ;;  %v3436_v60 = vld [vmem:[%s7081_s0 + $0x48] sm:$0xf]  ;;  %v4557_v61 = vld [vmem:[%s7081_s0 + $0x54] sm:$0xf0]  ;;  %v3429_v0 = vor.u32 %v4556_v57, %v3428_v56 }
  0x13   :  { %2142 = vmatpush.bf16.msra.mxu1 %v4813_v17  ;;  %v4555_v62 = vld [vmem:[%s7081_s0 + $0x4c] sm:$0xf]  ;;  %v3438_v63 = vld [vmem:[%s7081_s0 + $0x58] sm:$0xf0]  ;;  %v3433_v1 = vor.u32 %v4554_v58, %v3430_v59  ;;  %v3437_v2 = vor.u32 %v4557_v61, %v3436_v60  ;;  %v3444_v4 = vld [vmem:[%s7081_s0 + $0x60] sm:$0xf] }
  0x14   :  { %2471 = vmatpush.bf16.msra.mxu2 %v4821_v18  ;;  %v3441_v3 = vor.u32 %v4555_v62, %v3438_v63  ;;  %v4560_v5 = vld [vmem:[%s7081_s0 + $0x6c] sm:$0xf0]  ;;  %v4558_v6 = vld [vmem:[%s7081_s0 + $0x64] sm:$0xf]  ;;  %v3446_v7 = vld [vmem:[%s7081_s0 + $0x70] sm:$0xf0] }
  0x15   :  { %2800 = vmatpush.bf16.msra.mxu3 %v4829_v19  ;;  %v3452_v8 = vld [vmem:[%s7081_s0 + $0x68] sm:$0xf]  ;;  %v4561_v9 = vld [vmem:[%s7081_s0 + $0x74] sm:$0xf0]  ;;  %v4559_v10 = vld [vmem:[%s7081_s0 + $0x6c] sm:$0xf]  ;;  %v3445_v12 = vor.u32 %v4560_v5, %v3444_v4  ;;  %v3449_v13 = vor.u32 %v4558_v6, %v3446_v7 }
  0x16   :  { %1814 = vmatpush.bf16.msra.mxu0 %v4804_v20  ;;  %v3454_v11 = vld [vmem:[%s7081_s0 + $0x78] sm:$0xf0]  ;;  %v3453_v14 = vor.u32 %v4561_v9, %v3452_v8  ;;  %v3460_v16 = vld [vmem:[%s7081_s0 + $0x80] sm:$0xf]  ;;  %v4564_v17 = vld [vmem:[%s7081_s0 + $0x8c] sm:$0xf0] }
  0x17   :  { %2143 = vmatpush.bf16.msra.mxu1 %v4812_v21  ;;  %v3457_v15 = vor.u32 %v4559_v10, %v3454_v11  ;;  %v4562_v18 = vld [vmem:[%s7081_s0 + $0x84] sm:$0xf]  ;;  %v3462_v19 = vld [vmem:[%s7081_s0 + $0x90] sm:$0xf0]  ;;  %v3468_v20 = vld [vmem:[%s7081_s0 + $0x88] sm:$0xf] }
  0x18   :  { %2472 = vmatpush.bf16.msra.mxu2 %v4820_v22  ;;  %v4565_v21 = vld [vmem:[%s7081_s0 + $0x94] sm:$0xf0]  ;;  %v4563_v22 = vld [vmem:[%s7081_s0 + $0x8c] sm:$0xf]  ;;  %v3484_v32 = vld [vmem:[%s7081_s0 + $0xa8] sm:$0xf] }
  0x19   :  { %2801 = vmatpush.bf16.msra.mxu3 %v4828_v23  ;;  %v3470_v23 = vld [vmem:[%s7081_s0 + $0x98] sm:$0xf0]  ;;  %v4569_v33 = vld [vmem:[%s7081_s0 + $0xb4] sm:$0xf0]  ;;  %v4567_v34 = vld [vmem:[%s7081_s0 + $0xac] sm:$0xf] }
  0x1a   :  { %1815 = vmatpush.bf16.msra.mxu0 %v4803_v24  ;;  %v3461_v24 = vor.u32 %v4564_v17, %v3460_v16  ;;  %v3486_v35 = vld [vmem:[%s7081_s0 + $0xb8] sm:$0xf0]  ;;  %v3485_v38 = vor.u32 %v4569_v33, %v3484_v32  ;;  %v3500_v44 = vld [vmem:[%s7081_s0 + $0xc8] sm:$0xf]  ;;  %v4573_v45 = vld [vmem:[%s7081_s0 + $0xd4] sm:$0xf0] }
  0x1b   :  { %2144 = vmatpush.bf16.msra.mxu1 %v4811_v25  ;;  %v3465_v25 = vor.u32 %v4562_v18, %v3462_v19  ;;  %v3489_v39 = vor.u32 %v4567_v34, %v3486_v35  ;;  %v4571_v46 = vld [vmem:[%s7081_s0 + $0xcc] sm:$0xf]  ;;  %v3502_v47 = vld [vmem:[%s7081_s0 + $0xd8] sm:$0xf0]  ;;  %v3501_v50 = vor.u32 %v4573_v45, %v3500_v44  ;;  %v3516_v56 = vld [vmem:[%s7081_s0 + $0xe8] sm:$0xf] }
  0x1c   :  { %2473 = vmatpush.bf16.msra.mxu2 %v4819_v26  ;;  %v3469_v26 = vor.u32 %v4565_v21, %v3468_v20  ;;  %v3505_v51 = vor.u32 %v4571_v46, %v3502_v47  ;;  %v4577_v57 = vld [vmem:[%s7081_s0 + $0xf4] sm:$0xf0]  ;;  %v4575_v58 = vld [vmem:[%s7081_s0 + $0xec] sm:$0xf]  ;;  %v3518_v59 = vld [vmem:[%s7081_s0 + $0xf8] sm:$0xf0] }
  0x1d   :  { %2802 = vmatpush.bf16.msra.mxu3 %v4827_v27  ;;  %v3473_v27 = vor.u32 %v4563_v22, %v3470_v23  ;;  %v3517_v62 = vor.u32 %v4577_v57, %v3516_v56  ;;  %v3521_v63 = vor.u32 %v4575_v58, %v3518_v59  ;;  %v3532_v4 = vld [vmem:[%s7081_s0 + $0x108] sm:$0xf]  ;;  %v4581_v5 = vld [vmem:[%s7081_s0 + $0x114] sm:$0xf0]  ;;  %v4579_v6 = vld [vmem:[%s7081_s0 + $0x10c] sm:$0xf] }
  0x1e   :  { %1816 = vmatpush.bf16.msra.mxu0 %v4802_v28  ;;  %v3476_v28 = vld [vmem:[%s7081_s0 + $0xa0] sm:$0xf]  ;;  %v3534_v7 = vld [vmem:[%s7081_s0 + $0x118] sm:$0xf0]  ;;  %v4584_v23 = vld [vmem:[%s7081_s0 + $0x12c] sm:$0xf0] }
  0x1f   :  { %2145 = vmatpush.bf16.msra.mxu1 %v4810_v29  ;;  %v4568_v29 = vld [vmem:[%s7081_s0 + $0xac] sm:$0xf0]  ;;  %v3540_v22 = vld [vmem:[%s7081_s0 + $0x120] sm:$0xf] }
  0x20   :  { %2474 = vmatpush.bf16.msra.mxu2 %v4818_v30  ;;  %v4566_v30 = vld [vmem:[%s7081_s0 + $0xa4] sm:$0xf]  ;;  %v3477_v36 = vor.u32 %v4568_v29, %v3476_v28  ;;  %v4583_v28 = vld [vmem:[%s7081_s0 + $0x12c] sm:$0xf]  ;;  %v3550_v29 = vld [vmem:[%s7081_s0 + $0x138] sm:$0xf0]  ;;  %v3541_v32 = vor.u32 %v4584_v23, %v3540_v22 }
  0x21   :  { %2803 = vmatpush.bf16.msra.mxu3 %v4826_v31  ;;  %1817 = vmatmul.bf16.vlgmr.msra.gmra.mxu0 %v3397_v40  ;;  %v3478_v31 = vld [vmem:[%s7081_s0 + $0xb0] sm:$0xf0]  ;;  %v3492_v40 = vld [vmem:[%s7081_s0 + $0xc0] sm:$0xf] }
  0x22   :  { %2146 = vmatmul.bf16.vlgmr.msra.gmra.mxu1 %v3401_v41  ;;  %v3481_v37 = vor.u32 %v4566_v30, %v3478_v31  ;;  %v4572_v41 = vld [vmem:[%s7081_s0 + $0xcc] sm:$0xf0] }
  0x23   :  { %2475 = vmatmul.bf16.vlgmr.msra.gmra.mxu2 %v3405_v42  ;;  %v4570_v42 = vld [vmem:[%s7081_s0 + $0xc4] sm:$0xf]  ;;  %v3493_v48 = vor.u32 %v4572_v41, %v3492_v40 }
  0x24   :  { %2804 = vmatmul.bf16.vlgmr.msra.gmra.mxu3 %v3409_v43  ;;  %v3494_v43 = vld [vmem:[%s7081_s0 + $0xd0] sm:$0xf0] }
  0x25   :  { %v3497_v49 = vor.u32 %v4570_v42, %v3494_v43 }
  0x31   :  { %1822 = vmatmul.bf16.gmra.mxu0 %v3413_v52  ;;  %v3508_v52 = vld [vmem:[%s7081_s0 + $0xe0] sm:$0xf] }
  0x32   :  { %2151 = vmatmul.bf16.gmra.mxu1 %v3417_v53  ;;  %v4576_v53 = vld [vmem:[%s7081_s0 + $0xec] sm:$0xf0] }
  0x33   :  { %2480 = vmatmul.bf16.gmra.mxu2 %v3421_v54  ;;  %v4574_v54 = vld [vmem:[%s7081_s0 + $0xe4] sm:$0xf]  ;;  %v3509_v60 = vor.u32 %v4576_v53, %v3508_v52  ;;  %v3564_v52 = vld [vmem:[%s7081_s0 + $0x148] sm:$0xf]  ;;  %v4589_v53 = vld [vmem:[%s7081_s0 + $0x154] sm:$0xf0] }
  0x34   :  { %2809 = vmatmul.bf16.gmra.mxu3 %v3425_v55  ;;  %v3510_v55 = vld [vmem:[%s7081_s0 + $0xf0] sm:$0xf0] }
  0x35   :  { %v3513_v61 = vor.u32 %v4574_v54, %v3510_v55  ;;  %v4587_v54 = vld [vmem:[%s7081_s0 + $0x14c] sm:$0xf]  ;;  %v3566_v55 = vld [vmem:[%s7081_s0 + $0x158] sm:$0xf0] }
  0x41   :  { %1827 = vmatmul.bf16.gmra.mxu0 %v3429_v0  ;;  %v3524_v0 = vld [vmem:[%s7081_s0 + $0x100] sm:$0xf] }
  0x42   :  { %2156 = vmatmul.bf16.gmra.mxu1 %v3433_v1  ;;  %v4580_v1 = vld [vmem:[%s7081_s0 + $0x10c] sm:$0xf0] }
  0x43   :  { %2485 = vmatmul.bf16.gmra.mxu2 %v3437_v2  ;;  %v4578_v2 = vld [vmem:[%s7081_s0 + $0x104] sm:$0xf]  ;;  %v3525_v8 = vor.u32 %v4580_v1, %v3524_v0  ;;  %v3569_v0 = vor.u32 %v4587_v54, %v3566_v55 }
  0x44   :  { %2814 = vmatmul.bf16.gmra.mxu3 %v3441_v3  ;;  %v3526_v3 = vld [vmem:[%s7081_s0 + $0x110] sm:$0xf0] }
  0x45   :  { %v3529_v9 = vor.u32 %v4578_v2, %v3526_v3 }
  0x51   :  { %1832 = vmatmul.bf16.gmra.mxu0 %v3445_v12  ;;  %v3533_v12 = vor.u32 %v4581_v5, %v3532_v4 }
  0x52   :  { %2161 = vmatmul.bf16.gmra.mxu1 %v3449_v13  ;;  %v3537_v13 = vor.u32 %v4579_v6, %v3534_v7 }
  0x53   :  { %2490 = vmatmul.bf16.gmra.mxu2 %v3453_v14 }
  0x54   :  { %2819 = vmatmul.bf16.gmra.mxu3 %v3457_v15 }
  0x61   :  { %1837 = vmatmul.bf16.gmra.mxu0 %v3461_v24  ;;  %v4582_v24 = vld [vmem:[%s7081_s0 + $0x124] sm:$0xf] }
  0x62   :  { %2166 = vmatmul.bf16.gmra.mxu1 %v3465_v25  ;;  %v3542_v25 = vld [vmem:[%s7081_s0 + $0x130] sm:$0xf0] }
  0x63   :  { %2495 = vmatmul.bf16.gmra.mxu2 %v3469_v26  ;;  %v3548_v26 = vld [vmem:[%s7081_s0 + $0x128] sm:$0xf]  ;;  %v3545_v33 = vor.u32 %v4582_v24, %v3542_v25 }
  0x64   :  { %2824 = vmatmul.bf16.gmra.mxu3 %v3473_v27  ;;  %v4585_v27 = vld [vmem:[%s7081_s0 + $0x134] sm:$0xf0] }
  0x71   :  { %1842 = vmatmul.bf16.gmra.mxu0 %v3477_v36 }
  0x72   :  { %2171 = vmatmul.bf16.gmra.mxu1 %v3481_v37  ;;  %v3549_v37 = vor.u32 %v4585_v27, %v3548_v26 }
  0x73   :  { %2500 = vmatmul.bf16.gmra.mxu2 %v3485_v38  ;;  %v3553_v38 = vor.u32 %v4583_v28, %v3550_v29 }
  0x74   :  { %2829 = vmatmul.bf16.gmra.mxu3 %v3489_v39 }
  0x81   :  { %1847 = vmatmul.bf16.gmra.mxu0 %v3493_v48  ;;  %v3556_v48 = vld [vmem:[%s7081_s0 + $0x140] sm:$0xf] }
  0x82   :  { %2176 = vmatmul.bf16.gmra.mxu1 %v3497_v49  ;;  %v4588_v49 = vld [vmem:[%s7081_s0 + $0x14c] sm:$0xf0] }
  0x83   :  { %2505 = vmatmul.bf16.gmra.mxu2 %v3501_v50  ;;  %v4586_v50 = vld [vmem:[%s7081_s0 + $0x144] sm:$0xf]  ;;  %v3557_v58 = vor.u32 %v4588_v49, %v3556_v48 }
  0x84   :  { %2834 = vmatmul.bf16.gmra.mxu3 %v3505_v51  ;;  %v3558_v51 = vld [vmem:[%s7081_s0 + $0x150] sm:$0xf0] }
  0x85   :  { %v3561_v59 = vor.u32 %v4586_v50, %v3558_v51 }
  0x91   :  { %1852 = vmatmul.bf16.gmra.mxu0 %v3509_v60 }
  0x92   :  { %2181 = vmatmul.bf16.gmra.mxu1 %v3513_v61 }
  0x93   :  { %2510 = vmatmul.bf16.gmra.mxu2 %v3517_v62 }
  0x94   :  { %2839 = vmatmul.bf16.gmra.mxu3 %v3521_v63  ;;  %v3565_v63 = vor.u32 %v4589_v53, %v3564_v52 }
  0x9e   :  { %v1818_v10 = vpop.f32.mrf.mxu0 }
  0x9f   :  { %v2147_v11 = vpop.f32.mrf.mxu1 }
  0xa0   :  { %v2148_v14 = vadd.f32 %v2147_v11, %v1818_v10  ;;  %v3572_v10 = vld [vmem:[%s7081_s0 + $0x160] sm:$0xf]  ;;  %v4592_v11 = vld [vmem:[%s7081_s0 + $0x16c] sm:$0xf0] }
  0xa1   :  { %1857 = vmatmul.bf16.gmra.mxu0 %v3525_v8 }
  0xa2   :  { %2186 = vmatmul.bf16.gmra.mxu1 %v3529_v9 }
  0xa3   :  { %2515 = vmatmul.bf16.gmra.mxu2 %v3533_v12  ;;  %v4590_v12 = vld [vmem:[%s7081_s0 + $0x164] sm:$0xf] }
  0xa4   :  { %2844 = vmatmul.bf16.gmra.mxu3 %v3537_v13  ;;  %v3574_v13 = vld [vmem:[%s7081_s0 + $0x170] sm:$0xf0] }
  0xa5   :  { %v3577_v22 = vor.u32 %v4590_v12, %v3574_v13 }
  0xa6   :  { %v2476_v15 = vpop.f32.mrf.mxu2  ;;  %v1820_v18 = vpop.f32.mrf.mxu0 }
  0xa7   :  { %v2805_v16 = vpop.f32.mrf.mxu3  ;;  %v2477_v17 = vadd.f32 %v2476_v15, %v2148_v14  ;;  %v2149_v19 = vpop.f32.mrf.mxu1  ;;  %v3580_v14 = vld [vmem:[%s7081_s0 + $0x168] sm:$0xf]  ;;  %v4593_v15 = vld [vmem:[%s7081_s0 + $0x174] sm:$0xf0] }
  0xa8   :  { %v2150_v20 = vadd.f32 %v2149_v19, %v1820_v18  ;;  %v3581_v26 = vor.u32 %v4593_v15, %v3580_v14 }
  0xa9   :  { %v5175_v21 = vadd.f32 %v2805_v16, %v2477_v17  ;;  %v4591_v16 = vld [vmem:[%s7081_s0 + $0x16c] sm:$0xf]  ;;  %v3582_v17 = vld [vmem:[%s7081_s0 + $0x178] sm:$0xf0] }
  0xaa   :  { %v3585_v27 = vor.u32 %v4591_v16, %v3582_v17 }
  0xae   :  { %v2478_v30 = vpop.f32.mrf.mxu2  ;;  %v1823_v35 = vpop.f32.mrf.mxu0 }
  0xaf   :  { %v2807_v31 = vpop.f32.mrf.mxu3  ;;  %v2479_v34 = vadd.f32 %v2478_v30, %v2150_v20  ;;  %v2152_v36 = vpop.f32.mrf.mxu1  ;;  %v3573_v20 = vor.u32 %v4592_v11, %v3572_v10  ;;  %v3614_v10 = vld [vmem:[%s7081_s0 + $0x1b8] sm:$0xf0] }
  0xb0   :  { %v2153_v39 = vadd.f32 %v2152_v36, %v1823_v35 }
  0xb1   :  { %v5201_v40 = vadd.f32 %v2807_v31, %v2479_v34  ;;  %1862 = vmatmul.bf16.gmra.mxu0 %v3541_v32 }
  0xb2   :  { %2191 = vmatmul.bf16.gmra.mxu1 %v3545_v33 }
  0xb3   :  { %2520 = vmatmul.bf16.gmra.mxu2 %v3549_v37  ;;  %v3588_v37 = vld [vmem:[%s7081_s0 + $0x180] sm:$0xf] }
  0xb4   :  { %2849 = vmatmul.bf16.gmra.mxu3 %v3553_v38  ;;  %v4596_v38 = vld [vmem:[%s7081_s0 + $0x18c] sm:$0xf0] }
  0xb5   :  { %v3589_v49 = vor.u32 %v4596_v38, %v3588_v37  ;;  %v4605_v37 = vld [vmem:[%s7081_s0 + $0x1d4] sm:$0xf0]  ;;  %v4603_v38 = vld [vmem:[%s7081_s0 + $0x1cc] sm:$0xf] }
  0xb6   :  { %v2481_v41 = vpop.f32.mrf.mxu2  ;;  %v1825_v44 = vpop.f32.mrf.mxu0 }
  0xb7   :  { %v2810_v42 = vpop.f32.mrf.mxu3  ;;  %v2482_v43 = vadd.f32 %v2481_v41, %v2153_v39  ;;  %v2154_v45 = vpop.f32.mrf.mxu1  ;;  %v4594_v39 = vld [vmem:[%s7081_s0 + $0x184] sm:$0xf]  ;;  %v3590_v41 = vld [vmem:[%s7081_s0 + $0x190] sm:$0xf0] }
  0xb8   :  { %v2155_v46 = vadd.f32 %v2154_v45, %v1825_v44  ;;  %v4595_v44 = vld [vmem:[%s7081_s0 + $0x18c] sm:$0xf]  ;;  %v3598_v45 = vld [vmem:[%s7081_s0 + $0x198] sm:$0xf0]  ;;  %v3593_v50 = vor.u32 %v4594_v39, %v3590_v41 }
  0xb9   :  { %v5203_v47 = vadd.f32 %v2810_v42, %v2482_v43  ;;  %v3596_v42 = vld [vmem:[%s7081_s0 + $0x188] sm:$0xf]  ;;  %v4597_v43 = vld [vmem:[%s7081_s0 + $0x194] sm:$0xf0]  ;;  %v3601_v55 = vor.u32 %v4595_v44, %v3598_v45  ;;  %v3630_v39 = vld [vmem:[%s7081_s0 + $0x1d8] sm:$0xf0] }
  0xba   :  { %v3597_v54 = vor.u32 %v4597_v43, %v3596_v42 }
  0xbe   :  { %v2483_v56 = vpop.f32.mrf.mxu2  ;;  %v1828_v61 = vpop.f32.mrf.mxu0 }
  0xbf   :  { %v2812_v57 = vpop.f32.mrf.mxu3  ;;  %v2484_v60 = vadd.f32 %v2483_v56, %v2155_v46  ;;  %v2157_v62 = vpop.f32.mrf.mxu1 }
  0xc0   :  { %v2158_v1 = vadd.f32 %v2157_v62, %v1828_v61 }
  0xc1   :  { %v5229_v2 = vadd.f32 %v2812_v57, %v2484_v60  ;;  %1867 = vmatmul.bf16.gmra.mxu0 %v3557_v58 }
  0xc2   :  { %2196 = vmatmul.bf16.gmra.mxu1 %v3561_v59 }
  0xc3   :  { %2525 = vmatmul.bf16.gmra.mxu2 %v3565_v63 }
  0xc4   :  { %2854 = vmatmul.bf16.gmra.mxu3 %v3569_v0 }
  0xc6   :  { %v2486_v3 = vpop.f32.mrf.mxu2  ;;  %v1830_v6 = vpop.f32.mrf.mxu0 }
  0xc7   :  { %v2815_v4 = vpop.f32.mrf.mxu3  ;;  %v2487_v5 = vadd.f32 %v2486_v3, %v2158_v1  ;;  %v2159_v7 = vpop.f32.mrf.mxu1  ;;  %v3604_v1 = vld [vmem:[%s7081_s0 + $0x1a0] sm:$0xf]  ;;  %v4600_v3 = vld [vmem:[%s7081_s0 + $0x1ac] sm:$0xf0] }
  0xc8   :  { %v2160_v8 = vadd.f32 %v2159_v7, %v1830_v6  ;;  %v3612_v6 = vld [vmem:[%s7081_s0 + $0x1a8] sm:$0xf]  ;;  %v4601_v7 = vld [vmem:[%s7081_s0 + $0x1b4] sm:$0xf0]  ;;  %v3605_v13 = vor.u32 %v4600_v3, %v3604_v1  ;;  %v3638_v1 = vld [vmem:[%s7081_s0 + $0x1f0] sm:$0xf0] }
  0xc9   :  { %v5231_v9 = vadd.f32 %v2815_v4, %v2487_v5  ;;  %v4598_v4 = vld [vmem:[%s7081_s0 + $0x1a4] sm:$0xf]  ;;  %v3606_v5 = vld [vmem:[%s7081_s0 + $0x1b0] sm:$0xf0]  ;;  %v3644_v3 = vld [vmem:[%s7081_s0 + $0x1e8] sm:$0xf] }
  0xca   :  { %v3609_v14 = vor.u32 %v4598_v4, %v3606_v5  ;;  %v4609_v4 = vld [vmem:[%s7081_s0 + $0x1f4] sm:$0xf0]  ;;  %v4607_v5 = vld [vmem:[%s7081_s0 + $0x1ec] sm:$0xf] }
  0xce   :  { %v2488_v18 = vpop.f32.mrf.mxu2  ;;  %v1833_v24 = vpop.f32.mrf.mxu0 }
  0xcf   :  { %v2817_v19 = vpop.f32.mrf.mxu3  ;;  %v2489_v23 = vadd.f32 %v2488_v18, %v2160_v8  ;;  %v2162_v25 = vpop.f32.mrf.mxu1  ;;  %v4599_v8 = vld [vmem:[%s7081_s0 + $0x1ac] sm:$0xf]  ;;  %v3613_v18 = vor.u32 %v4601_v7, %v3612_v6  ;;  %v3646_v6 = vld [vmem:[%s7081_s0 + $0x1f8] sm:$0xf0] }
  0xd0   :  { %v2163_v28 = vadd.f32 %v2162_v25, %v1833_v24 }
  0xd1   :  { %v5257_v29 = vadd.f32 %v2817_v19, %v2489_v23  ;;  %1872 = vmatmul.bf16.gmra.mxu0 %v3573_v20  ;;  %v3617_v19 = vor.u32 %v4599_v8, %v3614_v10 }
  0xd2   :  { %2201 = vmatmul.bf16.gmra.mxu1 %v3577_v22 }
  0xd3   :  { %2530 = vmatmul.bf16.gmra.mxu2 %v3581_v26 }
  0xd4   :  { %2859 = vmatmul.bf16.gmra.mxu3 %v3585_v27 }
  0xd6   :  { %v2491_v30 = vpop.f32.mrf.mxu2  ;;  %v1835_v33 = vpop.f32.mrf.mxu0 }
  0xd7   :  { %v2820_v31 = vpop.f32.mrf.mxu3  ;;  %v2492_v32 = vadd.f32 %v2491_v30, %v2163_v28  ;;  %v2164_v34 = vpop.f32.mrf.mxu1 }
  0xd8   :  { %v2165_v35 = vadd.f32 %v2164_v34, %v1835_v33  ;;  %v4602_v33 = vld [vmem:[%s7081_s0 + $0x1c4] sm:$0xf]  ;;  %v3622_v34 = vld [vmem:[%s7081_s0 + $0x1d0] sm:$0xf0] }
  0xd9   :  { %v5259_v36 = vadd.f32 %v2820_v31, %v2492_v32  ;;  %v3620_v31 = vld [vmem:[%s7081_s0 + $0x1c0] sm:$0xf]  ;;  %v4604_v32 = vld [vmem:[%s7081_s0 + $0x1cc] sm:$0xf0]  ;;  %v3625_v44 = vor.u32 %v4602_v33, %v3622_v34  ;;  %v3654_v33 = vld [vmem:[%s7081_s0 + $0x210] sm:$0xf0] }
  0xda   :  { %v3621_v43 = vor.u32 %v4604_v32, %v3620_v31  ;;  %v4612_v31 = vld [vmem:[%s7081_s0 + $0x20c] sm:$0xf0]  ;;  %v4610_v32 = vld [vmem:[%s7081_s0 + $0x204] sm:$0xf]  ;;  %v3660_v34 = vld [vmem:[%s7081_s0 + $0x208] sm:$0xf] }
  0xde   :  { %v2493_v46 = vpop.f32.mrf.mxu2  ;;  %v1838_v52 = vpop.f32.mrf.mxu0 }
  0xdf   :  { %v2822_v48 = vpop.f32.mrf.mxu3  ;;  %v2494_v51 = vadd.f32 %v2493_v46, %v2165_v35  ;;  %v2167_v53 = vpop.f32.mrf.mxu1  ;;  %v3628_v35 = vld [vmem:[%s7081_s0 + $0x1c8] sm:$0xf] }
  0xe0   :  { %v2168_v56 = vadd.f32 %v2167_v53, %v1838_v52 }
  0xe1   :  { %v5285_v57 = vadd.f32 %v2822_v48, %v2494_v51  ;;  %1877 = vmatmul.bf16.gmra.mxu0 %v3589_v49  ;;  %v3629_v49 = vor.u32 %v4605_v37, %v3628_v35  ;;  %v4613_v35 = vld [vmem:[%s7081_s0 + $0x214] sm:$0xf0]  ;;  %v4611_v37 = vld [vmem:[%s7081_s0 + $0x20c] sm:$0xf] }
  0xe2   :  { %2206 = vmatmul.bf16.gmra.mxu1 %v3593_v50  ;;  %v3633_v50 = vor.u32 %v4603_v38, %v3630_v39  ;;  %v3662_v38 = vld [vmem:[%s7081_s0 + $0x218] sm:$0xf0] }
  0xe3   :  { %2535 = vmatmul.bf16.gmra.mxu2 %v3597_v54 }
  0xe4   :  { %2864 = vmatmul.bf16.gmra.mxu3 %v3601_v55 }
  0xe6   :  { %v2496_v58 = vpop.f32.mrf.mxu2  ;;  %v1840_v61 = vpop.f32.mrf.mxu0 }
  0xe7   :  { %v2825_v59 = vpop.f32.mrf.mxu3  ;;  %v2497_v60 = vadd.f32 %v2496_v58, %v2168_v56  ;;  %v2169_v62 = vpop.f32.mrf.mxu1 }
  0xe8   :  { %v2170_v63 = vadd.f32 %v2169_v62, %v1840_v61  ;;  %v3636_v61 = vld [vmem:[%s7081_s0 + $0x1e0] sm:$0xf]  ;;  %v4608_v62 = vld [vmem:[%s7081_s0 + $0x1ec] sm:$0xf0] }
  0xe9   :  { %v5287_v0 = vadd.f32 %v2825_v59, %v2497_v60  ;;  %v3637_v10 = vor.u32 %v4608_v62, %v3636_v61  ;;  %v3668_v62 = vld [vmem:[%s7081_s0 + $0x220] sm:$0xf] }
  0xee   :  { %v2498_v11 = vpop.f32.mrf.mxu2  ;;  %v1843_v16 = vpop.f32.mrf.mxu0 }
  0xef   :  { %v2827_v12 = vpop.f32.mrf.mxu3  ;;  %v2499_v15 = vadd.f32 %v2498_v11, %v2170_v63  ;;  %v2172_v17 = vpop.f32.mrf.mxu1  ;;  %v4606_v63 = vld [vmem:[%s7081_s0 + $0x1e4] sm:$0xf] }
  0xf0   :  { %v2173_v20 = vadd.f32 %v2172_v17, %v1843_v16  ;;  %v3641_v11 = vor.u32 %v4606_v63, %v3638_v1  ;;  %v3649_v16 = vor.u32 %v4607_v5, %v3646_v6  ;;  %v4616_v63 = vld [vmem:[%s7081_s0 + $0x22c] sm:$0xf0]  ;;  %v4614_v1 = vld [vmem:[%s7081_s0 + $0x224] sm:$0xf]  ;;  %v4617_v5 = vld [vmem:[%s7081_s0 + $0x234] sm:$0xf0] }
  0xf1   :  { %v5313_v22 = vadd.f32 %v2827_v12, %v2499_v15  ;;  %1882 = vmatmul.bf16.gmra.mxu0 %v3605_v13  ;;  %v3645_v15 = vor.u32 %v4609_v4, %v3644_v3  ;;  %v3670_v3 = vld [vmem:[%s7081_s0 + $0x230] sm:$0xf0]  ;;  %v3676_v4 = vld [vmem:[%s7081_s0 + $0x228] sm:$0xf]  ;;  %v4615_v6 = vld [vmem:[%s7081_s0 + $0x22c] sm:$0xf] }
  0xf2   :  { %2211 = vmatmul.bf16.gmra.mxu1 %v3609_v14 }
  0xf3   :  { %2540 = vmatmul.bf16.gmra.mxu2 %v3613_v18 }
  0xf4   :  { %2869 = vmatmul.bf16.gmra.mxu3 %v3617_v19 }
  0xf6   :  { %v2501_v23 = vpop.f32.mrf.mxu2  ;;  %v1845_v26 = vpop.f32.mrf.mxu0 }
  0xf7   :  { %v2830_v24 = vpop.f32.mrf.mxu3  ;;  %v2502_v25 = vadd.f32 %v2501_v23, %v2173_v20  ;;  %v2174_v27 = vpop.f32.mrf.mxu1 }
  0xf8   :  { %v2175_v28 = vadd.f32 %v2174_v27, %v1845_v26 }
  0xf9   :  { %v5315_v30 = vadd.f32 %v2830_v24, %v2502_v25 }
  0xfb   :  { %7126 = vst [vmem:[#allocation2_spill] sm:$0xff] %v5315_v30 }
  0xfe   :  { %v2503_v41 = vpop.f32.mrf.mxu2  ;;  %v1848_v46 = vpop.f32.mrf.mxu0 }
  0xff   :  { %v2832_v42 = vpop.f32.mrf.mxu3  ;;  %v2504_v45 = vadd.f32 %v2503_v41, %v2175_v28  ;;  %v2177_v48 = vpop.f32.mrf.mxu1  ;;  %v3652_v28 = vld [vmem:[%s7081_s0 + $0x200] sm:$0xf] }
 0x100   :  { %v2178_v51 = vadd.f32 %v2177_v48, %v1848_v46  ;;  %v3661_v48 = vor.u32 %v4613_v35, %v3660_v34  ;;  %v4620_v34 = vld [vmem:[%s7081_s0 + $0x24c] sm:$0xf0]  ;;  %v4618_v35 = vld [vmem:[%s7081_s0 + $0x244] sm:$0xf] }
 0x101   :  { %v5341_v52 = vadd.f32 %v2832_v42, %v2504_v45  ;;  %1887 = vmatmul.bf16.gmra.mxu0 %v3621_v43  ;;  %v3653_v42 = vor.u32 %v4612_v31, %v3652_v28  ;;  %v3657_v43 = vor.u32 %v4610_v32, %v3654_v33  ;;  %v3684_v33 = vld [vmem:[%s7081_s0 + $0x240] sm:$0xf] }
 0x102   :  { %2216 = vmatmul.bf16.gmra.mxu1 %v3625_v44 }
 0x103   :  { %2545 = vmatmul.bf16.gmra.mxu2 %v3629_v49  ;;  %v3665_v49 = vor.u32 %v4611_v37, %v3662_v38  ;;  %v3686_v37 = vld [vmem:[%s7081_s0 + $0x250] sm:$0xf0]  ;;  %v3692_v38 = vld [vmem:[%s7081_s0 + $0x248] sm:$0xf] }
 0x104   :  { %2874 = vmatmul.bf16.gmra.mxu3 %v3633_v50 }
 0x106   :  { %v2506_v53 = vpop.f32.mrf.mxu2  ;;  %v1850_v56 = vpop.f32.mrf.mxu0 }
 0x107   :  { %v2835_v54 = vpop.f32.mrf.mxu3  ;;  %v2507_v55 = vadd.f32 %v2506_v53, %v2178_v51  ;;  %v2179_v58 = vpop.f32.mrf.mxu1 }
 0x108   :  { %v2180_v59 = vadd.f32 %v2179_v58, %v1850_v56 }
 0x109   :  { %v5343_v60 = vadd.f32 %v2835_v54, %v2507_v55 }
 0x10b   :  { %7127 = vst [vmem:[#allocation3_spill] sm:$0xff] %v5343_v60 }
 0x10e   :  { %v2508_v7 = vpop.f32.mrf.mxu2  ;;  %v1853_v13 = vpop.f32.mrf.mxu0 }
 0x10f   :  { %v2837_v8 = vpop.f32.mrf.mxu3  ;;  %v2509_v12 = vadd.f32 %v2508_v7, %v2180_v59  ;;  %v2182_v14 = vpop.f32.mrf.mxu1  ;;  %v3678_v7 = vld [vmem:[%s7081_s0 + $0x238] sm:$0xf0] }
 0x110   :  { %v2183_v17 = vadd.f32 %v2182_v14, %v1853_v13 }
 0x111   :  { %v5369_v18 = vadd.f32 %v2837_v8, %v2509_v12  ;;  %1892 = vmatmul.bf16.gmra.mxu0 %v3637_v10  ;;  %v3673_v12 = vor.u32 %v4614_v1, %v3670_v3 }
 0x112   :  { %2221 = vmatmul.bf16.gmra.mxu1 %v3641_v11  ;;  %v3669_v11 = vor.u32 %v4616_v63, %v3668_v62 }
 0x113   :  { %2550 = vmatmul.bf16.gmra.mxu2 %v3645_v15 }
 0x114   :  { %2879 = vmatmul.bf16.gmra.mxu3 %v3649_v16  ;;  %v3677_v16 = vor.u32 %v4617_v5, %v3676_v4  ;;  %v3700_v5 = vld [vmem:[%s7081_s0 + $0x260] sm:$0xf] }
 0x116   :  { %v2511_v19 = vpop.f32.mrf.mxu2  ;;  %v1855_v24 = vpop.f32.mrf.mxu0 }
 0x117   :  { %v2840_v20 = vpop.f32.mrf.mxu3  ;;  %v2512_v23 = vadd.f32 %v2511_v19, %v2183_v17  ;;  %v2184_v25 = vpop.f32.mrf.mxu1  ;;  %v3681_v17 = vor.u32 %v4615_v6, %v3678_v7  ;;  %v4624_v6 = vld [vmem:[%s7081_s0 + $0x26c] sm:$0xf0]  ;;  %v4622_v7 = vld [vmem:[%s7081_s0 + $0x264] sm:$0xf] }
 0x118   :  { %v2185_v26 = vadd.f32 %v2184_v25, %v1855_v24 }
 0x119   :  { %v5371_v27 = vadd.f32 %v2840_v20, %v2512_v23 }
 0x11b   :  { %7128 = vst [vmem:[#allocation4_spill] sm:$0xff] %v5371_v27 }
 0x11e   :  { %v2513_v39 = vpop.f32.mrf.mxu2  ;;  %v1858_v45 = vpop.f32.mrf.mxu0 }
 0x11f   :  { %v2842_v41 = vpop.f32.mrf.mxu3  ;;  %v2514_v44 = vadd.f32 %v2513_v39, %v2185_v26  ;;  %v2187_v46 = vpop.f32.mrf.mxu1  ;;  %v4621_v39 = vld [vmem:[%s7081_s0 + $0x254] sm:$0xf0] }
 0x120   :  { %v2188_v50 = vadd.f32 %v2187_v46, %v1858_v45  ;;  %v3685_v45 = vor.u32 %v4620_v34, %v3684_v33  ;;  %v3689_v46 = vor.u32 %v4618_v35, %v3686_v37 }
 0x121   :  { %v5397_v51 = vadd.f32 %v2842_v41, %v2514_v44  ;;  %1897 = vmatmul.bf16.gmra.mxu0 %v3653_v42  ;;  %v4619_v41 = vld [vmem:[%s7081_s0 + $0x24c] sm:$0xf]  ;;  %v3694_v42 = vld [vmem:[%s7081_s0 + $0x258] sm:$0xf0] }
 0x122   :  { %2226 = vmatmul.bf16.gmra.mxu1 %v3657_v43 }
 0x123   :  { %7129 = vst [vmem:[#allocation5_spill] sm:$0xff] %v5397_v51  ;;  %2555 = vmatmul.bf16.gmra.mxu2 %v3661_v48 }
 0x124   :  { %2884 = vmatmul.bf16.gmra.mxu3 %v3665_v49 }
 0x126   :  { %v2516_v53 = vpop.f32.mrf.mxu2  ;;  %v1860_v56 = vpop.f32.mrf.mxu0 }
 0x127   :  { %v2845_v54 = vpop.f32.mrf.mxu3  ;;  %v2517_v55 = vadd.f32 %v2516_v53, %v2188_v50  ;;  %v2189_v58 = vpop.f32.mrf.mxu1  ;;  %v3693_v53 = vor.u32 %v4621_v39, %v3692_v38 }
 0x128   :  { %v2190_v59 = vadd.f32 %v2189_v58, %v1860_v56 }
 0x129   :  { %v5399_v61 = vadd.f32 %v2845_v54, %v2517_v55  ;;  %v3697_v54 = vor.u32 %v4619_v41, %v3694_v42  ;;  %v3716_v42 = vld [vmem:[%s7081_s0 + $0x280] sm:$0xf] }
 0x12b   :  { %7130 = vst [vmem:[#allocation6_spill] sm:$0xff] %v5399_v61 }
 0x12e   :  { %v2518_v8 = vpop.f32.mrf.mxu2  ;;  %v1863_v14 = vpop.f32.mrf.mxu0 }
 0x12f   :  { %v2847_v10 = vpop.f32.mrf.mxu3  ;;  %v2519_v13 = vadd.f32 %v2518_v8, %v2190_v59  ;;  %v2192_v15 = vpop.f32.mrf.mxu1  ;;  %v3702_v8 = vld [vmem:[%s7081_s0 + $0x270] sm:$0xf0] }
 0x130   :  { %v2193_v19 = vadd.f32 %v2192_v15, %v1863_v14 }
 0x131   :  { %v5425_v20 = vadd.f32 %v2847_v10, %v2519_v13  ;;  %1902 = vmatmul.bf16.gmra.mxu0 %v3669_v11  ;;  %v3708_v10 = vld [vmem:[%s7081_s0 + $0x268] sm:$0xf]  ;;  %v4625_v11 = vld [vmem:[%s7081_s0 + $0x274] sm:$0xf0]  ;;  %v3710_v13 = vld [vmem:[%s7081_s0 + $0x278] sm:$0xf0] }
 0x132   :  { %2231 = vmatmul.bf16.gmra.mxu1 %v3673_v12  ;;  %v4623_v12 = vld [vmem:[%s7081_s0 + $0x26c] sm:$0xf] }
 0x133   :  { %7131 = vst [vmem:[#allocation7_spill] sm:$0xff] %v5425_v20  ;;  %2560 = vmatmul.bf16.gmra.mxu2 %v3677_v16  ;;  %v3701_v16 = vor.u32 %v4624_v6, %v3700_v5 }
 0x134   :  { %2889 = vmatmul.bf16.gmra.mxu3 %v3681_v17  ;;  %v3705_v17 = vor.u32 %v4622_v7, %v3702_v8 }
 0x136   :  { %v2521_v23 = vpop.f32.mrf.mxu2  ;;  %v1865_v26 = vpop.f32.mrf.mxu0 }
 0x137   :  { %v2850_v24 = vpop.f32.mrf.mxu3  ;;  %v2522_v25 = vadd.f32 %v2521_v23, %v2193_v19  ;;  %v2194_v28 = vpop.f32.mrf.mxu1 }
 0x138   :  { %v2195_v31 = vadd.f32 %v2194_v28, %v1865_v26  ;;  %v3713_v26 = vor.u32 %v4623_v12, %v3710_v13 }
 0x139   :  { %v5427_v32 = vadd.f32 %v2850_v24, %v2522_v25  ;;  %v3709_v25 = vor.u32 %v4625_v11, %v3708_v10 }
 0x13b   :  { %7132 = vst [vmem:[#allocation8_spill] sm:$0xff] %v5427_v32 }
 0x13e   :  { %v2523_v43 = vpop.f32.mrf.mxu2  ;;  %v1868_v49 = vpop.f32.mrf.mxu0 }
 0x13f   :  { %v2852_v44 = vpop.f32.mrf.mxu3  ;;  %v2524_v48 = vadd.f32 %v2523_v43, %v2195_v31  ;;  %v2197_v50 = vpop.f32.mrf.mxu1  ;;  %v4628_v43 = vld [vmem:[%s7081_s0 + $0x28c] sm:$0xf0] }
 0x140   :  { %v2198_v55 = vadd.f32 %v2197_v50, %v1868_v49  ;;  %v4627_v49 = vld [vmem:[%s7081_s0 + $0x28c] sm:$0xf]  ;;  %v3726_v50 = vld [vmem:[%s7081_s0 + $0x298] sm:$0xf0] }
 0x141   :  { %v5453_v56 = vadd.f32 %v2852_v44, %v2524_v48  ;;  %1907 = vmatmul.bf16.gmra.mxu0 %v3685_v45  ;;  %v4626_v44 = vld [vmem:[%s7081_s0 + $0x284] sm:$0xf]  ;;  %v3718_v45 = vld [vmem:[%s7081_s0 + $0x290] sm:$0xf0]  ;;  %v4629_v48 = vld [vmem:[%s7081_s0 + $0x294] sm:$0xf0] }
 0x142   :  { %2236 = vmatmul.bf16.gmra.mxu1 %v3689_v46  ;;  %v3724_v46 = vld [vmem:[%s7081_s0 + $0x288] sm:$0xf] }
 0x143   :  { %7133 = vst [vmem:[#allocation9_spill] sm:$0xff] %v5453_v56  ;;  %2565 = vmatmul.bf16.gmra.mxu2 %v3693_v53 }
 0x144   :  { %2894 = vmatmul.bf16.gmra.mxu3 %v3697_v54 }
 0x146   :  { %v2526_v58 = vpop.f32.mrf.mxu2  ;;  %v1870_v63 = vpop.f32.mrf.mxu0 }
 0x147   :  { %v2855_v59 = vpop.f32.mrf.mxu3  ;;  %v2527_v62 = vadd.f32 %v2526_v58, %v2198_v55  ;;  %v2199_v1 = vpop.f32.mrf.mxu1  ;;  %v3717_v55 = vor.u32 %v4628_v43, %v3716_v42  ;;  %v3721_v58 = vor.u32 %v4626_v44, %v3718_v45 }
 0x148   :  { %v2200_v3 = vadd.f32 %v2199_v1, %v1870_v63  ;;  %v3725_v1 = vor.u32 %v4629_v48, %v3724_v46 }
 0x149   :  { %v5455_v4 = vadd.f32 %v2855_v59, %v2527_v62 }
 0x14b   :  { %7134 = vst [vmem:[#allocation10_spill] sm:$0xff] %v5455_v4 }
 0x14e   :  { %v2528_v14 = vpop.f32.mrf.mxu2  ;;  %v1873_v23 = vpop.f32.mrf.mxu0 }
 0x14f   :  { %v2857_v15 = vpop.f32.mrf.mxu3  ;;  %v2529_v19 = vadd.f32 %v2528_v14, %v2200_v3  ;;  %v2202_v24 = vpop.f32.mrf.mxu1  ;;  %v3729_v3 = vor.u32 %v4627_v49, %v3726_v50 }
 0x150   :  { %v2203_v28 = vadd.f32 %v2202_v24, %v1873_v23  ;;  %v3740_v23 = vld [vmem:[%s7081_s0 + $0x2a8] sm:$0xf]  ;;  %v4633_v24 = vld [vmem:[%s7081_s0 + $0x2b4] sm:$0xf0] }
 0x151   :  { %v5481_v31 = vadd.f32 %v2857_v15, %v2529_v19  ;;  %1912 = vmatmul.bf16.gmra.mxu0 %v3701_v16  ;;  %v3732_v15 = vld [vmem:[%s7081_s0 + $0x2a0] sm:$0xf]  ;;  %v4632_v16 = vld [vmem:[%s7081_s0 + $0x2ac] sm:$0xf0]  ;;  %v3734_v19 = vld [vmem:[%s7081_s0 + $0x2b0] sm:$0xf0]  ;;  %v3741_v42 = vor.u32 %v4633_v24, %v3740_v23 }
 0x152   :  { %2241 = vmatmul.bf16.gmra.mxu1 %v3705_v17  ;;  %v4630_v17 = vld [vmem:[%s7081_s0 + $0x2a4] sm:$0xf] }
 0x153   :  { %7135 = vst [vmem:[#allocation11_spill] sm:$0xff] %v5481_v31  ;;  %2570 = vmatmul.bf16.gmra.mxu2 %v3709_v25  ;;  %v4631_v25 = vld [vmem:[%s7081_s0 + $0x2ac] sm:$0xf] }
 0x154   :  { %2899 = vmatmul.bf16.gmra.mxu3 %v3713_v26  ;;  %v3742_v26 = vld [vmem:[%s7081_s0 + $0x2b8] sm:$0xf0] }
 0x155   :  { %v3745_v43 = vor.u32 %v4631_v25, %v3742_v26 }
 0x156   :  { %v2531_v33 = vpop.f32.mrf.mxu2  ;;  %v1875_v37 = vpop.f32.mrf.mxu0 }
 0x157   :  { %v2860_v34 = vpop.f32.mrf.mxu3  ;;  %v2532_v35 = vadd.f32 %v2531_v33, %v2203_v28  ;;  %v2204_v38 = vpop.f32.mrf.mxu1 }
 0x158   :  { %v2205_v39 = vadd.f32 %v2204_v38, %v1875_v37 }
 0x159   :  { %v5483_v41 = vadd.f32 %v2860_v34, %v2532_v35  ;;  %v3733_v34 = vor.u32 %v4632_v16, %v3732_v15  ;;  %v3737_v35 = vor.u32 %v4630_v17, %v3734_v19 }
 0x15b   :  { %7136 = vst [vmem:[#allocation12_spill] sm:$0xff] %v5483_v41 }
 0x15e   :  { %v2533_v53 = vpop.f32.mrf.mxu2  ;;  %v1878_v62 = vpop.f32.mrf.mxu0 }
 0x15f   :  { %v2862_v54 = vpop.f32.mrf.mxu3  ;;  %v2534_v59 = vadd.f32 %v2533_v53, %v2205_v39  ;;  %v2207_v63 = vpop.f32.mrf.mxu1 }
 0x160   :  { %v2208_v5 = vadd.f32 %v2207_v63, %v1878_v62  ;;  %v4634_v62 = vld [vmem:[%s7081_s0 + $0x2c4] sm:$0xf]  ;;  %v3750_v63 = vld [vmem:[%s7081_s0 + $0x2d0] sm:$0xf0] }
 0x161   :  { %v5509_v6 = vadd.f32 %v2862_v54, %v2534_v59  ;;  %1917 = vmatmul.bf16.gmra.mxu0 %v3717_v55  ;;  %v4636_v59 = vld [vmem:[%s7081_s0 + $0x2cc] sm:$0xf0] }
 0x162   :  { %2246 = vmatmul.bf16.gmra.mxu1 %v3721_v58  ;;  %v3748_v58 = vld [vmem:[%s7081_s0 + $0x2c0] sm:$0xf] }
 0x163   :  { %7137 = vst [vmem:[#allocation13_spill] sm:$0xff] %v5509_v6  ;;  %2575 = vmatmul.bf16.gmra.mxu2 %v3725_v1  ;;  %v3756_v1 = vld [vmem:[%s7081_s0 + $0x2c8] sm:$0xf] }
 0x164   :  { %2904 = vmatmul.bf16.gmra.mxu3 %v3729_v3  ;;  %v4637_v3 = vld [vmem:[%s7081_s0 + $0x2d4] sm:$0xf0] }
 0x165   :  { %v3757_v17 = vor.u32 %v4637_v3, %v3756_v1 }
 0x166   :  { %v2536_v7 = vpop.f32.mrf.mxu2  ;;  %v1880_v11 = vpop.f32.mrf.mxu0 }
 0x167   :  { %v2865_v8 = vpop.f32.mrf.mxu3  ;;  %v2537_v10 = vadd.f32 %v2536_v7, %v2208_v5  ;;  %v2209_v12 = vpop.f32.mrf.mxu1  ;;  %v4635_v5 = vld [vmem:[%s7081_s0 + $0x2cc] sm:$0xf]  ;;  %v3758_v7 = vld [vmem:[%s7081_s0 + $0x2d8] sm:$0xf0] }
 0x168   :  { %v2210_v13 = vadd.f32 %v2209_v12, %v1880_v11  ;;  %v3749_v11 = vor.u32 %v4636_v59, %v3748_v58  ;;  %v3753_v12 = vor.u32 %v4634_v62, %v3750_v63  ;;  %v3761_v19 = vor.u32 %v4635_v5, %v3758_v7 }
 0x169   :  { %v5511_v14 = vadd.f32 %v2865_v8, %v2537_v10 }
 0x16b   :  { %7138 = vst [vmem:[#allocation14_spill] sm:$0xff] %v5511_v14 }
 0x16e   :  { %v2538_v28 = vpop.f32.mrf.mxu2  ;;  %v1883_v38 = vpop.f32.mrf.mxu0 }
 0x16f   :  { %v2867_v33 = vpop.f32.mrf.mxu3  ;;  %v2539_v37 = vadd.f32 %v2538_v28, %v2210_v13  ;;  %v2212_v39 = vpop.f32.mrf.mxu1 }
 0x170   :  { %v2213_v44 = vadd.f32 %v2212_v39, %v1883_v38  ;;  %v3764_v38 = vld [vmem:[%s7081_s0 + $0x2e0] sm:$0xf]  ;;  %v4640_v39 = vld [vmem:[%s7081_s0 + $0x2ec] sm:$0xf0] }
 0x171   :  { %v5537_v45 = vadd.f32 %v2867_v33, %v2539_v37  ;;  %1922 = vmatmul.bf16.gmra.mxu0 %v3733_v34 }
 0x172   :  { %2251 = vmatmul.bf16.gmra.mxu1 %v3737_v35 }
 0x173   :  { %7139 = vst [vmem:[#allocation15_spill] sm:$0xff] %v5537_v45  ;;  %2580 = vmatmul.bf16.gmra.mxu2 %v3741_v42  ;;  %v4638_v42 = vld [vmem:[%s7081_s0 + $0x2e4] sm:$0xf] }
 0x174   :  { %2909 = vmatmul.bf16.gmra.mxu3 %v3745_v43  ;;  %v3766_v43 = vld [vmem:[%s7081_s0 + $0x2f0] sm:$0xf0] }
 0x175   :  { %v3769_v58 = vor.u32 %v4638_v42, %v3766_v43 }
 0x176   :  { %v2541_v46 = vpop.f32.mrf.mxu2  ;;  %v1885_v50 = vpop.f32.mrf.mxu0 }
 0x177   :  { %v2870_v48 = vpop.f32.mrf.mxu3  ;;  %v2542_v49 = vadd.f32 %v2541_v46, %v2213_v44  ;;  %v2214_v53 = vpop.f32.mrf.mxu1  ;;  %v3772_v44 = vld [vmem:[%s7081_s0 + $0x2e8] sm:$0xf]  ;;  %v4641_v46 = vld [vmem:[%s7081_s0 + $0x2f4] sm:$0xf0] }
 0x178   :  { %v2215_v54 = vadd.f32 %v2214_v53, %v1885_v50  ;;  %v3773_v1 = vor.u32 %v4641_v46, %v3772_v44 }
 0x179   :  { %v5539_v55 = vadd.f32 %v2870_v48, %v2542_v49  ;;  %v4639_v48 = vld [vmem:[%s7081_s0 + $0x2ec] sm:$0xf]  ;;  %v3774_v49 = vld [vmem:[%s7081_s0 + $0x2f8] sm:$0xf0] }
 0x17a   :  { %v3777_v3 = vor.u32 %v4639_v48, %v3774_v49 }
 0x17b   :  { %7140 = vst [vmem:[#allocation16_spill] sm:$0xff] %v5539_v55 }
 0x17e   :  { %v2543_v8 = vpop.f32.mrf.mxu2  ;;  %v1888_v15 = vpop.f32.mrf.mxu0 }
 0x17f   :  { %v2872_v10 = vpop.f32.mrf.mxu3  ;;  %v2544_v13 = vadd.f32 %v2543_v8, %v2215_v54  ;;  %v2217_v16 = vpop.f32.mrf.mxu1  ;;  %v3765_v54 = vor.u32 %v4640_v39, %v3764_v38 }
 0x180   :  { %v2218_v23 = vadd.f32 %v2217_v16, %v1888_v15 }
 0x181   :  { %v5565_v24 = vadd.f32 %v2872_v10, %v2544_v13  ;;  %1927 = vmatmul.bf16.gmra.mxu0 %v3749_v11 }
 0x182   :  { %2256 = vmatmul.bf16.gmra.mxu1 %v3753_v12 }
 0x183   :  { %7141 = vst [vmem:[#allocation17_spill] sm:$0xff] %v5565_v24  ;;  %2585 = vmatmul.bf16.gmra.mxu2 %v3757_v17  ;;  %v3780_v17 = vld [vmem:[%s7081_s0 + $0x300] sm:$0xf] }
 0x184   :  { %2914 = vmatmul.bf16.gmra.mxu3 %v3761_v19  ;;  %v4644_v19 = vld [vmem:[%s7081_s0 + $0x30c] sm:$0xf0] }
 0x185   :  { %v3781_v39 = vor.u32 %v4644_v19, %v3780_v17  ;;  %v4647_v17 = vld [vmem:[%s7081_s0 + $0x32c] sm:$0xf]  ;;  %v3806_v19 = vld [vmem:[%s7081_s0 + $0x338] sm:$0xf0] }
 0x186   :  { %v2546_v25 = vpop.f32.mrf.mxu2  ;;  %v1890_v33 = vpop.f32.mrf.mxu0 }
 0x187   :  { %v2875_v26 = vpop.f32.mrf.mxu3  ;;  %v2547_v28 = vadd.f32 %v2546_v25, %v2218_v23  ;;  %v2219_v34 = vpop.f32.mrf.mxu1  ;;  %v4642_v23 = vld [vmem:[%s7081_s0 + $0x304] sm:$0xf]  ;;  %v3782_v25 = vld [vmem:[%s7081_s0 + $0x310] sm:$0xf0] }
 0x188   :  { %v2220_v35 = vadd.f32 %v2219_v34, %v1890_v33  ;;  %v4643_v33 = vld [vmem:[%s7081_s0 + $0x30c] sm:$0xf]  ;;  %v3790_v34 = vld [vmem:[%s7081_s0 + $0x318] sm:$0xf0]  ;;  %v3785_v42 = vor.u32 %v4642_v23, %v3782_v25 }
 0x189   :  { %v5567_v37 = vadd.f32 %v2875_v26, %v2547_v28  ;;  %v3788_v26 = vld [vmem:[%s7081_s0 + $0x308] sm:$0xf]  ;;  %v4645_v28 = vld [vmem:[%s7081_s0 + $0x314] sm:$0xf0]  ;;  %v3793_v49 = vor.u32 %v4643_v33, %v3790_v34 }
 0x18a   :  { %v3789_v48 = vor.u32 %v4645_v28, %v3788_v26 }
 0x18b   :  { %7142 = vst [vmem:[#allocation18_spill] sm:$0xff] %v5567_v37 }
 0x18e   :  { %v2548_v50 = vpop.f32.mrf.mxu2  ;;  %v1893_v62 = vpop.f32.mrf.mxu0 }
 0x18f   :  { %v2877_v53 = vpop.f32.mrf.mxu3  ;;  %v2549_v59 = vadd.f32 %v2548_v50, %v2220_v35  ;;  %v2222_v63 = vpop.f32.mrf.mxu1 }
 0x190   :  { %v2223_v5 = vadd.f32 %v2222_v63, %v1893_v62 }
 0x191   :  { %v5593_v7 = vadd.f32 %v2877_v53, %v2549_v59  ;;  %1932 = vmatmul.bf16.gmra.mxu0 %v3765_v54 }
 0x192   :  { %2261 = vmatmul.bf16.gmra.mxu1 %v3769_v58 }
 0x193   :  { %7143 = vst [vmem:[#allocation19_spill] sm:$0xff] %v5593_v7  ;;  %2590 = vmatmul.bf16.gmra.mxu2 %v3773_v1 }
 0x194   :  { %2919 = vmatmul.bf16.gmra.mxu3 %v3777_v3 }
 0x196   :  { %v2551_v8 = vpop.f32.mrf.mxu2  ;;  %v1895_v12 = vpop.f32.mrf.mxu0 }
 0x197   :  { %v2880_v10 = vpop.f32.mrf.mxu3  ;;  %v2552_v11 = vadd.f32 %v2551_v8, %v2223_v5  ;;  %v2224_v13 = vpop.f32.mrf.mxu1  ;;  %v3796_v5 = vld [vmem:[%s7081_s0 + $0x320] sm:$0xf]  ;;  %v4648_v8 = vld [vmem:[%s7081_s0 + $0x32c] sm:$0xf0] }
 0x198   :  { %v2225_v15 = vadd.f32 %v2224_v13, %v1895_v12  ;;  %v3798_v12 = vld [vmem:[%s7081_s0 + $0x330] sm:$0xf0]  ;;  %v3804_v13 = vld [vmem:[%s7081_s0 + $0x328] sm:$0xf]  ;;  %v3797_v26 = vor.u32 %v4648_v8, %v3796_v5  ;;  %v4650_v5 = vld [vmem:[%s7081_s0 + $0x344] sm:$0xf] }
 0x199   :  { %v5595_v16 = vadd.f32 %v2880_v10, %v2552_v11  ;;  %v4646_v11 = vld [vmem:[%s7081_s0 + $0x324] sm:$0xf]  ;;  %v3814_v8 = vld [vmem:[%s7081_s0 + $0x350] sm:$0xf0] }
 0x19a   :  { %v3801_v28 = vor.u32 %v4646_v11, %v3798_v12  ;;  %v3820_v11 = vld [vmem:[%s7081_s0 + $0x348] sm:$0xf]  ;;  %v4653_v12 = vld [vmem:[%s7081_s0 + $0x354] sm:$0xf0] }
 0x19b   :  { %7144 = vst [vmem:[#allocation20_spill] sm:$0xff] %v5595_v16 }
 0x19e   :  { %v2553_v35 = vpop.f32.mrf.mxu2  ;;  %v1898_v44 = vpop.f32.mrf.mxu0 }
 0x19f   :  { %v2882_v38 = vpop.f32.mrf.mxu3  ;;  %v2554_v43 = vadd.f32 %v2553_v35, %v2225_v15  ;;  %v2227_v46 = vpop.f32.mrf.mxu1  ;;  %v4649_v15 = vld [vmem:[%s7081_s0 + $0x334] sm:$0xf0] }
 0x1a0   :  { %v2228_v50 = vadd.f32 %v2227_v46, %v1898_v44 }
 0x1a1   :  { %v5621_v53 = vadd.f32 %v2882_v38, %v2554_v43  ;;  %1937 = vmatmul.bf16.gmra.mxu0 %v3781_v39  ;;  %v3805_v38 = vor.u32 %v4649_v15, %v3804_v13  ;;  %v3809_v39 = vor.u32 %v4647_v17, %v3806_v19  ;;  %v4651_v13 = vld [vmem:[%s7081_s0 + $0x34c] sm:$0xf]  ;;  %v3822_v15 = vld [vmem:[%s7081_s0 + $0x358] sm:$0xf0] }
 0x1a2   :  { %2266 = vmatmul.bf16.gmra.mxu1 %v3785_v42 }
 0x1a3   :  { %7145 = vst [vmem:[#allocation21_spill] sm:$0xff] %v5621_v53  ;;  %2595 = vmatmul.bf16.gmra.mxu2 %v3789_v48 }
 0x1a4   :  { %2924 = vmatmul.bf16.gmra.mxu3 %v3793_v49 }
 0x1a6   :  { %v2556_v54 = vpop.f32.mrf.mxu2  ;;  %v1900_v62 = vpop.f32.mrf.mxu0 }
 0x1a7   :  { %v2885_v58 = vpop.f32.mrf.mxu3  ;;  %v2557_v59 = vadd.f32 %v2556_v54, %v2228_v50  ;;  %v2229_v63 = vpop.f32.mrf.mxu1 }
 0x1a8   :  { %v2230_v1 = vadd.f32 %v2229_v63, %v1900_v62  ;;  %v3812_v62 = vld [vmem:[%s7081_s0 + $0x340] sm:$0xf]  ;;  %v4652_v63 = vld [vmem:[%s7081_s0 + $0x34c] sm:$0xf0] }
 0x1a9   :  { %v5623_v3 = vadd.f32 %v2885_v58, %v2557_v59 }
 0x1ae   :  { %v2558_v23 = vpop.f32.mrf.mxu2  ;;  %v1903_v34 = vpop.f32.mrf.mxu0 }
 0x1af   :  { %v2887_v25 = vpop.f32.mrf.mxu3  ;;  %v2559_v33 = vadd.f32 %v2558_v23, %v2230_v1  ;;  %v2232_v35 = vpop.f32.mrf.mxu1  ;;  %v3813_v23 = vor.u32 %v4652_v63, %v3812_v62  ;;  %v3828_v63 = vld [vmem:[%s7081_s0 + $0x360] sm:$0xf] }
 0x1b0   :  { %v2233_v42 = vadd.f32 %v2232_v35, %v1903_v34  ;;  %v3821_v34 = vor.u32 %v4653_v12, %v3820_v11  ;;  %v3825_v35 = vor.u32 %v4651_v13, %v3822_v15  ;;  %v4654_v11 = vld [vmem:[%s7081_s0 + $0x364] sm:$0xf]  ;;  %v3830_v12 = vld [vmem:[%s7081_s0 + $0x370] sm:$0xf0]  ;;  %v3836_v13 = vld [vmem:[%s7081_s0 + $0x368] sm:$0xf] }
 0x1b1   :  { %v5651_v43 = vadd.f32 %v2887_v25, %v2559_v33  ;;  %1942 = vmatmul.bf16.gmra.mxu0 %v3797_v26  ;;  %v3817_v25 = vor.u32 %v4650_v5, %v3814_v8  ;;  %v4656_v5 = vld [vmem:[%s7081_s0 + $0x36c] sm:$0xf0]  ;;  %v4657_v15 = vld [vmem:[%s7081_s0 + $0x374] sm:$0xf0] }
 0x1b2   :  { %2271 = vmatmul.bf16.gmra.mxu1 %v3801_v28 }
 0x1b3   :  { %2600 = vmatmul.bf16.gmra.mxu2 %v3805_v38 }
 0x1b4   :  { %2929 = vmatmul.bf16.gmra.mxu3 %v3809_v39 }
 0x1b6   :  { %v2561_v46 = vpop.f32.mrf.mxu2  ;;  %v1905_v50 = vpop.f32.mrf.mxu0 }
 0x1b7   :  { %v2890_v48 = vpop.f32.mrf.mxu3  ;;  %v2562_v49 = vadd.f32 %v2561_v46, %v2233_v42  ;;  %v2234_v54 = vpop.f32.mrf.mxu1 }
 0x1b8   :  { %v2235_v58 = vadd.f32 %v2234_v54, %v1905_v50 }
 0x1b9   :  { %v5655_v59 = vadd.f32 %v2890_v48, %v2562_v49 }
 0x1be   :  { %v2563_v17 = vpop.f32.mrf.mxu2  ;;  %v1908_v28 = vpop.f32.mrf.mxu0 }
 0x1bf   :  { %v2892_v19 = vpop.f32.mrf.mxu3  ;;  %v2564_v26 = vadd.f32 %v2563_v17, %v2235_v58  ;;  %v2237_v33 = vpop.f32.mrf.mxu1  ;;  %v4655_v17 = vld [vmem:[%s7081_s0 + $0x36c] sm:$0xf] }
 0x1c0   :  { %v2238_v38 = vadd.f32 %v2237_v33, %v1908_v28  ;;  %v3833_v28 = vor.u32 %v4654_v11, %v3830_v12  ;;  %v3844_v12 = vld [vmem:[%s7081_s0 + $0x380] sm:$0xf] }
 0x1c1   :  { %v5683_v39 = vadd.f32 %v2892_v19, %v2564_v26  ;;  %1947 = vmatmul.bf16.gmra.mxu0 %v3813_v23  ;;  %v3838_v19 = vld [vmem:[%s7081_s0 + $0x378] sm:$0xf0]  ;;  %v3829_v26 = vor.u32 %v4656_v5, %v3828_v63 }
 0x1c2   :  { %2276 = vmatmul.bf16.gmra.mxu1 %v3817_v25 }
 0x1c3   :  { %2605 = vmatmul.bf16.gmra.mxu2 %v3821_v34 }
 0x1c4   :  { %2934 = vmatmul.bf16.gmra.mxu3 %v3825_v35 }
 0x1c6   :  { %v2566_v46 = vpop.f32.mrf.mxu2  ;;  %v1910_v50 = vpop.f32.mrf.mxu0 }
 0x1c7   :  { %v2895_v48 = vpop.f32.mrf.mxu3  ;;  %v2567_v49 = vadd.f32 %v2566_v46, %v2238_v38  ;;  %v2239_v54 = vpop.f32.mrf.mxu1  ;;  %v3837_v38 = vor.u32 %v4657_v15, %v3836_v13  ;;  %v3841_v46 = vor.u32 %v4655_v17, %v3838_v19  ;;  %v4660_v13 = vld [vmem:[%s7081_s0 + $0x38c] sm:$0xf0]  ;;  %v4658_v17 = vld [vmem:[%s7081_s0 + $0x384] sm:$0xf]  ;;  %v4661_v19 = vld [vmem:[%s7081_s0 + $0x394] sm:$0xf0] }
 0x1c8   :  { %v2240_v58 = vadd.f32 %v2239_v54, %v1910_v50 }
 0x1c9   :  { %v5687_v62 = vadd.f32 %v2895_v48, %v2567_v49 }
 0x1ce   :  { %v2568_v23 = vpop.f32.mrf.mxu2  ;;  %v1913_v34 = vpop.f32.mrf.mxu0 }
 0x1cf   :  { %v2897_v25 = vpop.f32.mrf.mxu3  ;;  %v2569_v33 = vadd.f32 %v2568_v23, %v2240_v58  ;;  %v2242_v35 = vpop.f32.mrf.mxu1  ;;  %v4659_v23 = vld [vmem:[%s7081_s0 + $0x38c] sm:$0xf] }
 0x1d0   :  { %v2243_v48 = vadd.f32 %v2242_v35, %v1913_v34 }
 0x1d1   :  { %v5715_v49 = vadd.f32 %v2897_v25, %v2569_v33  ;;  %1952 = vmatmul.bf16.gmra.mxu0 %v3829_v26  ;;  %v3854_v25 = vld [vmem:[%s7081_s0 + $0x398] sm:$0xf0]  ;;  %v3845_v33 = vor.u32 %v4660_v13, %v3844_v12 }
 0x1d2   :  { %2281 = vmatmul.bf16.gmra.mxu1 %v3833_v28 }
 0x1d3   :  { %2610 = vmatmul.bf16.gmra.mxu2 %v3837_v38 }
 0x1d4   :  { %2939 = vmatmul.bf16.gmra.mxu3 %v3841_v46 }
 0x1d6   :  { %v2571_v54 = vpop.f32.mrf.mxu2  ;;  %v1915_v63 = vpop.f32.mrf.mxu0 }
 0x1d7   :  { %v2900_v8 = vpop.f32.mrf.mxu3  ;;  %v2572_v42 = vadd.f32 %v2571_v54, %v2243_v48  ;;  %v2244_v5 = vpop.f32.mrf.mxu1  ;;  %v3857_v54 = vor.u32 %v4659_v23, %v3854_v25  ;;  %v4665_v23 = vld [vmem:[%s7081_s0 + $0x3b4] sm:$0xf0]  ;;  %v4663_v25 = vld [vmem:[%s7081_s0 + $0x3ac] sm:$0xf] }
 0x1d8   :  { %v2245_v58 = vadd.f32 %v2244_v5, %v1915_v63 }
 0x1d9   :  { %v5719_v11 = vadd.f32 %v2900_v8, %v2572_v42  ;;  %v3846_v42 = vld [vmem:[%s7081_s0 + $0x390] sm:$0xf0]  ;;  %v3852_v8 = vld [vmem:[%s7081_s0 + $0x388] sm:$0xf] }
 0x1da   :  { %v3849_v34 = vor.u32 %v4658_v17, %v3846_v42  ;;  %v3853_v48 = vor.u32 %v4661_v19, %v3852_v8  ;;  %v3860_v42 = vld [vmem:[%s7081_s0 + $0x3a0] sm:$0xf]  ;;  %v4664_v8 = vld [vmem:[%s7081_s0 + $0x3ac] sm:$0xf0] }
 0x1de   :  { %v2573_v26 = vpop.f32.mrf.mxu2  ;;  %v1918_v38 = vpop.f32.mrf.mxu0 }
 0x1df   :  { %v2902_v28 = vpop.f32.mrf.mxu3  ;;  %v2574_v35 = vadd.f32 %v2573_v26, %v2245_v58  ;;  %v2247_v46 = vpop.f32.mrf.mxu1  ;;  %v3870_v26 = vld [vmem:[%s7081_s0 + $0x3b8] sm:$0xf0] }
 0x1e0   :  { %v2248_v63 = vadd.f32 %v2247_v46, %v1918_v38 }
 0x1e1   :  { %v5747_v5 = vadd.f32 %v2902_v28, %v2574_v35  ;;  %1957 = vmatmul.bf16.gmra.mxu0 %v3845_v33 }
 0x1e2   :  { %2286 = vmatmul.bf16.gmra.mxu1 %v3849_v34  ;;  %v3861_v34 = vor.u32 %v4664_v8, %v3860_v42 }
 0x1e3   :  { %2615 = vmatmul.bf16.gmra.mxu2 %v3853_v48 }
 0x1e4   :  { %2944 = vmatmul.bf16.gmra.mxu3 %v3857_v54 }
 0x1e6   :  { %v2576_v50 = vpop.f32.mrf.mxu2  ;;  %v1920_v12 = vpop.f32.mrf.mxu0 }
 0x1e7   :  { %v2905_v1 = vpop.f32.mrf.mxu3  ;;  %v2577_v44 = vadd.f32 %v2576_v50, %v2248_v63  ;;  %v2249_v13 = vpop.f32.mrf.mxu1  ;;  %v4662_v50 = vld [vmem:[%s7081_s0 + $0x3a4] sm:$0xf]  ;;  %v3873_v63 = vor.u32 %v4663_v25, %v3870_v26  ;;  %v4669_v25 = vld [vmem:[%s7081_s0 + $0x3d4] sm:$0xf0]  ;;  %v4667_v26 = vld [vmem:[%s7081_s0 + $0x3cc] sm:$0xf] }
 0x1e8   :  { %v2250_v58 = vadd.f32 %v2249_v13, %v1920_v12 }
 0x1e9   :  { %v5751_v17 = vadd.f32 %v2905_v1, %v2577_v44  ;;  %v3862_v44 = vld [vmem:[%s7081_s0 + $0x3b0] sm:$0xf0]  ;;  %v3868_v1 = vld [vmem:[%s7081_s0 + $0x3a8] sm:$0xf] }
 0x1ea   :  { %v3865_v35 = vor.u32 %v4662_v50, %v3862_v44  ;;  %v3869_v54 = vor.u32 %v4665_v23, %v3868_v1  ;;  %v3876_v44 = vld [vmem:[%s7081_s0 + $0x3c0] sm:$0xf]  ;;  %v4668_v1 = vld [vmem:[%s7081_s0 + $0x3cc] sm:$0xf0] }
 0x1eb   :  { %7146 = vst [vmem:[#allocation22_spill] sm:$0xff] %v5751_v17 }
 0x1ee   :  { %v2578_v28 = vpop.f32.mrf.mxu2  ;;  %v1923_v46 = vpop.f32.mrf.mxu0 }
 0x1ef   :  { %v2907_v33 = vpop.f32.mrf.mxu3  ;;  %v2579_v38 = vadd.f32 %v2578_v28, %v2250_v58  ;;  %v2252_v48 = vpop.f32.mrf.mxu1  ;;  %v3886_v28 = vld [vmem:[%s7081_s0 + $0x3d8] sm:$0xf0] }
 0x1f0   :  { %v2253_v12 = vadd.f32 %v2252_v48, %v1923_v46 }
 0x1f1   :  { %v5779_v13 = vadd.f32 %v2907_v33, %v2579_v38  ;;  %1962 = vmatmul.bf16.gmra.mxu0 %v3861_v34 }
 0x1f2   :  { %2291 = vmatmul.bf16.gmra.mxu1 %v3865_v35  ;;  %v3877_v35 = vor.u32 %v4668_v1, %v3876_v44 }
 0x1f3   :  { %2620 = vmatmul.bf16.gmra.mxu2 %v3869_v54 }
 0x1f4   :  { %2949 = vmatmul.bf16.gmra.mxu3 %v3873_v63 }
 0x1f6   :  { %v2581_v15 = vpop.f32.mrf.mxu2  ;;  %v1925_v42 = vpop.f32.mrf.mxu0 }
 0x1f7   :  { %v2910_v10 = vpop.f32.mrf.mxu3  ;;  %v2582_v17 = vadd.f32 %v2581_v15, %v2253_v12  ;;  %v2254_v8 = vpop.f32.mrf.mxu1  ;;  %v4666_v15 = vld [vmem:[%s7081_s0 + $0x3c4] sm:$0xf]  ;;  %v3889_v12 = vor.u32 %v4667_v26, %v3886_v28  ;;  %v4673_v26 = vld [vmem:[%s7081_s0 + $0x3f4] sm:$0xf0]  ;;  %v4671_v28 = vld [vmem:[%s7081_s0 + $0x3ec] sm:$0xf] }
 0x1f8   :  { %v2255_v58 = vadd.f32 %v2254_v8, %v1925_v42 }
 0x1f9   :  { %v5783_v50 = vadd.f32 %v2910_v10, %v2582_v17  ;;  %v3878_v10 = vld [vmem:[%s7081_s0 + $0x3d0] sm:$0xf0]  ;;  %v3884_v17 = vld [vmem:[%s7081_s0 + $0x3c8] sm:$0xf] }
 0x1fa   :  { %v3881_v38 = vor.u32 %v4666_v15, %v3878_v10  ;;  %v3885_v63 = vor.u32 %v4669_v25, %v3884_v17  ;;  %v3892_v10 = vld [vmem:[%s7081_s0 + $0x3e0] sm:$0xf]  ;;  %v4672_v17 = vld [vmem:[%s7081_s0 + $0x3ec] sm:$0xf0] }
 0x1fb   :  { %7147 = vst [vmem:[#allocation23_spill] sm:$0xff] %v5783_v50 }
 0x1fe   :  { %v2583_v33 = vpop.f32.mrf.mxu2  ;;  %v1928_v48 = vpop.f32.mrf.mxu0 }
 0x1ff   :  { %v2912_v34 = vpop.f32.mrf.mxu3  ;;  %v2584_v46 = vadd.f32 %v2583_v33, %v2255_v58  ;;  %v2257_v54 = vpop.f32.mrf.mxu1  ;;  %v3902_v33 = vld [vmem:[%s7081_s0 + $0x3f8] sm:$0xf0] }
 0x200   :  { %v2258_v42 = vadd.f32 %v2257_v54, %v1928_v48 }
 0x201   :  { %v5811_v8 = vadd.f32 %v2912_v34, %v2584_v46  ;;  %1967 = vmatmul.bf16.gmra.mxu0 %v3877_v35 }
 0x202   :  { %2296 = vmatmul.bf16.gmra.mxu1 %v3881_v38  ;;  %v3893_v38 = vor.u32 %v4672_v17, %v3892_v10 }
 0x203   :  { %2625 = vmatmul.bf16.gmra.mxu2 %v3885_v63 }
 0x204   :  { %2954 = vmatmul.bf16.gmra.mxu3 %v3889_v12 }
 0x206   :  { %v2586_v19 = vpop.f32.mrf.mxu2  ;;  %v1930_v44 = vpop.f32.mrf.mxu0 }
 0x207   :  { %v2915_v50 = vpop.f32.mrf.mxu3  ;;  %v2587_v30 = vadd.f32 %v2586_v19, %v2258_v42  ;;  %v2259_v1 = vpop.f32.mrf.mxu1  ;;  %v4670_v19 = vld [vmem:[%s7081_s0 + $0x3e4] sm:$0xf]  ;;  %v3905_v42 = vor.u32 %v4671_v28, %v3902_v33  ;;  %v4677_v28 = vld [vmem:[%s7081_s0 + $0x414] sm:$0xf0]  ;;  %v4675_v33 = vld [vmem:[%s7081_s0 + $0x40c] sm:$0xf] }
 0x208   :  { %v2260_v58 = vadd.f32 %v2259_v1, %v1930_v44 }
 0x209   :  { %v5815_v15 = vadd.f32 %v2915_v50, %v2587_v30  ;;  %v3894_v30 = vld [vmem:[%s7081_s0 + $0x3f0] sm:$0xf0]  ;;  %v3900_v50 = vld [vmem:[%s7081_s0 + $0x3e8] sm:$0xf] }
 0x20a   :  { %v3897_v46 = vor.u32 %v4670_v19, %v3894_v30  ;;  %v3901_v12 = vor.u32 %v4673_v26, %v3900_v50  ;;  %v3908_v30 = vld [vmem:[%s7081_s0 + $0x400] sm:$0xf]  ;;  %v4676_v50 = vld [vmem:[%s7081_s0 + $0x40c] sm:$0xf0] }
 0x20b   :  { %7148 = vst [vmem:[#allocation24_spill] sm:$0xff] %v5815_v15 }
 0x20e   :  { %v2588_v34 = vpop.f32.mrf.mxu2  ;;  %v1933_v54 = vpop.f32.mrf.mxu0 }
 0x20f   :  { %v2917_v35 = vpop.f32.mrf.mxu3  ;;  %v2589_v48 = vadd.f32 %v2588_v34, %v2260_v58  ;;  %v2262_v63 = vpop.f32.mrf.mxu1  ;;  %v3918_v34 = vld [vmem:[%s7081_s0 + $0x418] sm:$0xf0] }
 0x210   :  { %v2263_v44 = vadd.f32 %v2262_v63, %v1933_v54 }
 0x211   :  { %v5843_v1 = vadd.f32 %v2917_v35, %v2589_v48  ;;  %1972 = vmatmul.bf16.gmra.mxu0 %v3893_v38 }
 0x212   :  { %2301 = vmatmul.bf16.gmra.mxu1 %v3897_v46  ;;  %v3909_v46 = vor.u32 %v4676_v50, %v3908_v30 }
 0x213   :  { %2630 = vmatmul.bf16.gmra.mxu2 %v3901_v12 }
 0x214   :  { %2959 = vmatmul.bf16.gmra.mxu3 %v3905_v42 }
 0x216   :  { %v2591_v23 = vpop.f32.mrf.mxu2  ;;  %v1935_v10 = vpop.f32.mrf.mxu0 }
 0x217   :  { %v2920_v15 = vpop.f32.mrf.mxu3  ;;  %v2592_v60 = vadd.f32 %v2591_v23, %v2263_v44  ;;  %v2264_v17 = vpop.f32.mrf.mxu1  ;;  %v4674_v23 = vld [vmem:[%s7081_s0 + $0x404] sm:$0xf]  ;;  %v3921_v44 = vor.u32 %v4675_v33, %v3918_v34  ;;  %v4681_v33 = vld [vmem:[%s7081_s0 + $0x434] sm:$0xf0]  ;;  %v4679_v34 = vld [vmem:[%s7081_s0 + $0x42c] sm:$0xf] }
 0x218   :  { %v2265_v58 = vadd.f32 %v2264_v17, %v1935_v10 }
 0x219   :  { %v5847_v19 = vadd.f32 %v2920_v15, %v2592_v60  ;;  %v3910_v60 = vld [vmem:[%s7081_s0 + $0x410] sm:$0xf0]  ;;  %v3916_v15 = vld [vmem:[%s7081_s0 + $0x408] sm:$0xf] }
 0x21a   :  { %v3913_v48 = vor.u32 %v4674_v23, %v3910_v60  ;;  %v3917_v42 = vor.u32 %v4677_v28, %v3916_v15  ;;  %v3924_v60 = vld [vmem:[%s7081_s0 + $0x420] sm:$0xf]  ;;  %v4680_v15 = vld [vmem:[%s7081_s0 + $0x42c] sm:$0xf0] }
 0x21b   :  { %7149 = vst [vmem:[#allocation25_spill] sm:$0xff] %v5847_v19 }
 0x21e   :  { %v2593_v35 = vpop.f32.mrf.mxu2  ;;  %v1938_v63 = vpop.f32.mrf.mxu0 }
 0x21f   :  { %v2922_v38 = vpop.f32.mrf.mxu3  ;;  %v2594_v54 = vadd.f32 %v2593_v35, %v2265_v58  ;;  %v2267_v12 = vpop.f32.mrf.mxu1  ;;  %v3934_v35 = vld [vmem:[%s7081_s0 + $0x438] sm:$0xf0] }
 0x220   :  { %v2268_v10 = vadd.f32 %v2267_v12, %v1938_v63 }
 0x221   :  { %v5875_v17 = vadd.f32 %v2922_v38, %v2594_v54  ;;  %1977 = vmatmul.bf16.gmra.mxu0 %v3909_v46 }
 0x222   :  { %2306 = vmatmul.bf16.gmra.mxu1 %v3913_v48  ;;  %v3925_v48 = vor.u32 %v4680_v15, %v3924_v60 }
 0x223   :  { %7150 = vst [vmem:[#allocation26_spill] sm:$0xff] %v5875_v17  ;;  %2635 = vmatmul.bf16.gmra.mxu2 %v3917_v42 }
 0x224   :  { %2964 = vmatmul.bf16.gmra.mxu3 %v3921_v44 }
 0x226   :  { %v2596_v25 = vpop.f32.mrf.mxu2  ;;  %v1940_v30 = vpop.f32.mrf.mxu0 }
 0x227   :  { %v2925_v19 = vpop.f32.mrf.mxu3  ;;  %v2597_v27 = vadd.f32 %v2596_v25, %v2268_v10  ;;  %v2269_v50 = vpop.f32.mrf.mxu1  ;;  %v4678_v25 = vld [vmem:[%s7081_s0 + $0x424] sm:$0xf]  ;;  %v3937_v10 = vor.u32 %v4679_v34, %v3934_v35  ;;  %v4685_v34 = vld [vmem:[%s7081_s0 + $0x454] sm:$0xf0]  ;;  %v4683_v35 = vld [vmem:[%s7081_s0 + $0x44c] sm:$0xf] }
 0x228   :  { %v2270_v58 = vadd.f32 %v2269_v50, %v1940_v30 }
 0x229   :  { %v5879_v23 = vadd.f32 %v2925_v19, %v2597_v27  ;;  %v3926_v27 = vld [vmem:[%s7081_s0 + $0x430] sm:$0xf0]  ;;  %v3932_v19 = vld [vmem:[%s7081_s0 + $0x428] sm:$0xf] }
 0x22a   :  { %v3929_v54 = vor.u32 %v4678_v25, %v3926_v27  ;;  %v3933_v44 = vor.u32 %v4681_v33, %v3932_v19  ;;  %v3940_v27 = vld [vmem:[%s7081_s0 + $0x440] sm:$0xf]  ;;  %v4684_v19 = vld [vmem:[%s7081_s0 + $0x44c] sm:$0xf0] }
 0x22b   :  { %7151 = vst [vmem:[#allocation27_spill] sm:$0xff] %v5879_v23 }
 0x22e   :  { %v2598_v38 = vpop.f32.mrf.mxu2  ;;  %v1943_v12 = vpop.f32.mrf.mxu0 }
 0x22f   :  { %v2927_v46 = vpop.f32.mrf.mxu3  ;;  %v2599_v63 = vadd.f32 %v2598_v38, %v2270_v58  ;;  %v2272_v42 = vpop.f32.mrf.mxu1  ;;  %v3950_v38 = vld [vmem:[%s7081_s0 + $0x458] sm:$0xf0] }
 0x230   :  { %v2273_v30 = vadd.f32 %v2272_v42, %v1943_v12 }
 0x231   :  { %v5907_v50 = vadd.f32 %v2927_v46, %v2599_v63  ;;  %1982 = vmatmul.bf16.gmra.mxu0 %v3925_v48 }
 0x232   :  { %2311 = vmatmul.bf16.gmra.mxu1 %v3929_v54  ;;  %v3941_v54 = vor.u32 %v4684_v19, %v3940_v27 }
 0x233   :  { %7152 = vst [vmem:[#allocation28_spill] sm:$0xff] %v5907_v50  ;;  %2640 = vmatmul.bf16.gmra.mxu2 %v3933_v44 }
 0x234   :  { %2969 = vmatmul.bf16.gmra.mxu3 %v3937_v10 }
 0x236   :  { %v2601_v26 = vpop.f32.mrf.mxu2  ;;  %v1945_v60 = vpop.f32.mrf.mxu0 }
 0x237   :  { %v2930_v23 = vpop.f32.mrf.mxu3  ;;  %v2602_v61 = vadd.f32 %v2601_v26, %v2273_v30  ;;  %v2274_v15 = vpop.f32.mrf.mxu1  ;;  %v4682_v26 = vld [vmem:[%s7081_s0 + $0x444] sm:$0xf]  ;;  %v3953_v30 = vor.u32 %v4683_v35, %v3950_v38  ;;  %v4689_v35 = vld [vmem:[%s7081_s0 + $0x474] sm:$0xf0]  ;;  %v4687_v38 = vld [vmem:[%s7081_s0 + $0x46c] sm:$0xf] }
 0x238   :  { %v2275_v58 = vadd.f32 %v2274_v15, %v1945_v60 }
 0x239   :  { %v5911_v25 = vadd.f32 %v2930_v23, %v2602_v61  ;;  %v3942_v61 = vld [vmem:[%s7081_s0 + $0x450] sm:$0xf0]  ;;  %v3948_v23 = vld [vmem:[%s7081_s0 + $0x448] sm:$0xf] }
 0x23a   :  { %v3945_v63 = vor.u32 %v4682_v26, %v3942_v61  ;;  %v3949_v10 = vor.u32 %v4685_v34, %v3948_v23  ;;  %v3956_v61 = vld [vmem:[%s7081_s0 + $0x460] sm:$0xf]  ;;  %v4688_v23 = vld [vmem:[%s7081_s0 + $0x46c] sm:$0xf0] }
 0x23b   :  { %7153 = vst [vmem:[#allocation29_spill] sm:$0xff] %v5911_v25 }
 0x23e   :  { %v2603_v46 = vpop.f32.mrf.mxu2  ;;  %v1948_v42 = vpop.f32.mrf.mxu0 }
 0x23f   :  { %v2932_v48 = vpop.f32.mrf.mxu3  ;;  %v2604_v12 = vadd.f32 %v2603_v46, %v2275_v58  ;;  %v2277_v44 = vpop.f32.mrf.mxu1  ;;  %v3966_v46 = vld [vmem:[%s7081_s0 + $0x478] sm:$0xf0] }
 0x240   :  { %v2278_v60 = vadd.f32 %v2277_v44, %v1948_v42 }
 0x241   :  { %v5939_v15 = vadd.f32 %v2932_v48, %v2604_v12  ;;  %1987 = vmatmul.bf16.gmra.mxu0 %v3941_v54 }
 0x242   :  { %2316 = vmatmul.bf16.gmra.mxu1 %v3945_v63  ;;  %v3957_v63 = vor.u32 %v4688_v23, %v3956_v61 }
 0x243   :  { %7154 = vst [vmem:[#allocation30_spill] sm:$0xff] %v5939_v15  ;;  %2645 = vmatmul.bf16.gmra.mxu2 %v3949_v10 }
 0x244   :  { %2974 = vmatmul.bf16.gmra.mxu3 %v3953_v30 }
 0x246   :  { %v2606_v28 = vpop.f32.mrf.mxu2  ;;  %v1950_v27 = vpop.f32.mrf.mxu0 }
 0x247   :  { %v2935_v25 = vpop.f32.mrf.mxu3  ;;  %v2607_v32 = vadd.f32 %v2606_v28, %v2278_v60  ;;  %v2279_v19 = vpop.f32.mrf.mxu1  ;;  %v4686_v28 = vld [vmem:[%s7081_s0 + $0x464] sm:$0xf]  ;;  %v3969_v60 = vor.u32 %v4687_v38, %v3966_v46  ;;  %v4693_v38 = vld [vmem:[%s7081_s0 + $0x494] sm:$0xf0]  ;;  %v4691_v46 = vld [vmem:[%s7081_s0 + $0x48c] sm:$0xf] }
 0x248   :  { %v2280_v58 = vadd.f32 %v2279_v19, %v1950_v27 }
 0x249   :  { %v5943_v26 = vadd.f32 %v2935_v25, %v2607_v32  ;;  %v3958_v32 = vld [vmem:[%s7081_s0 + $0x470] sm:$0xf0]  ;;  %v3964_v25 = vld [vmem:[%s7081_s0 + $0x468] sm:$0xf] }
 0x24a   :  { %v3961_v12 = vor.u32 %v4686_v28, %v3958_v32  ;;  %v3965_v30 = vor.u32 %v4689_v35, %v3964_v25  ;;  %v3972_v32 = vld [vmem:[%s7081_s0 + $0x480] sm:$0xf]  ;;  %v4692_v25 = vld [vmem:[%s7081_s0 + $0x48c] sm:$0xf0] }
 0x24b   :  { %7155 = vst [vmem:[#allocation31_spill] sm:$0xff] %v5943_v26 }
 0x24e   :  { %v2608_v48 = vpop.f32.mrf.mxu2  ;;  %v1953_v44 = vpop.f32.mrf.mxu0 }
 0x24f   :  { %v2937_v54 = vpop.f32.mrf.mxu3  ;;  %v2609_v42 = vadd.f32 %v2608_v48, %v2280_v58  ;;  %v2282_v10 = vpop.f32.mrf.mxu1  ;;  %v3982_v48 = vld [vmem:[%s7081_s0 + $0x498] sm:$0xf0] }
 0x250   :  { %v2283_v27 = vadd.f32 %v2282_v10, %v1953_v44 }
 0x251   :  { %v5971_v19 = vadd.f32 %v2937_v54, %v2609_v42  ;;  %1992 = vmatmul.bf16.gmra.mxu0 %v3957_v63 }
 0x252   :  { %2321 = vmatmul.bf16.gmra.mxu1 %v3961_v12  ;;  %v3973_v12 = vor.u32 %v4692_v25, %v3972_v32 }
 0x253   :  { %7156 = vst [vmem:[#allocation32_spill] sm:$0xff] %v5971_v19  ;;  %2650 = vmatmul.bf16.gmra.mxu2 %v3965_v30 }
 0x254   :  { %2979 = vmatmul.bf16.gmra.mxu3 %v3969_v60 }
 0x256   :  { %v2611_v33 = vpop.f32.mrf.mxu2  ;;  %v1955_v61 = vpop.f32.mrf.mxu0 }
 0x257   :  { %v2940_v26 = vpop.f32.mrf.mxu3  ;;  %v2612_v4 = vadd.f32 %v2611_v33, %v2283_v27  ;;  %v2284_v23 = vpop.f32.mrf.mxu1  ;;  %v4690_v33 = vld [vmem:[%s7081_s0 + $0x484] sm:$0xf]  ;;  %v3985_v27 = vor.u32 %v4691_v46, %v3982_v48  ;;  %v4697_v46 = vld [vmem:[%s7081_s0 + $0x4b4] sm:$0xf0]  ;;  %v4695_v48 = vld [vmem:[%s7081_s0 + $0x4ac] sm:$0xf] }
 0x258   :  { %v2285_v58 = vadd.f32 %v2284_v23, %v1955_v61 }
 0x259   :  { %v5975_v28 = vadd.f32 %v2940_v26, %v2612_v4  ;;  %v3974_v4 = vld [vmem:[%s7081_s0 + $0x490] sm:$0xf0]  ;;  %v3980_v26 = vld [vmem:[%s7081_s0 + $0x488] sm:$0xf] }
 0x25a   :  { %v3977_v42 = vor.u32 %v4690_v33, %v3974_v4  ;;  %v3981_v60 = vor.u32 %v4693_v38, %v3980_v26  ;;  %v3988_v4 = vld [vmem:[%s7081_s0 + $0x4a0] sm:$0xf]  ;;  %v4696_v26 = vld [vmem:[%s7081_s0 + $0x4ac] sm:$0xf0] }
 0x25b   :  { %7157 = vst [vmem:[#allocation33_spill] sm:$0xff] %v5975_v28 }
 0x25e   :  { %v2613_v54 = vpop.f32.mrf.mxu2  ;;  %v1958_v10 = vpop.f32.mrf.mxu0 }
 0x25f   :  { %v2942_v63 = vpop.f32.mrf.mxu3  ;;  %v2614_v44 = vadd.f32 %v2613_v54, %v2285_v58  ;;  %v2287_v30 = vpop.f32.mrf.mxu1  ;;  %v3998_v54 = vld [vmem:[%s7081_s0 + $0x4b8] sm:$0xf0] }
 0x260   :  { %v2288_v61 = vadd.f32 %v2287_v30, %v1958_v10 }
 0x261   :  { %v6003_v23 = vadd.f32 %v2942_v63, %v2614_v44  ;;  %1997 = vmatmul.bf16.gmra.mxu0 %v3973_v12 }
 0x262   :  { %2326 = vmatmul.bf16.gmra.mxu1 %v3977_v42  ;;  %v3989_v42 = vor.u32 %v4696_v26, %v3988_v4 }
 0x263   :  { %7158 = vst [vmem:[#allocation34_spill] sm:$0xff] %v6003_v23  ;;  %2655 = vmatmul.bf16.gmra.mxu2 %v3981_v60 }
 0x264   :  { %2984 = vmatmul.bf16.gmra.mxu3 %v3985_v27 }
 0x266   :  { %v2616_v34 = vpop.f32.mrf.mxu2  ;;  %v1960_v32 = vpop.f32.mrf.mxu0 }
 0x267   :  { %v2945_v28 = vpop.f32.mrf.mxu3  ;;  %v2617_v41 = vadd.f32 %v2616_v34, %v2288_v61  ;;  %v2289_v25 = vpop.f32.mrf.mxu1  ;;  %v4694_v34 = vld [vmem:[%s7081_s0 + $0x4a4] sm:$0xf]  ;;  %v4001_v61 = vor.u32 %v4695_v48, %v3998_v54  ;;  %v4701_v48 = vld [vmem:[%s7081_s0 + $0x4d4] sm:$0xf0]  ;;  %v4699_v54 = vld [vmem:[%s7081_s0 + $0x4cc] sm:$0xf] }
 0x268   :  { %v2290_v58 = vadd.f32 %v2289_v25, %v1960_v32 }
 0x269   :  { %v6007_v33 = vadd.f32 %v2945_v28, %v2617_v41  ;;  %v3990_v41 = vld [vmem:[%s7081_s0 + $0x4b0] sm:$0xf0]  ;;  %v3996_v28 = vld [vmem:[%s7081_s0 + $0x4a8] sm:$0xf] }
 0x26a   :  { %v3993_v44 = vor.u32 %v4694_v34, %v3990_v41  ;;  %v3997_v27 = vor.u32 %v4697_v46, %v3996_v28  ;;  %v4004_v41 = vld [vmem:[%s7081_s0 + $0x4c0] sm:$0xf]  ;;  %v4700_v28 = vld [vmem:[%s7081_s0 + $0x4cc] sm:$0xf0] }
 0x26b   :  { %7159 = vst [vmem:[#allocation35_spill] sm:$0xff] %v6007_v33 }
 0x26e   :  { %v2618_v63 = vpop.f32.mrf.mxu2  ;;  %v1963_v30 = vpop.f32.mrf.mxu0 }
 0x26f   :  { %v2947_v12 = vpop.f32.mrf.mxu3  ;;  %v2619_v10 = vadd.f32 %v2618_v63, %v2290_v58  ;;  %v2292_v60 = vpop.f32.mrf.mxu1  ;;  %v4014_v63 = vld [vmem:[%s7081_s0 + $0x4d8] sm:$0xf0] }
 0x270   :  { %v2293_v32 = vadd.f32 %v2292_v60, %v1963_v30 }
 0x271   :  { %v6035_v25 = vadd.f32 %v2947_v12, %v2619_v10  ;;  %2002 = vmatmul.bf16.gmra.mxu0 %v3989_v42 }
 0x272   :  { %2331 = vmatmul.bf16.gmra.mxu1 %v3993_v44  ;;  %v4005_v44 = vor.u32 %v4700_v28, %v4004_v41 }
 0x273   :  { %7160 = vst [vmem:[#allocation36_spill] sm:$0xff] %v6035_v25  ;;  %2660 = vmatmul.bf16.gmra.mxu2 %v3997_v27 }
 0x274   :  { %2989 = vmatmul.bf16.gmra.mxu3 %v4001_v61 }
 0x276   :  { %v2621_v35 = vpop.f32.mrf.mxu2  ;;  %v1965_v4 = vpop.f32.mrf.mxu0 }
 0x277   :  { %v2950_v33 = vpop.f32.mrf.mxu3  ;;  %v2622_v14 = vadd.f32 %v2621_v35, %v2293_v32  ;;  %v2294_v26 = vpop.f32.mrf.mxu1  ;;  %v4698_v35 = vld [vmem:[%s7081_s0 + $0x4c4] sm:$0xf]  ;;  %v4017_v32 = vor.u32 %v4699_v54, %v4014_v63  ;;  %v4705_v54 = vld [vmem:[%s7081_s0 + $0x4f4] sm:$0xf0]  ;;  %v4703_v63 = vld [vmem:[%s7081_s0 + $0x4ec] sm:$0xf] }
 0x278   :  { %v2295_v58 = vadd.f32 %v2294_v26, %v1965_v4 }
 0x279   :  { %v6039_v34 = vadd.f32 %v2950_v33, %v2622_v14  ;;  %v4006_v14 = vld [vmem:[%s7081_s0 + $0x4d0] sm:$0xf0]  ;;  %v4012_v33 = vld [vmem:[%s7081_s0 + $0x4c8] sm:$0xf] }
 0x27a   :  { %v4009_v10 = vor.u32 %v4698_v35, %v4006_v14  ;;  %v4013_v61 = vor.u32 %v4701_v48, %v4012_v33  ;;  %v4020_v14 = vld [vmem:[%s7081_s0 + $0x4e0] sm:$0xf]  ;;  %v4704_v33 = vld [vmem:[%s7081_s0 + $0x4ec] sm:$0xf0] }
 0x27b   :  { %7161 = vst [vmem:[#allocation37_spill] sm:$0xff] %v6039_v34 }
 0x27e   :  { %v2623_v12 = vpop.f32.mrf.mxu2  ;;  %v1968_v60 = vpop.f32.mrf.mxu0 }
 0x27f   :  { %v2952_v42 = vpop.f32.mrf.mxu3  ;;  %v2624_v30 = vadd.f32 %v2623_v12, %v2295_v58  ;;  %v2297_v27 = vpop.f32.mrf.mxu1  ;;  %v4030_v12 = vld [vmem:[%s7081_s0 + $0x4f8] sm:$0xf0] }
 0x280   :  { %v2298_v4 = vadd.f32 %v2297_v27, %v1968_v60 }
 0x281   :  { %v6067_v26 = vadd.f32 %v2952_v42, %v2624_v30  ;;  %2007 = vmatmul.bf16.gmra.mxu0 %v4005_v44 }
 0x282   :  { %2336 = vmatmul.bf16.gmra.mxu1 %v4009_v10  ;;  %v4021_v10 = vor.u32 %v4704_v33, %v4020_v14 }
 0x283   :  { %7162 = vst [vmem:[#allocation38_spill] sm:$0xff] %v6067_v26  ;;  %2665 = vmatmul.bf16.gmra.mxu2 %v4013_v61 }
 0x284   :  { %2994 = vmatmul.bf16.gmra.mxu3 %v4017_v32 }
 0x286   :  { %v2626_v38 = vpop.f32.mrf.mxu2  ;;  %v1970_v41 = vpop.f32.mrf.mxu0 }
 0x287   :  { %v2955_v34 = vpop.f32.mrf.mxu3  ;;  %v2627_v55 = vadd.f32 %v2626_v38, %v2298_v4  ;;  %v2299_v28 = vpop.f32.mrf.mxu1  ;;  %v4702_v38 = vld [vmem:[%s7081_s0 + $0x4e4] sm:$0xf]  ;;  %v4033_v4 = vor.u32 %v4703_v63, %v4030_v12  ;;  %v4709_v63 = vld [vmem:[%s7081_s0 + $0x514] sm:$0xf0]  ;;  %v4707_v12 = vld [vmem:[%s7081_s0 + $0x50c] sm:$0xf] }
 0x288   :  { %v2300_v58 = vadd.f32 %v2299_v28, %v1970_v41 }
 0x289   :  { %v6071_v35 = vadd.f32 %v2955_v34, %v2627_v55  ;;  %v4022_v55 = vld [vmem:[%s7081_s0 + $0x4f0] sm:$0xf0]  ;;  %v4028_v34 = vld [vmem:[%s7081_s0 + $0x4e8] sm:$0xf] }
 0x28a   :  { %v4025_v30 = vor.u32 %v4702_v38, %v4022_v55  ;;  %v4029_v32 = vor.u32 %v4705_v54, %v4028_v34  ;;  %v4036_v55 = vld [vmem:[%s7081_s0 + $0x500] sm:$0xf]  ;;  %v4708_v34 = vld [vmem:[%s7081_s0 + $0x50c] sm:$0xf0] }
 0x28b   :  { %7163 = vst [vmem:[#allocation39_spill] sm:$0xff] %v6071_v35 }
 0x28e   :  { %v2628_v42 = vpop.f32.mrf.mxu2  ;;  %v1973_v27 = vpop.f32.mrf.mxu0 }
 0x28f   :  { %v2957_v44 = vpop.f32.mrf.mxu3  ;;  %v2629_v60 = vadd.f32 %v2628_v42, %v2300_v58  ;;  %v2302_v61 = vpop.f32.mrf.mxu1  ;;  %v4046_v42 = vld [vmem:[%s7081_s0 + $0x518] sm:$0xf0] }
 0x290   :  { %v2303_v41 = vadd.f32 %v2302_v61, %v1973_v27 }
 0x291   :  { %v6099_v28 = vadd.f32 %v2957_v44, %v2629_v60  ;;  %2012 = vmatmul.bf16.gmra.mxu0 %v4021_v10 }
 0x292   :  { %2341 = vmatmul.bf16.gmra.mxu1 %v4025_v30  ;;  %v4037_v30 = vor.u32 %v4708_v34, %v4036_v55 }
 0x293   :  { %7164 = vst [vmem:[#allocation40_spill] sm:$0xff] %v6099_v28  ;;  %2670 = vmatmul.bf16.gmra.mxu2 %v4029_v32 }
 0x294   :  { %2999 = vmatmul.bf16.gmra.mxu3 %v4033_v4 }
 0x296   :  { %v2631_v46 = vpop.f32.mrf.mxu2  ;;  %v1975_v14 = vpop.f32.mrf.mxu0 }
 0x297   :  { %v2960_v35 = vpop.f32.mrf.mxu3  ;;  %v2632_v37 = vadd.f32 %v2631_v46, %v2303_v41  ;;  %v2304_v33 = vpop.f32.mrf.mxu1  ;;  %v4706_v46 = vld [vmem:[%s7081_s0 + $0x504] sm:$0xf]  ;;  %v4049_v41 = vor.u32 %v4707_v12, %v4046_v42  ;;  %v4711_v12 = vld [vmem:[%s7081_s0 + $0x52c] sm:$0xf]  ;;  %v4062_v42 = vld [vmem:[%s7081_s0 + $0x538] sm:$0xf0] }
 0x298   :  { %v2305_v58 = vadd.f32 %v2304_v33, %v1975_v14 }
 0x299   :  { %v6103_v38 = vadd.f32 %v2960_v35, %v2632_v37  ;;  %v4038_v37 = vld [vmem:[%s7081_s0 + $0x510] sm:$0xf0]  ;;  %v4044_v35 = vld [vmem:[%s7081_s0 + $0x508] sm:$0xf] }
 0x29a   :  { %v4041_v60 = vor.u32 %v4706_v46, %v4038_v37  ;;  %v4045_v4 = vor.u32 %v4709_v63, %v4044_v35  ;;  %v4052_v37 = vld [vmem:[%s7081_s0 + $0x520] sm:$0xf]  ;;  %v4712_v35 = vld [vmem:[%s7081_s0 + $0x52c] sm:$0xf0]  ;;  %v4710_v63 = vld [vmem:[%s7081_s0 + $0x524] sm:$0xf] }
 0x29b   :  { %7165 = vst [vmem:[#allocation41_spill] sm:$0xff] %v6103_v38 }
 0x29e   :  { %v2633_v44 = vpop.f32.mrf.mxu2  ;;  %v1978_v61 = vpop.f32.mrf.mxu0 }
 0x29f   :  { %v2962_v10 = vpop.f32.mrf.mxu3  ;;  %v2634_v27 = vadd.f32 %v2633_v44, %v2305_v58  ;;  %v2307_v32 = vpop.f32.mrf.mxu1 }
 0x2a0   :  { %v2308_v14 = vadd.f32 %v2307_v32, %v1978_v61 }
 0x2a1   :  { %v6131_v33 = vadd.f32 %v2962_v10, %v2634_v27  ;;  %2017 = vmatmul.bf16.gmra.mxu0 %v4037_v30  ;;  %v4053_v30 = vor.u32 %v4712_v35, %v4052_v37  ;;  %v4716_v35 = vld [vmem:[%s7081_s0 + $0x54c] sm:$0xf0] }
 0x2a2   :  { %2346 = vmatmul.bf16.gmra.mxu1 %v4041_v60 }
 0x2a3   :  { %7166 = vst [vmem:[#allocation42_spill] sm:$0xff] %v6131_v33  ;;  %2675 = vmatmul.bf16.gmra.mxu2 %v4045_v4 }
 0x2a4   :  { %3004 = vmatmul.bf16.gmra.mxu3 %v4049_v41  ;;  %v4065_v41 = vor.u32 %v4711_v12, %v4062_v42 }
 0x2a6   :  { %v2636_v48 = vpop.f32.mrf.mxu2  ;;  %v1980_v55 = vpop.f32.mrf.mxu0 }
 0x2a7   :  { %v2965_v38 = vpop.f32.mrf.mxu3  ;;  %v2637_v16 = vadd.f32 %v2636_v48, %v2308_v14  ;;  %v2309_v34 = vpop.f32.mrf.mxu1  ;;  %v4054_v48 = vld [vmem:[%s7081_s0 + $0x530] sm:$0xf0] }
 0x2a8   :  { %v2310_v58 = vadd.f32 %v2309_v34, %v1980_v55  ;;  %v4057_v60 = vor.u32 %v4710_v63, %v4054_v48  ;;  %v4714_v63 = vld [vmem:[%s7081_s0 + $0x544] sm:$0xf]  ;;  %v4070_v48 = vld [vmem:[%s7081_s0 + $0x550] sm:$0xf0] }
 0x2a9   :  { %v6135_v46 = vadd.f32 %v2965_v38, %v2637_v16  ;;  %v4060_v16 = vld [vmem:[%s7081_s0 + $0x528] sm:$0xf]  ;;  %v4713_v38 = vld [vmem:[%s7081_s0 + $0x534] sm:$0xf0]  ;;  %v4073_v42 = vor.u32 %v4714_v63, %v4070_v48  ;;  %v4718_v63 = vld [vmem:[%s7081_s0 + $0x564] sm:$0xf] }
 0x2aa   :  { %v4061_v4 = vor.u32 %v4713_v38, %v4060_v16  ;;  %v4086_v48 = vld [vmem:[%s7081_s0 + $0x570] sm:$0xf0] }
 0x2ae   :  { %v2638_v44 = vpop.f32.mrf.mxu2  ;;  %v1983_v61 = vpop.f32.mrf.mxu0 }
 0x2af   :  { %v2967_v10 = vpop.f32.mrf.mxu3  ;;  %v2639_v27 = vadd.f32 %v2638_v44, %v2310_v58  ;;  %v2312_v32 = vpop.f32.mrf.mxu1  ;;  %v4068_v58 = vld [vmem:[%s7081_s0 + $0x540] sm:$0xf] }
 0x2b0   :  { %v2313_v14 = vadd.f32 %v2312_v32, %v1983_v61  ;;  %v4069_v12 = vor.u32 %v4716_v35, %v4068_v58  ;;  %v4720_v35 = vld [vmem:[%s7081_s0 + $0x56c] sm:$0xf0] }
 0x2b1   :  { %v6161_v55 = vadd.f32 %v2967_v10, %v2639_v27  ;;  %2022 = vmatmul.bf16.gmra.mxu0 %v4053_v30 }
 0x2b2   :  { %2351 = vmatmul.bf16.gmra.mxu1 %v4057_v60 }
 0x2b3   :  { %2680 = vmatmul.bf16.gmra.mxu2 %v4061_v4 }
 0x2b4   :  { %3009 = vmatmul.bf16.gmra.mxu3 %v4065_v41 }
 0x2b6   :  { %v2641_v34 = vpop.f32.mrf.mxu2  ;;  %v1985_v53 = vpop.f32.mrf.mxu0 }
 0x2b7   :  { %v2970_v54 = vpop.f32.mrf.mxu3  ;;  %v2642_v33 = vadd.f32 %v2641_v34, %v2313_v14  ;;  %v2314_v28 = vpop.f32.mrf.mxu1 }
 0x2b8   :  { %v2315_v7 = vadd.f32 %v2314_v28, %v1985_v53  ;;  %v4076_v53 = vld [vmem:[%s7081_s0 + $0x548] sm:$0xf]  ;;  %v4717_v28 = vld [vmem:[%s7081_s0 + $0x554] sm:$0xf0] }
 0x2b9   :  { %v6163_v37 = vadd.f32 %v2970_v54, %v2642_v33  ;;  %v4715_v54 = vld [vmem:[%s7081_s0 + $0x54c] sm:$0xf]  ;;  %v4078_v33 = vld [vmem:[%s7081_s0 + $0x558] sm:$0xf0]  ;;  %v4077_v60 = vor.u32 %v4717_v28, %v4076_v53  ;;  %v4721_v53 = vld [vmem:[%s7081_s0 + $0x574] sm:$0xf0] }
 0x2ba   :  { %v4081_v27 = vor.u32 %v4715_v54, %v4078_v33  ;;  %v4719_v28 = vld [vmem:[%s7081_s0 + $0x56c] sm:$0xf]  ;;  %v4094_v54 = vld [vmem:[%s7081_s0 + $0x578] sm:$0xf0] }
 0x2be   :  { %v2643_v16 = vpop.f32.mrf.mxu2  ;;  %v1988_v10 = vpop.f32.mrf.mxu0 }
 0x2bf   :  { %v2972_v38 = vpop.f32.mrf.mxu3  ;;  %v2644_v44 = vadd.f32 %v2643_v16, %v2315_v7  ;;  %v2317_v30 = vpop.f32.mrf.mxu1  ;;  %v4084_v7 = vld [vmem:[%s7081_s0 + $0x560] sm:$0xf] }
 0x2c0   :  { %v2318_v61 = vadd.f32 %v2317_v30, %v1988_v10 }
 0x2c1   :  { %v6189_v32 = vadd.f32 %v2972_v38, %v2644_v44  ;;  %2027 = vmatmul.bf16.gmra.mxu0 %v4069_v12  ;;  %v4085_v38 = vor.u32 %v4720_v35, %v4084_v7  ;;  %v4089_v12 = vor.u32 %v4718_v63, %v4086_v48  ;;  %v4724_v35 = vld [vmem:[%s7081_s0 + $0x58c] sm:$0xf0]  ;;  %v4722_v63 = vld [vmem:[%s7081_s0 + $0x584] sm:$0xf]  ;;  %v4102_v48 = vld [vmem:[%s7081_s0 + $0x590] sm:$0xf0] }
 0x2c2   :  { %2356 = vmatmul.bf16.gmra.mxu1 %v4073_v42 }
 0x2c3   :  { %2685 = vmatmul.bf16.gmra.mxu2 %v4077_v60  ;;  %v4097_v60 = vor.u32 %v4719_v28, %v4094_v54  ;;  %v4110_v28 = vld [vmem:[%s7081_s0 + $0x598] sm:$0xf0] }
 0x2c4   :  { %3014 = vmatmul.bf16.gmra.mxu3 %v4081_v27 }
 0x2c6   :  { %v2646_v4 = vpop.f32.mrf.mxu2  ;;  %v1990_v34 = vpop.f32.mrf.mxu0 }
 0x2c7   :  { %v2975_v41 = vpop.f32.mrf.mxu3  ;;  %v2647_v14 = vadd.f32 %v2646_v4, %v2318_v61  ;;  %v2319_v26 = vpop.f32.mrf.mxu1 }
 0x2c8   :  { %v2320_v24 = vadd.f32 %v2319_v26, %v1990_v34  ;;  %v4092_v26 = vld [vmem:[%s7081_s0 + $0x568] sm:$0xf] }
 0x2c9   :  { %v6191_v58 = vadd.f32 %v2975_v41, %v2647_v14  ;;  %v4093_v30 = vor.u32 %v4721_v53, %v4092_v26  ;;  %v4725_v26 = vld [vmem:[%s7081_s0 + $0x594] sm:$0xf0]  ;;  %v4723_v53 = vld [vmem:[%s7081_s0 + $0x58c] sm:$0xf] }
 0x2ce   :  { %v2648_v33 = vpop.f32.mrf.mxu2  ;;  %v1993_v44 = vpop.f32.mrf.mxu0 }
 0x2cf   :  { %v2977_v16 = vpop.f32.mrf.mxu3  ;;  %v2649_v42 = vadd.f32 %v2648_v33, %v2320_v24  ;;  %v2322_v10 = vpop.f32.mrf.mxu1  ;;  %v4100_v24 = vld [vmem:[%s7081_s0 + $0x580] sm:$0xf] }
 0x2d0   :  { %v2323_v27 = vadd.f32 %v2322_v10, %v1993_v44 }
 0x2d1   :  { %v6217_v61 = vadd.f32 %v2977_v16, %v2649_v42  ;;  %2032 = vmatmul.bf16.gmra.mxu0 %v4085_v38  ;;  %v4101_v16 = vor.u32 %v4724_v35, %v4100_v24  ;;  %v4105_v38 = vor.u32 %v4722_v63, %v4102_v48  ;;  %v4728_v35 = vld [vmem:[%s7081_s0 + $0x5ac] sm:$0xf0]  ;;  %v4726_v63 = vld [vmem:[%s7081_s0 + $0x5a4] sm:$0xf]  ;;  %v4118_v48 = vld [vmem:[%s7081_s0 + $0x5b0] sm:$0xf0] }
 0x2d2   :  { %2361 = vmatmul.bf16.gmra.mxu1 %v4089_v12 }
 0x2d3   :  { %2690 = vmatmul.bf16.gmra.mxu2 %v4093_v30  ;;  %v4113_v30 = vor.u32 %v4723_v53, %v4110_v28  ;;  %v4126_v53 = vld [vmem:[%s7081_s0 + $0x5b8] sm:$0xf0] }
 0x2d4   :  { %3019 = vmatmul.bf16.gmra.mxu3 %v4097_v60 }
 0x2d6   :  { %v2651_v4 = vpop.f32.mrf.mxu2  ;;  %v1995_v34 = vpop.f32.mrf.mxu0 }
 0x2d7   :  { %v2980_v41 = vpop.f32.mrf.mxu3  ;;  %v2652_v14 = vadd.f32 %v2651_v4, %v2323_v27  ;;  %v2324_v25 = vpop.f32.mrf.mxu1 }
 0x2d8   :  { %v2325_v45 = vadd.f32 %v2324_v25, %v1995_v34  ;;  %v4108_v25 = vld [vmem:[%s7081_s0 + $0x588] sm:$0xf] }
 0x2d9   :  { %v6219_v7 = vadd.f32 %v2980_v41, %v2652_v14  ;;  %v4109_v10 = vor.u32 %v4725_v26, %v4108_v25  ;;  %v4729_v25 = vld [vmem:[%s7081_s0 + $0x5b4] sm:$0xf0]  ;;  %v4727_v26 = vld [vmem:[%s7081_s0 + $0x5ac] sm:$0xf] }
 0x2de   :  { %v2653_v54 = vpop.f32.mrf.mxu2  ;;  %v1998_v42 = vpop.f32.mrf.mxu0 }
 0x2df   :  { %v2982_v33 = vpop.f32.mrf.mxu3  ;;  %v2654_v12 = vadd.f32 %v2653_v54, %v2325_v45  ;;  %v2327_v44 = vpop.f32.mrf.mxu1  ;;  %v4116_v45 = vld [vmem:[%s7081_s0 + $0x5a0] sm:$0xf] }
 0x2e0   :  { %v2328_v60 = vadd.f32 %v2327_v44, %v1998_v42 }
 0x2e1   :  { %v6245_v27 = vadd.f32 %v2982_v33, %v2654_v12  ;;  %2037 = vmatmul.bf16.gmra.mxu0 %v4101_v16  ;;  %v4117_v33 = vor.u32 %v4728_v35, %v4116_v45  ;;  %v4121_v16 = vor.u32 %v4726_v63, %v4118_v48  ;;  %v4732_v35 = vld [vmem:[%s7081_s0 + $0x5cc] sm:$0xf0]  ;;  %v4730_v63 = vld [vmem:[%s7081_s0 + $0x5c4] sm:$0xf]  ;;  %v4134_v48 = vld [vmem:[%s7081_s0 + $0x5d0] sm:$0xf0] }
 0x2e2   :  { %2366 = vmatmul.bf16.gmra.mxu1 %v4105_v38 }
 0x2e3   :  { %2695 = vmatmul.bf16.gmra.mxu2 %v4109_v10  ;;  %v4129_v10 = vor.u32 %v4727_v26, %v4126_v53  ;;  %v4142_v26 = vld [vmem:[%s7081_s0 + $0x5d8] sm:$0xf0] }
 0x2e4   :  { %3024 = vmatmul.bf16.gmra.mxu3 %v4113_v30 }
 0x2e6   :  { %v2656_v4 = vpop.f32.mrf.mxu2  ;;  %v2000_v34 = vpop.f32.mrf.mxu0 }
 0x2e7   :  { %v2985_v41 = vpop.f32.mrf.mxu3  ;;  %v2657_v14 = vadd.f32 %v2656_v4, %v2328_v60  ;;  %v2329_v23 = vpop.f32.mrf.mxu1 }
 0x2e8   :  { %v2330_v6 = vadd.f32 %v2329_v23, %v2000_v34  ;;  %v4124_v23 = vld [vmem:[%s7081_s0 + $0x5a8] sm:$0xf] }
 0x2e9   :  { %v6247_v24 = vadd.f32 %v2985_v41, %v2657_v14  ;;  %v4125_v44 = vor.u32 %v4729_v25, %v4124_v23  ;;  %v4733_v23 = vld [vmem:[%s7081_s0 + $0x5d4] sm:$0xf0]  ;;  %v4731_v25 = vld [vmem:[%s7081_s0 + $0x5cc] sm:$0xf] }
 0x2ee   :  { %v2658_v28 = vpop.f32.mrf.mxu2  ;;  %v2003_v12 = vpop.f32.mrf.mxu0 }
 0x2ef   :  { %v2987_v54 = vpop.f32.mrf.mxu3  ;;  %v2659_v38 = vadd.f32 %v2658_v28, %v2330_v6  ;;  %v2332_v42 = vpop.f32.mrf.mxu1  ;;  %v4132_v6 = vld [vmem:[%s7081_s0 + $0x5c0] sm:$0xf] }
 0x2f0   :  { %v2333_v30 = vadd.f32 %v2332_v42, %v2003_v12 }
 0x2f1   :  { %v6273_v60 = vadd.f32 %v2987_v54, %v2659_v38  ;;  %2042 = vmatmul.bf16.gmra.mxu0 %v4117_v33  ;;  %v4133_v54 = vor.u32 %v4732_v35, %v4132_v6  ;;  %v4137_v33 = vor.u32 %v4730_v63, %v4134_v48  ;;  %v4736_v35 = vld [vmem:[%s7081_s0 + $0x5ec] sm:$0xf0]  ;;  %v4734_v63 = vld [vmem:[%s7081_s0 + $0x5e4] sm:$0xf]  ;;  %v4150_v48 = vld [vmem:[%s7081_s0 + $0x5f0] sm:$0xf0] }
 0x2f2   :  { %2371 = vmatmul.bf16.gmra.mxu1 %v4121_v16 }
 0x2f3   :  { %2700 = vmatmul.bf16.gmra.mxu2 %v4125_v44  ;;  %v4145_v44 = vor.u32 %v4731_v25, %v4142_v26  ;;  %v4158_v25 = vld [vmem:[%s7081_s0 + $0x5f8] sm:$0xf0] }
 0x2f4   :  { %3029 = vmatmul.bf16.gmra.mxu3 %v4129_v10 }
 0x2f6   :  { %v2661_v4 = vpop.f32.mrf.mxu2  ;;  %v2005_v34 = vpop.f32.mrf.mxu0 }
 0x2f7   :  { %v2990_v41 = vpop.f32.mrf.mxu3  ;;  %v2662_v14 = vadd.f32 %v2661_v4, %v2333_v30  ;;  %v2334_v19 = vpop.f32.mrf.mxu1 }
 0x2f8   :  { %v2335_v31 = vadd.f32 %v2334_v19, %v2005_v34  ;;  %v4140_v19 = vld [vmem:[%s7081_s0 + $0x5c8] sm:$0xf] }
 0x2f9   :  { %v6275_v45 = vadd.f32 %v2990_v41, %v2662_v14  ;;  %v4141_v42 = vor.u32 %v4733_v23, %v4140_v19  ;;  %v4737_v19 = vld [vmem:[%s7081_s0 + $0x5f4] sm:$0xf0]  ;;  %v4735_v23 = vld [vmem:[%s7081_s0 + $0x5ec] sm:$0xf] }
 0x2fe   :  { %v2663_v53 = vpop.f32.mrf.mxu2  ;;  %v2008_v38 = vpop.f32.mrf.mxu0 }
 0x2ff   :  { %v2992_v28 = vpop.f32.mrf.mxu3  ;;  %v2664_v16 = vadd.f32 %v2663_v53, %v2335_v31  ;;  %v2337_v12 = vpop.f32.mrf.mxu1  ;;  %v4148_v31 = vld [vmem:[%s7081_s0 + $0x5e0] sm:$0xf] }
 0x300   :  { %v2338_v10 = vadd.f32 %v2337_v12, %v2008_v38 }
 0x301   :  { %v6301_v30 = vadd.f32 %v2992_v28, %v2664_v16  ;;  %2047 = vmatmul.bf16.gmra.mxu0 %v4133_v54  ;;  %v4149_v28 = vor.u32 %v4736_v35, %v4148_v31  ;;  %v4153_v54 = vor.u32 %v4734_v63, %v4150_v48  ;;  %v4740_v35 = vld [vmem:[%s7081_s0 + $0x60c] sm:$0xf0]  ;;  %v4738_v63 = vld [vmem:[%s7081_s0 + $0x604] sm:$0xf]  ;;  %v4166_v48 = vld [vmem:[%s7081_s0 + $0x610] sm:$0xf0] }
 0x302   :  { %2376 = vmatmul.bf16.gmra.mxu1 %v4137_v33 }
 0x303   :  { %2705 = vmatmul.bf16.gmra.mxu2 %v4141_v42  ;;  %v4161_v42 = vor.u32 %v4735_v23, %v4158_v25  ;;  %v4174_v23 = vld [vmem:[%s7081_s0 + $0x618] sm:$0xf0] }
 0x304   :  { %3034 = vmatmul.bf16.gmra.mxu3 %v4145_v44 }
 0x306   :  { %v2666_v4 = vpop.f32.mrf.mxu2  ;;  %v2010_v34 = vpop.f32.mrf.mxu0 }
 0x307   :  { %v2995_v41 = vpop.f32.mrf.mxu3  ;;  %v2667_v14 = vadd.f32 %v2666_v4, %v2338_v10  ;;  %v2339_v15 = vpop.f32.mrf.mxu1 }
 0x308   :  { %v2340_v56 = vadd.f32 %v2339_v15, %v2010_v34  ;;  %v4156_v15 = vld [vmem:[%s7081_s0 + $0x5e8] sm:$0xf] }
 0x309   :  { %v6303_v6 = vadd.f32 %v2995_v41, %v2667_v14  ;;  %v4157_v12 = vor.u32 %v4737_v19, %v4156_v15  ;;  %v4741_v15 = vld [vmem:[%s7081_s0 + $0x614] sm:$0xf0]  ;;  %v4739_v19 = vld [vmem:[%s7081_s0 + $0x60c] sm:$0xf] }
 0x30e   :  { %v2668_v26 = vpop.f32.mrf.mxu2  ;;  %v2013_v16 = vpop.f32.mrf.mxu0 }
 0x30f   :  { %v2997_v53 = vpop.f32.mrf.mxu3  ;;  %v2669_v33 = vadd.f32 %v2668_v26, %v2340_v56  ;;  %v2342_v38 = vpop.f32.mrf.mxu1  ;;  %v4164_v56 = vld [vmem:[%s7081_s0 + $0x600] sm:$0xf] }
 0x310   :  { %v2343_v44 = vadd.f32 %v2342_v38, %v2013_v16 }
 0x311   :  { %v6329_v10 = vadd.f32 %v2997_v53, %v2669_v33  ;;  %2052 = vmatmul.bf16.gmra.mxu0 %v4149_v28  ;;  %v4165_v53 = vor.u32 %v4740_v35, %v4164_v56  ;;  %v4169_v28 = vor.u32 %v4738_v63, %v4166_v48  ;;  %v4744_v35 = vld [vmem:[%s7081_s0 + $0x62c] sm:$0xf0]  ;;  %v4742_v63 = vld [vmem:[%s7081_s0 + $0x624] sm:$0xf]  ;;  %v4182_v48 = vld [vmem:[%s7081_s0 + $0x630] sm:$0xf0] }
 0x312   :  { %2381 = vmatmul.bf16.gmra.mxu1 %v4153_v54 }
 0x313   :  { %2710 = vmatmul.bf16.gmra.mxu2 %v4157_v12  ;;  %v4177_v12 = vor.u32 %v4739_v19, %v4174_v23  ;;  %v4190_v19 = vld [vmem:[%s7081_s0 + $0x638] sm:$0xf0] }
 0x314   :  { %3039 = vmatmul.bf16.gmra.mxu3 %v4161_v42 }
 0x316   :  { %v2671_v4 = vpop.f32.mrf.mxu2  ;;  %v2015_v34 = vpop.f32.mrf.mxu0 }
 0x317   :  { %v3000_v41 = vpop.f32.mrf.mxu3  ;;  %v2672_v14 = vadd.f32 %v2671_v4, %v2343_v44  ;;  %v2344_v50 = vpop.f32.mrf.mxu1 }
 0x318   :  { %v2345_v20 = vadd.f32 %v2344_v50, %v2015_v34  ;;  %v4172_v50 = vld [vmem:[%s7081_s0 + $0x608] sm:$0xf] }
 0x319   :  { %v6331_v31 = vadd.f32 %v3000_v41, %v2672_v14  ;;  %v4173_v38 = vor.u32 %v4741_v15, %v4172_v50  ;;  %v4745_v50 = vld [vmem:[%s7081_s0 + $0x634] sm:$0xf0]  ;;  %v4743_v15 = vld [vmem:[%s7081_s0 + $0x62c] sm:$0xf] }
 0x31e   :  { %v2673_v25 = vpop.f32.mrf.mxu2  ;;  %v2018_v33 = vpop.f32.mrf.mxu0 }
 0x31f   :  { %v3002_v26 = vpop.f32.mrf.mxu3  ;;  %v2674_v54 = vadd.f32 %v2673_v25, %v2345_v20  ;;  %v2347_v16 = vpop.f32.mrf.mxu1  ;;  %v4180_v20 = vld [vmem:[%s7081_s0 + $0x620] sm:$0xf] }
 0x320   :  { %v2348_v42 = vadd.f32 %v2347_v16, %v2018_v33 }
 0x321   :  { %v6357_v44 = vadd.f32 %v3002_v26, %v2674_v54  ;;  %2057 = vmatmul.bf16.gmra.mxu0 %v4165_v53  ;;  %v4181_v26 = vor.u32 %v4744_v35, %v4180_v20  ;;  %v4185_v53 = vor.u32 %v4742_v63, %v4182_v48  ;;  %v4748_v35 = vld [vmem:[%s7081_s0 + $0x64c] sm:$0xf0]  ;;  %v4746_v63 = vld [vmem:[%s7081_s0 + $0x644] sm:$0xf]  ;;  %v4198_v48 = vld [vmem:[%s7081_s0 + $0x650] sm:$0xf0] }
 0x322   :  { %2386 = vmatmul.bf16.gmra.mxu1 %v4169_v28 }
 0x323   :  { %7167 = vst [vmem:[#allocation43_spill] sm:$0xff] %v6357_v44  ;;  %2715 = vmatmul.bf16.gmra.mxu2 %v4173_v38  ;;  %v4193_v38 = vor.u32 %v4743_v15, %v4190_v19  ;;  %v4206_v15 = vld [vmem:[%s7081_s0 + $0x658] sm:$0xf0] }
 0x324   :  { %3044 = vmatmul.bf16.gmra.mxu3 %v4177_v12 }
 0x326   :  { %v2676_v4 = vpop.f32.mrf.mxu2  ;;  %v2020_v34 = vpop.f32.mrf.mxu0 }
 0x327   :  { %v3005_v41 = vpop.f32.mrf.mxu3  ;;  %v2677_v14 = vadd.f32 %v2676_v4, %v2348_v42  ;;  %v2349_v17 = vpop.f32.mrf.mxu1 }
 0x328   :  { %v2350_v51 = vadd.f32 %v2349_v17, %v2020_v34  ;;  %v4188_v17 = vld [vmem:[%s7081_s0 + $0x628] sm:$0xf] }
 0x329   :  { %v6359_v56 = vadd.f32 %v3005_v41, %v2677_v14  ;;  %v4189_v16 = vor.u32 %v4745_v50, %v4188_v17  ;;  %v4749_v17 = vld [vmem:[%s7081_s0 + $0x654] sm:$0xf0]  ;;  %v4747_v50 = vld [vmem:[%s7081_s0 + $0x64c] sm:$0xf] }
 0x32b   :  { %7168 = vst [vmem:[#allocation44_spill] sm:$0xff] %v6359_v56 }
 0x32e   :  { %v2678_v23 = vpop.f32.mrf.mxu2  ;;  %v2023_v54 = vpop.f32.mrf.mxu0 }
 0x32f   :  { %v3007_v25 = vpop.f32.mrf.mxu3  ;;  %v2679_v28 = vadd.f32 %v2678_v23, %v2350_v51  ;;  %v2352_v33 = vpop.f32.mrf.mxu1  ;;  %v4196_v51 = vld [vmem:[%s7081_s0 + $0x640] sm:$0xf] }
 0x330   :  { %v2353_v12 = vadd.f32 %v2352_v33, %v2023_v54 }
 0x331   :  { %v6385_v42 = vadd.f32 %v3007_v25, %v2679_v28  ;;  %2062 = vmatmul.bf16.gmra.mxu0 %v4181_v26  ;;  %v4197_v25 = vor.u32 %v4748_v35, %v4196_v51  ;;  %v4201_v26 = vor.u32 %v4746_v63, %v4198_v48  ;;  %v4752_v35 = vld [vmem:[%s7081_s0 + $0x66c] sm:$0xf0]  ;;  %v4750_v63 = vld [vmem:[%s7081_s0 + $0x664] sm:$0xf]  ;;  %v4214_v48 = vld [vmem:[%s7081_s0 + $0x670] sm:$0xf0] }
 0x332   :  { %2391 = vmatmul.bf16.gmra.mxu1 %v4185_v53 }
 0x333   :  { %7169 = vst [vmem:[#allocation45_spill] sm:$0xff] %v6385_v42  ;;  %2720 = vmatmul.bf16.gmra.mxu2 %v4189_v16  ;;  %v4209_v16 = vor.u32 %v4747_v50, %v4206_v15  ;;  %v4222_v50 = vld [vmem:[%s7081_s0 + $0x678] sm:$0xf0] }
 0x334   :  { %3049 = vmatmul.bf16.gmra.mxu3 %v4193_v38 }
 0x336   :  { %v2681_v4 = vpop.f32.mrf.mxu2  ;;  %v2025_v34 = vpop.f32.mrf.mxu0 }
 0x337   :  { %v3010_v41 = vpop.f32.mrf.mxu3  ;;  %v2682_v14 = vadd.f32 %v2681_v4, %v2353_v12  ;;  %v2354_v56 = vpop.f32.mrf.mxu1 }
 0x338   :  { %v2355_v44 = vadd.f32 %v2354_v56, %v2025_v34  ;;  %v4204_v56 = vld [vmem:[%s7081_s0 + $0x648] sm:$0xf] }
 0x339   :  { %v6387_v20 = vadd.f32 %v3010_v41, %v2682_v14  ;;  %v4205_v33 = vor.u32 %v4749_v17, %v4204_v56  ;;  %v4753_v56 = vld [vmem:[%s7081_s0 + $0x674] sm:$0xf0]  ;;  %v4751_v17 = vld [vmem:[%s7081_s0 + $0x66c] sm:$0xf] }
 0x33b   :  { %7170 = vst [vmem:[#allocation46_spill] sm:$0xff] %v6387_v20 }
 0x33e   :  { %v2683_v19 = vpop.f32.mrf.mxu2  ;;  %v2028_v28 = vpop.f32.mrf.mxu0 }
 0x33f   :  { %v3012_v23 = vpop.f32.mrf.mxu3  ;;  %v2684_v53 = vadd.f32 %v2683_v19, %v2355_v44  ;;  %v2357_v54 = vpop.f32.mrf.mxu1  ;;  %v4212_v44 = vld [vmem:[%s7081_s0 + $0x660] sm:$0xf] }
 0x340   :  { %v2358_v38 = vadd.f32 %v2357_v54, %v2028_v28 }
 0x341   :  { %v6413_v12 = vadd.f32 %v3012_v23, %v2684_v53  ;;  %2067 = vmatmul.bf16.gmra.mxu0 %v4197_v25  ;;  %v4213_v23 = vor.u32 %v4752_v35, %v4212_v44  ;;  %v4217_v25 = vor.u32 %v4750_v63, %v4214_v48  ;;  %v4756_v35 = vld [vmem:[%s7081_s0 + $0x68c] sm:$0xf0]  ;;  %v4754_v63 = vld [vmem:[%s7081_s0 + $0x684] sm:$0xf]  ;;  %v4230_v48 = vld [vmem:[%s7081_s0 + $0x690] sm:$0xf0] }
 0x342   :  { %2396 = vmatmul.bf16.gmra.mxu1 %v4201_v26 }
 0x343   :  { %7171 = vst [vmem:[#allocation47_spill] sm:$0xff] %v6413_v12  ;;  %2725 = vmatmul.bf16.gmra.mxu2 %v4205_v33  ;;  %v4225_v33 = vor.u32 %v4751_v17, %v4222_v50  ;;  %v4238_v17 = vld [vmem:[%s7081_s0 + $0x698] sm:$0xf0] }
 0x344   :  { %3054 = vmatmul.bf16.gmra.mxu3 %v4209_v16 }
 0x346   :  { %v2686_v4 = vpop.f32.mrf.mxu2  ;;  %v2030_v34 = vpop.f32.mrf.mxu0 }
 0x347   :  { %v3015_v41 = vpop.f32.mrf.mxu3  ;;  %v2687_v14 = vadd.f32 %v2686_v4, %v2358_v38  ;;  %v2359_v20 = vpop.f32.mrf.mxu1 }
 0x348   :  { %v2360_v42 = vadd.f32 %v2359_v20, %v2030_v34  ;;  %v4220_v20 = vld [vmem:[%s7081_s0 + $0x668] sm:$0xf] }
 0x349   :  { %v6415_v51 = vadd.f32 %v3015_v41, %v2687_v14  ;;  %v4221_v54 = vor.u32 %v4753_v56, %v4220_v20  ;;  %v4757_v20 = vld [vmem:[%s7081_s0 + $0x694] sm:$0xf0]  ;;  %v4755_v56 = vld [vmem:[%s7081_s0 + $0x68c] sm:$0xf] }
 0x34b   :  { %7172 = vst [vmem:[#allocation48_spill] sm:$0xff] %v6415_v51 }
 0x34e   :  { %v2688_v15 = vpop.f32.mrf.mxu2  ;;  %v2033_v53 = vpop.f32.mrf.mxu0 }
 0x34f   :  { %v3017_v19 = vpop.f32.mrf.mxu3  ;;  %v2689_v26 = vadd.f32 %v2688_v15, %v2360_v42  ;;  %v2362_v28 = vpop.f32.mrf.mxu1  ;;  %v4228_v42 = vld [vmem:[%s7081_s0 + $0x680] sm:$0xf] }
 0x350   :  { %v2363_v16 = vadd.f32 %v2362_v28, %v2033_v53 }
 0x351   :  { %v6441_v38 = vadd.f32 %v3017_v19, %v2689_v26  ;;  %2072 = vmatmul.bf16.gmra.mxu0 %v4213_v23  ;;  %v4229_v19 = vor.u32 %v4756_v35, %v4228_v42  ;;  %v4233_v23 = vor.u32 %v4754_v63, %v4230_v48  ;;  %v4760_v35 = vld [vmem:[%s7081_s0 + $0x6ac] sm:$0xf0]  ;;  %v4758_v63 = vld [vmem:[%s7081_s0 + $0x6a4] sm:$0xf]  ;;  %v4246_v48 = vld [vmem:[%s7081_s0 + $0x6b0] sm:$0xf0] }
 0x352   :  { %2401 = vmatmul.bf16.gmra.mxu1 %v4217_v25 }
 0x353   :  { %7173 = vst [vmem:[#allocation49_spill] sm:$0xff] %v6441_v38  ;;  %2730 = vmatmul.bf16.gmra.mxu2 %v4221_v54  ;;  %v4241_v54 = vor.u32 %v4755_v56, %v4238_v17  ;;  %v4254_v56 = vld [vmem:[%s7081_s0 + $0x6b8] sm:$0xf0] }
 0x354   :  { %3059 = vmatmul.bf16.gmra.mxu3 %v4225_v33 }
 0x356   :  { %v2691_v4 = vpop.f32.mrf.mxu2  ;;  %v2035_v34 = vpop.f32.mrf.mxu0 }
 0x357   :  { %v3020_v41 = vpop.f32.mrf.mxu3  ;;  %v2692_v14 = vadd.f32 %v2691_v4, %v2363_v16  ;;  %v2364_v51 = vpop.f32.mrf.mxu1 }
 0x358   :  { %v2365_v12 = vadd.f32 %v2364_v51, %v2035_v34  ;;  %v4236_v51 = vld [vmem:[%s7081_s0 + $0x688] sm:$0xf] }
 0x359   :  { %v6443_v44 = vadd.f32 %v3020_v41, %v2692_v14  ;;  %v4237_v28 = vor.u32 %v4757_v20, %v4236_v51  ;;  %v4761_v51 = vld [vmem:[%s7081_s0 + $0x6b4] sm:$0xf0]  ;;  %v4759_v20 = vld [vmem:[%s7081_s0 + $0x6ac] sm:$0xf] }
 0x35b   :  { %7174 = vst [vmem:[#allocation50_spill] sm:$0xff] %v6443_v44 }
 0x35e   :  { %v2693_v50 = vpop.f32.mrf.mxu2  ;;  %v2038_v26 = vpop.f32.mrf.mxu0 }
 0x35f   :  { %v3022_v15 = vpop.f32.mrf.mxu3  ;;  %v2694_v25 = vadd.f32 %v2693_v50, %v2365_v12  ;;  %v2367_v53 = vpop.f32.mrf.mxu1  ;;  %v4244_v12 = vld [vmem:[%s7081_s0 + $0x6a0] sm:$0xf] }
 0x360   :  { %v2368_v33 = vadd.f32 %v2367_v53, %v2038_v26 }
 0x361   :  { %v6469_v16 = vadd.f32 %v3022_v15, %v2694_v25  ;;  %2077 = vmatmul.bf16.gmra.mxu0 %v4229_v19  ;;  %v4245_v15 = vor.u32 %v4760_v35, %v4244_v12  ;;  %v4249_v19 = vor.u32 %v4758_v63, %v4246_v48  ;;  %v4764_v35 = vld [vmem:[%s7081_s0 + $0x6cc] sm:$0xf0]  ;;  %v4762_v63 = vld [vmem:[%s7081_s0 + $0x6c4] sm:$0xf]  ;;  %v4262_v48 = vld [vmem:[%s7081_s0 + $0x6d0] sm:$0xf0] }
 0x362   :  { %2406 = vmatmul.bf16.gmra.mxu1 %v4233_v23 }
 0x363   :  { %7175 = vst [vmem:[#allocation51_spill] sm:$0xff] %v6469_v16  ;;  %2735 = vmatmul.bf16.gmra.mxu2 %v4237_v28  ;;  %v4257_v28 = vor.u32 %v4759_v20, %v4254_v56  ;;  %v4270_v20 = vld [vmem:[%s7081_s0 + $0x6d8] sm:$0xf0] }
 0x364   :  { %3064 = vmatmul.bf16.gmra.mxu3 %v4241_v54 }
 0x366   :  { %v2696_v4 = vpop.f32.mrf.mxu2  ;;  %v2040_v34 = vpop.f32.mrf.mxu0 }
 0x367   :  { %v3025_v41 = vpop.f32.mrf.mxu3  ;;  %v2697_v14 = vadd.f32 %v2696_v4, %v2368_v33  ;;  %v2369_v44 = vpop.f32.mrf.mxu1 }
 0x368   :  { %v2370_v38 = vadd.f32 %v2369_v44, %v2040_v34  ;;  %v4252_v44 = vld [vmem:[%s7081_s0 + $0x6a8] sm:$0xf] }
 0x369   :  { %v6471_v42 = vadd.f32 %v3025_v41, %v2697_v14  ;;  %v4253_v53 = vor.u32 %v4761_v51, %v4252_v44  ;;  %v4765_v44 = vld [vmem:[%s7081_s0 + $0x6d4] sm:$0xf0]  ;;  %v4763_v51 = vld [vmem:[%s7081_s0 + $0x6cc] sm:$0xf] }
 0x36b   :  { %7176 = vst [vmem:[#allocation52_spill] sm:$0xff] %v6471_v42 }
 0x36e   :  { %v2698_v17 = vpop.f32.mrf.mxu2  ;;  %v2043_v25 = vpop.f32.mrf.mxu0 }
 0x36f   :  { %v3027_v50 = vpop.f32.mrf.mxu3  ;;  %v2699_v23 = vadd.f32 %v2698_v17, %v2370_v38  ;;  %v2372_v26 = vpop.f32.mrf.mxu1  ;;  %v4260_v38 = vld [vmem:[%s7081_s0 + $0x6c0] sm:$0xf] }
 0x370   :  { %v2373_v54 = vadd.f32 %v2372_v26, %v2043_v25 }
 0x371   :  { %v6497_v33 = vadd.f32 %v3027_v50, %v2699_v23  ;;  %2082 = vmatmul.bf16.gmra.mxu0 %v4245_v15  ;;  %v4261_v50 = vor.u32 %v4764_v35, %v4260_v38  ;;  %v4265_v15 = vor.u32 %v4762_v63, %v4262_v48  ;;  %v4768_v35 = vld [vmem:[%s7081_s0 + $0x6ec] sm:$0xf0]  ;;  %v4766_v63 = vld [vmem:[%s7081_s0 + $0x6e4] sm:$0xf]  ;;  %v4278_v48 = vld [vmem:[%s7081_s0 + $0x6f0] sm:$0xf0] }
 0x372   :  { %2411 = vmatmul.bf16.gmra.mxu1 %v4249_v19 }
 0x373   :  { %7177 = vst [vmem:[#allocation53_spill] sm:$0xff] %v6497_v33  ;;  %2740 = vmatmul.bf16.gmra.mxu2 %v4253_v53  ;;  %v4273_v53 = vor.u32 %v4763_v51, %v4270_v20  ;;  %v4286_v51 = vld [vmem:[%s7081_s0 + $0x6f8] sm:$0xf0] }
 0x374   :  { %3069 = vmatmul.bf16.gmra.mxu3 %v4257_v28 }
 0x376   :  { %v2701_v4 = vpop.f32.mrf.mxu2  ;;  %v2045_v34 = vpop.f32.mrf.mxu0 }
 0x377   :  { %v3030_v41 = vpop.f32.mrf.mxu3  ;;  %v2702_v14 = vadd.f32 %v2701_v4, %v2373_v54  ;;  %v2374_v42 = vpop.f32.mrf.mxu1 }
 0x378   :  { %v2375_v16 = vadd.f32 %v2374_v42, %v2045_v34  ;;  %v4268_v42 = vld [vmem:[%s7081_s0 + $0x6c8] sm:$0xf] }
 0x379   :  { %v6499_v12 = vadd.f32 %v3030_v41, %v2702_v14  ;;  %v4269_v26 = vor.u32 %v4765_v44, %v4268_v42  ;;  %v4769_v42 = vld [vmem:[%s7081_s0 + $0x6f4] sm:$0xf0]  ;;  %v4767_v44 = vld [vmem:[%s7081_s0 + $0x6ec] sm:$0xf] }
 0x37b   :  { %7178 = vst [vmem:[#allocation54_spill] sm:$0xff] %v6499_v12 }
 0x37e   :  { %v2703_v56 = vpop.f32.mrf.mxu2  ;;  %v2048_v23 = vpop.f32.mrf.mxu0 }
 0x37f   :  { %v3032_v17 = vpop.f32.mrf.mxu3  ;;  %v2704_v19 = vadd.f32 %v2703_v56, %v2375_v16  ;;  %v2377_v25 = vpop.f32.mrf.mxu1  ;;  %v4276_v16 = vld [vmem:[%s7081_s0 + $0x6e0] sm:$0xf] }
 0x380   :  { %v2378_v28 = vadd.f32 %v2377_v25, %v2048_v23 }
 0x381   :  { %v6525_v54 = vadd.f32 %v3032_v17, %v2704_v19  ;;  %2087 = vmatmul.bf16.gmra.mxu0 %v4261_v50  ;;  %v4277_v17 = vor.u32 %v4768_v35, %v4276_v16  ;;  %v4281_v50 = vor.u32 %v4766_v63, %v4278_v48  ;;  %v4772_v35 = vld [vmem:[%s7081_s0 + $0x70c] sm:$0xf0]  ;;  %v4770_v63 = vld [vmem:[%s7081_s0 + $0x704] sm:$0xf]  ;;  %v4294_v48 = vld [vmem:[%s7081_s0 + $0x710] sm:$0xf0] }
 0x382   :  { %2416 = vmatmul.bf16.gmra.mxu1 %v4265_v15 }
 0x383   :  { %7179 = vst [vmem:[#allocation55_spill] sm:$0xff] %v6525_v54  ;;  %2745 = vmatmul.bf16.gmra.mxu2 %v4269_v26  ;;  %v4289_v26 = vor.u32 %v4767_v44, %v4286_v51  ;;  %v4302_v44 = vld [vmem:[%s7081_s0 + $0x718] sm:$0xf0] }
 0x384   :  { %3074 = vmatmul.bf16.gmra.mxu3 %v4273_v53 }
 0x386   :  { %v2706_v4 = vpop.f32.mrf.mxu2  ;;  %v2050_v34 = vpop.f32.mrf.mxu0 }
 0x387   :  { %v3035_v41 = vpop.f32.mrf.mxu3  ;;  %v2707_v14 = vadd.f32 %v2706_v4, %v2378_v28  ;;  %v2379_v12 = vpop.f32.mrf.mxu1 }
 0x388   :  { %v2380_v33 = vadd.f32 %v2379_v12, %v2050_v34  ;;  %v4284_v12 = vld [vmem:[%s7081_s0 + $0x6e8] sm:$0xf] }
 0x389   :  { %v6527_v38 = vadd.f32 %v3035_v41, %v2707_v14  ;;  %v4285_v25 = vor.u32 %v4769_v42, %v4284_v12  ;;  %v4773_v12 = vld [vmem:[%s7081_s0 + $0x714] sm:$0xf0]  ;;  %v4771_v42 = vld [vmem:[%s7081_s0 + $0x70c] sm:$0xf] }
 0x38b   :  { %7180 = vst [vmem:[#allocation56_spill] sm:$0xff] %v6527_v38 }
 0x38e   :  { %v2708_v20 = vpop.f32.mrf.mxu2  ;;  %v2053_v19 = vpop.f32.mrf.mxu0 }
 0x38f   :  { %v3037_v56 = vpop.f32.mrf.mxu3  ;;  %v2709_v15 = vadd.f32 %v2708_v20, %v2380_v33  ;;  %v2382_v23 = vpop.f32.mrf.mxu1  ;;  %v4292_v33 = vld [vmem:[%s7081_s0 + $0x700] sm:$0xf] }
 0x390   :  { %v2383_v53 = vadd.f32 %v2382_v23, %v2053_v19 }
 0x391   :  { %v6553_v28 = vadd.f32 %v3037_v56, %v2709_v15  ;;  %2092 = vmatmul.bf16.gmra.mxu0 %v4277_v17  ;;  %v4293_v56 = vor.u32 %v4772_v35, %v4292_v33  ;;  %v4297_v17 = vor.u32 %v4770_v63, %v4294_v48  ;;  %v4308_v33 = vld [vmem:[%s7081_s0 + $0x720] sm:$0xf]  ;;  %v4776_v35 = vld [vmem:[%s7081_s0 + $0x72c] sm:$0xf0]  ;;  %v4774_v48 = vld [vmem:[%s7081_s0 + $0x724] sm:$0xf] }
 0x392   :  { %2421 = vmatmul.bf16.gmra.mxu1 %v4281_v50 }
 0x393   :  { %7181 = vst [vmem:[#allocation57_spill] sm:$0xff] %v6553_v28  ;;  %2750 = vmatmul.bf16.gmra.mxu2 %v4285_v25  ;;  %v4305_v25 = vor.u32 %v4771_v42, %v4302_v44  ;;  %v4777_v42 = vld [vmem:[%s7081_s0 + $0x734] sm:$0xf0]  ;;  %v7183_v44 = vmax.f32 %v5175_v21, %v5623_v3 }
 0x394   :  { %3079 = vmatmul.bf16.gmra.mxu3 %v4289_v26 }
 0x396   :  { %v2711_v4 = vpop.f32.mrf.mxu2  ;;  %v2055_v34 = vpop.f32.mrf.mxu0 }
 0x397   :  { %v3040_v41 = vpop.f32.mrf.mxu3  ;;  %v2712_v14 = vadd.f32 %v2711_v4, %v2383_v53  ;;  %v2384_v38 = vpop.f32.mrf.mxu1 }
 0x398   :  { %v2385_v54 = vadd.f32 %v2384_v38, %v2055_v34  ;;  %v4300_v38 = vld [vmem:[%s7081_s0 + $0x708] sm:$0xf] }
 0x399   :  { %v6555_v16 = vadd.f32 %v3040_v41, %v2712_v14  ;;  %v4301_v23 = vor.u32 %v4773_v12, %v4300_v38  ;;  %v4310_v38 = vld [vmem:[%s7081_s0 + $0x730] sm:$0xf0]  ;;  %v4316_v12 = vld [vmem:[%s7081_s0 + $0x728] sm:$0xf] }
 0x39b   :  { %7182 = vst [vmem:[#allocation58_spill] sm:$0xff] %v6555_v16 }
 0x39e   :  { %v2713_v51 = vpop.f32.mrf.mxu2  ;;  %v2058_v15 = vpop.f32.mrf.mxu0 }
 0x39f   :  { %v3042_v20 = vpop.f32.mrf.mxu3  ;;  %v2714_v50 = vadd.f32 %v2713_v51, %v2385_v54  ;;  %v2387_v19 = vpop.f32.mrf.mxu1  ;;  %v6586_v54 = vld [vmem:[%s7082_s2] ss:$0 sm:$0xff] }
 0x3a0   :  { %v2388_v53 = vadd.f32 %v2387_v19, %v2058_v15  ;;  %v4309_v15 = vor.u32 %v4776_v35, %v4308_v33  ;;  %v4313_v19 = vor.u32 %v4774_v48, %v4310_v38  ;;  %v7184_v33 = vmax.f32 %v5201_v40, %v5651_v43  ;;  %v4324_v40 = vld [vmem:[%s7081_s0 + $0x740] sm:$0xf]  ;;  %v4780_v43 = vld [vmem:[%s7081_s0 + $0x74c] sm:$0xf0] }
 0x3a1   :  { %v6581_v26 = vadd.f32 %v3042_v20, %v2714_v50  ;;  %2097 = vmatmul.bf16.gmra.mxu0 %v4293_v56  ;;  %v6619_v20 = vld [vmem:[%s7083_s3] ss:$0 sm:$0xff] }
 0x3a2   :  { %2426 = vmatmul.bf16.gmra.mxu1 %v4297_v17 }
 0x3a3   :  { %2755 = vmatmul.bf16.gmra.mxu2 %v4301_v23 }
 0x3a4   :  { %3084 = vmatmul.bf16.gmra.mxu3 %v4305_v25 }
 0x3a6   :  { %v2716_v4 = vpop.f32.mrf.mxu2  ;;  %v2060_v34 = vpop.f32.mrf.mxu0 }
 0x3a7   :  { %v3045_v41 = vpop.f32.mrf.mxu3  ;;  %v2717_v14 = vadd.f32 %v2716_v4, %v2388_v53  ;;  %v2389_v16 = vpop.f32.mrf.mxu1 }
 0x3a8   :  { %v2390_v56 = vadd.f32 %v2389_v16, %v2060_v34 }
 0x3a9   :  { %v3046_v28 = vadd.f32 %v3045_v41, %v2717_v14  ;;  %v4317_v41 = vor.u32 %v4777_v42, %v4316_v12 }
 0x3ab   :  { %v3157_v63 = vmax.f32 %v6135_v46, %v3046_v28  ;;  %v4775_v46 = vld [vmem:[%s7081_s0 + $0x72c] sm:$0xf]  ;;  %v4318_v28 = vld [vmem:[%s7081_s0 + $0x738] sm:$0xf0] }
 0x3ac   :  { %v4321_v14 = vor.u32 %v4775_v46, %v4318_v28 }
 0x3ad   :  { %v3189_v51 = vmax.f32 %v7183_v44, %v3157_v63 }
 0x3ae   :  { %v2718_v17 = vpop.f32.mrf.mxu2  ;;  %v2063_v53 = vpop.f32.mrf.mxu0 }
 0x3af   :  { %v3047_v50 = vpop.f32.mrf.mxu3  ;;  %v3225_v23 = vmul.f32 %v6586_v54, %v3189_v51  ;;  %v2719_v25 = vadd.f32 %v2718_v17, %v2390_v56  ;;  %v2392_v4 = vpop.f32.mrf.mxu1  ;;  %v4778_v56 = vld [vmem:[%s7081_s0 + $0x744] sm:$0xf] }
 0x3b0   :  { %v2393_v16 = vadd.f32 %v2392_v4, %v2063_v53  ;;  %v7185_v4 = vmax.f32 %v5203_v47, %v5655_v59 }
 0x3b1   :  { %v3261_v21 = vadd.f32 %v6619_v20, %v3225_v23  ;;  %v3048_v3 = vadd.f32 %v3047_v50, %v2719_v25  ;;  %2102 = vmatmul.bf16.gmra.mxu0 %v4309_v15  ;;  %v4326_v15 = vld [vmem:[%s7081_s0 + $0x750] sm:$0xf0]  ;;  %v4781_v23 = vld [vmem:[%s7081_s0 + $0x754] sm:$0xf0]  ;;  %v4779_v25 = vld [vmem:[%s7081_s0 + $0x74c] sm:$0xf] }
 0x3b2   :  { %2431 = vmatmul.bf16.gmra.mxu1 %v4313_v19  ;;  %v4332_v19 = vld [vmem:[%s7081_s0 + $0x748] sm:$0xf] }
 0x3b3   :  { %v3293_v63 = vmax.f32 %v3261_v21, 0.0  ;;  %v3158_v44 = vmax.f32 %v6161_v55, %v3048_v3  ;;  %2760 = vmatmul.bf16.gmra.mxu2 %v4317_v41 }
 0x3b4   :  { %3089 = vmatmul.bf16.gmra.mxu3 %v4321_v14 }
 0x3b5   :  { %v3325_v34 = vpack.c.bf16 %v3293_v63, %v3293_v63  ;;  %v3190_v35 = vmax.f32 %v7184_v33, %v3158_v44  ;;  %v4325_v63 = vor.u32 %v4780_v43, %v4324_v40  ;;  %v4329_v44 = vor.u32 %v4778_v56, %v4326_v15 }
 0x3b6   :  { %v2721_v48 = vpop.f32.mrf.mxu2  ;;  %v2065_v55 = vpop.f32.mrf.mxu0 }
 0x3b7   :  { %v3050_v38 = vpop.f32.mrf.mxu3  ;;  %3358 = vst.msk [vmem:[%s7084_s4] sm:$0xf] %vm3357_vm0, %v3325_v34  ;;  %v3226_v12 = vmul.f32 %v6586_v54, %v3190_v35  ;;  %v2722_v42 = vadd.f32 %v2721_v48, %v2393_v16  ;;  %v2394_v46 = vpop.f32.mrf.mxu1  ;;  %v4333_v48 = vor.u32 %v4781_v23, %v4332_v19  ;;  %v4782_v23 = vld [vmem:[%s7081_s0 + $0x764] sm:$0xf] }
 0x3b8   :  { %v2395_v14 = vadd.f32 %v2394_v46, %v2065_v55 }
 0x3b9   :  { %v3262_v28 = vadd.f32 %v6619_v20, %v3226_v12  ;;  %v3051_v51 = vadd.f32 %v3050_v38, %v2722_v42 }
 0x3bb   :  { %v3294_v17 = vmax.f32 %v3262_v28, 0.0  ;;  %v3159_v50 = vmax.f32 %v6163_v37, %v3051_v51  ;;  %v4334_v37 = vld [vmem:[%s7081_s0 + $0x758] sm:$0xf0]  ;;  %v7186_v28 = vmax.f32 %v5229_v2, %v5683_v39  ;;  %v4340_v2 = vld [vmem:[%s7081_s0 + $0x760] sm:$0xf] }
 0x3bc   :  { %v4337_v38 = vor.u32 %v4779_v25, %v4334_v37  ;;  %v4784_v39 = vld [vmem:[%s7081_s0 + $0x76c] sm:$0xf0] }
 0x3bd   :  { %v3326_v53 = vpack.c.bf16 %v3294_v17, %v3294_v17  ;;  %v3191_v41 = vmax.f32 %v7185_v4, %v3159_v50  ;;  %v4348_v4 = vld [vmem:[%s7081_s0 + $0x768] sm:$0xf] }
 0x3be   :  { %v2723_v21 = vpop.f32.mrf.mxu2  ;;  %v2068_v33 = vpop.f32.mrf.mxu0 }
 0x3bf   :  { %v3052_v3 = vpop.f32.mrf.mxu3  ;;  %3359 = vst.msk [vmem:[%s7084_s4 + $0x4] sm:$0xf] %vm3357_vm0, %v3326_v53  ;;  %v3227_v16 = vmul.f32 %v6586_v54, %v3191_v41  ;;  %v2724_v34 = vadd.f32 %v2723_v21, %v2395_v14  ;;  %v2397_v35 = vpop.f32.mrf.mxu1  ;;  %v4342_v53 = vld [vmem:[%s7081_s0 + $0x770] sm:$0xf0]  ;;  %v4785_v41 = vld [vmem:[%s7081_s0 + $0x774] sm:$0xf0] }
 0x3c0   :  { %v2398_v55 = vadd.f32 %v2397_v35, %v2068_v33  ;;  %v4783_v14 = vld [vmem:[%s7081_s0 + $0x76c] sm:$0xf]  ;;  %v4341_v33 = vor.u32 %v4784_v39, %v4340_v2  ;;  %v4345_v35 = vor.u32 %v4782_v23, %v4342_v53  ;;  %v4786_v39 = vld [vmem:[%s7081_s0 + $0x784] sm:$0xf]  ;;  %v4364_v53 = vld [vmem:[%s7081_s0 + $0x788] sm:$0xf] }
 0x3c1   :  { %v3263_v47 = vadd.f32 %v6619_v20, %v3227_v16  ;;  %v3053_v59 = vadd.f32 %v3052_v3, %v2724_v34  ;;  %2107 = vmatmul.bf16.gmra.mxu0 %v4325_v63  ;;  %v7187_v3 = vmax.f32 %v5231_v9, %v5687_v62 }
 0x3c2   :  { %2436 = vmatmul.bf16.gmra.mxu1 %v4329_v44 }
 0x3c3   :  { %v3295_v12 = vmax.f32 %v3263_v47, 0.0  ;;  %v3160_v42 = vmax.f32 %v6189_v32, %v3053_v59  ;;  %2765 = vmatmul.bf16.gmra.mxu2 %v4333_v48 }
 0x3c4   :  { %3094 = vmatmul.bf16.gmra.mxu3 %v4337_v38 }
 0x3c5   :  { %v3327_v46 = vpack.c.bf16 %v3295_v12, %v3295_v12  ;;  %v3192_v51 = vmax.f32 %v7186_v28, %v3160_v42  ;;  %v4349_v12 = vor.u32 %v4785_v41, %v4348_v4  ;;  %v4789_v4 = vld [vmem:[%s7081_s0 + $0x794] sm:$0xf0]  ;;  %v4787_v41 = vld [vmem:[%s7081_s0 + $0x78c] sm:$0xf] }
 0x3c6   :  { %v2726_v40 = vpop.f32.mrf.mxu2  ;;  %v2070_v50 = vpop.f32.mrf.mxu0 }
 0x3c7   :  { %v3055_v43 = vpop.f32.mrf.mxu3  ;;  %3360 = vst.msk [vmem:[%s7084_s4 + $0x8] sm:$0xf] %vm3357_vm0, %v3327_v46  ;;  %v3228_v56 = vmul.f32 %v6586_v54, %v3192_v51  ;;  %v2727_v17 = vadd.f32 %v2726_v40, %v2398_v55  ;;  %v2399_v32 = vpop.f32.mrf.mxu1  ;;  %v7188_v40 = vmax.f32 %v5257_v29, %v5715_v49  ;;  %v4356_v29 = vld [vmem:[%s7081_s0 + $0x780] sm:$0xf]  ;;  %v4788_v49 = vld [vmem:[%s7081_s0 + $0x78c] sm:$0xf0] }
 0x3c8   :  { %v2400_v44 = vadd.f32 %v2399_v32, %v2070_v50 }
 0x3c9   :  { %v3264_v15 = vadd.f32 %v6619_v20, %v3228_v56  ;;  %v3056_v19 = vadd.f32 %v3055_v43, %v2727_v17 }
 0x3cb   :  { %v3296_v25 = vmax.f32 %v3264_v15, 0.0  ;;  %v3161_v37 = vmax.f32 %v6191_v58, %v3056_v19  ;;  %v4350_v58 = vld [vmem:[%s7081_s0 + $0x778] sm:$0xf0] }
 0x3cc   :  { %v4353_v42 = vor.u32 %v4783_v14, %v4350_v58  ;;  %v7189_v58 = vmax.f32 %v5259_v36, %v5719_v11 }
 0x3cd   :  { %v3328_v21 = vpack.c.bf16 %v3296_v25, %v3296_v25  ;;  %v3193_v63 = vmax.f32 %v7187_v3, %v3161_v37  ;;  %v4358_v37 = vld [vmem:[%s7081_s0 + $0x790] sm:$0xf0] }
 0x3ce   :  { %v2728_v16 = vpop.f32.mrf.mxu2  ;;  %v2073_v47 = vpop.f32.mrf.mxu0 }
 0x3cf   :  { %v3057_v34 = vpop.f32.mrf.mxu3  ;;  %3361 = vst.msk [vmem:[%s7084_s4 + $0xc] sm:$0xf] %vm3357_vm0, %v3328_v21  ;;  %v3229_v48 = vmul.f32 %v6586_v54, %v3193_v63  ;;  %v2729_v38 = vadd.f32 %v2728_v16, %v2400_v44  ;;  %v2402_v59 = vpop.f32.mrf.mxu1  ;;  %v4357_v16 = vor.u32 %v4788_v49, %v4356_v29  ;;  %v4793_v29 = vld [vmem:[%s7081_s0 + $0x7b4] sm:$0xf0]  ;;  %v4791_v49 = vld [vmem:[%s7081_s0 + $0x7ac] sm:$0xf] }
 0x3d0   :  { %v2403_v28 = vadd.f32 %v2402_v59, %v2073_v47  ;;  %v4365_v47 = vor.u32 %v4789_v4, %v4364_v53 }
 0x3d1   :  { %v3265_v9 = vadd.f32 %v6619_v20, %v3229_v48  ;;  %v3058_v62 = vadd.f32 %v3057_v34, %v2729_v38  ;;  %2112 = vmatmul.bf16.gmra.mxu0 %v4341_v33  ;;  %v4361_v34 = vor.u32 %v4786_v39, %v4358_v37 }
 0x3d2   :  { %2441 = vmatmul.bf16.gmra.mxu1 %v4345_v35 }
 0x3d3   :  { %v3297_v55 = vmax.f32 %v3265_v9, 0.0  ;;  %v3162_v46 = vmax.f32 %v6217_v61, %v3058_v62  ;;  %2770 = vmatmul.bf16.gmra.mxu2 %v4349_v12 }
 0x3d4   :  { %3099 = vmatmul.bf16.gmra.mxu3 %v4353_v42 }
 0x3d5   :  { %v3329_v51 = vpack.c.bf16 %v3297_v55, %v3297_v55  ;;  %v3194_v43 = vmax.f32 %v7188_v40, %v3162_v46  ;;  %v7190_v55 = vmax.f32 %v5285_v57, %v5747_v5  ;;  %v4372_v57 = vld [vmem:[%s7081_s0 + $0x7a0] sm:$0xf]  ;;  %v4792_v5 = vld [vmem:[%s7081_s0 + $0x7ac] sm:$0xf0] }
 0x3d6   :  { %v2731_v56 = vpop.f32.mrf.mxu2  ;;  %v2075_v15 = vpop.f32.mrf.mxu0 }
 0x3d7   :  { %v3060_v17 = vpop.f32.mrf.mxu3  ;;  %3362 = vst.msk [vmem:[%s7084_s4 + $0x10] sm:$0xf] %vm3357_vm0, %v3329_v51  ;;  %v3230_v50 = vmul.f32 %v6586_v54, %v3194_v43  ;;  %v2732_v32 = vadd.f32 %v2731_v56, %v2403_v28  ;;  %v2404_v61 = vpop.f32.mrf.mxu1 }
 0x3d8   :  { %v2405_v3 = vadd.f32 %v2404_v61, %v2075_v15 }
 0x3d9   :  { %v3266_v19 = vadd.f32 %v6619_v20, %v3230_v50  ;;  %v3061_v2 = vadd.f32 %v3060_v17, %v2732_v32  ;;  %v4790_v32 = vld [vmem:[%s7081_s0 + $0x7a4] sm:$0xf] }
 0x3db   :  { %v3298_v23 = vmax.f32 %v3266_v19, 0.0  ;;  %v3163_v25 = vmax.f32 %v6219_v7, %v3061_v2  ;;  %v4366_v7 = vld [vmem:[%s7081_s0 + $0x798] sm:$0xf0]  ;;  %v4374_v19 = vld [vmem:[%s7081_s0 + $0x7b0] sm:$0xf0] }
 0x3dc   :  { %v4369_v59 = vor.u32 %v4787_v41, %v4366_v7  ;;  %v4380_v2 = vld [vmem:[%s7081_s0 + $0x7a8] sm:$0xf]  ;;  %v4373_v7 = vor.u32 %v4792_v5, %v4372_v57 }
 0x3dd   :  { %v3330_v14 = vpack.c.bf16 %v3298_v23, %v3298_v23  ;;  %v3195_v21 = vmax.f32 %v7189_v58, %v3163_v25  ;;  %v7191_v23 = vld [vmem:[#allocation22_spill] sm:$0xff]  ;;  %v7195_v57 = vld [vmem:[#allocation23_spill] sm:$0xff] }
 0x3de   :  { %v2733_v63 = vpop.f32.mrf.mxu2  ;;  %v2078_v48 = vpop.f32.mrf.mxu0  ;;  %v7192_v25 = vmax.f32 %v5287_v0, %v7191_v23 }
 0x3df   :  { %v3062_v44 = vpop.f32.mrf.mxu3  ;;  %3363 = vst.msk [vmem:[%s7084_s4 + $0x14] sm:$0xf] %vm3357_vm0, %v3330_v14  ;;  %v3231_v33 = vmul.f32 %v6586_v54, %v3195_v21  ;;  %v2734_v35 = vadd.f32 %v2733_v63, %v2405_v3  ;;  %v2407_v38 = vpop.f32.mrf.mxu1  ;;  %v4377_v14 = vor.u32 %v4790_v32, %v4374_v19 }
 0x3e0   :  { %v2408_v9 = vadd.f32 %v2407_v38, %v2078_v48 }
 0x3e1   :  { %v3267_v36 = vadd.f32 %v6619_v20, %v3231_v33  ;;  %v3063_v11 = vadd.f32 %v3062_v44, %v2734_v35  ;;  %2117 = vmatmul.bf16.gmra.mxu0 %v4357_v16  ;;  %v4381_v44 = vor.u32 %v4793_v29, %v4380_v2 }
 0x3e2   :  { %2446 = vmatmul.bf16.gmra.mxu1 %v4361_v34 }
 0x3e3   :  { %v3299_v12 = vmax.f32 %v3267_v36, 0.0  ;;  %v3164_v42 = vmax.f32 %v6245_v27, %v3063_v11  ;;  %2775 = vmatmul.bf16.gmra.mxu2 %v4365_v47  ;;  %v7193_v47 = vmax.f32 %v5313_v22, %v5779_v13  ;;  %v4388_v22 = vld [vmem:[%s7081_s0 + $0x7c0] sm:$0xf]  ;;  %v4796_v13 = vld [vmem:[%s7081_s0 + $0x7cc] sm:$0xf0] }
 0x3e4   :  { %3104 = vmatmul.bf16.gmra.mxu3 %v4369_v59  ;;  %v4389_v2 = vor.u32 %v4796_v13, %v4388_v22 }
 0x3e5   :  { %v3331_v62 = vpack.c.bf16 %v3299_v12, %v3299_v12  ;;  %v3196_v46 = vmax.f32 %v7190_v55, %v3164_v42 }
 0x3e6   :  { %v2736_v28 = vpop.f32.mrf.mxu2  ;;  %v2080_v56 = vpop.f32.mrf.mxu0 }
 0x3e7   :  { %v3065_v51 = vpop.f32.mrf.mxu3  ;;  %3364 = vst.msk [vmem:[%s7084_s4 + $0x18] sm:$0xf] %vm3357_vm0, %v3331_v62  ;;  %v3232_v40 = vmul.f32 %v6586_v54, %v3196_v46  ;;  %v2737_v43 = vadd.f32 %v2736_v28, %v2408_v9  ;;  %v2409_v27 = vpop.f32.mrf.mxu1  ;;  %v4794_v46 = vld [vmem:[%s7081_s0 + $0x7c4] sm:$0xf] }
 0x3e8   :  { %v2410_v53 = vadd.f32 %v2409_v27, %v2080_v56  ;;  %v4797_v56 = vld [vmem:[%s7081_s0 + $0x7d4] sm:$0xf0]  ;;  %v4795_v27 = vld [vmem:[%s7081_s0 + $0x7cc] sm:$0xf] }
 0x3e9   :  { %v3268_v17 = vadd.f32 %v6619_v20, %v3232_v40  ;;  %v3066_v50 = vadd.f32 %v3065_v51, %v2737_v43  ;;  %v4390_v40 = vld [vmem:[%s7081_s0 + $0x7d0] sm:$0xf0]  ;;  %v4396_v43 = vld [vmem:[%s7081_s0 + $0x7c8] sm:$0xf] }
 0x3ea   :  { %v4393_v29 = vor.u32 %v4794_v46, %v4390_v40 }
 0x3eb   :  { %v3300_v15 = vmax.f32 %v3268_v17, 0.0  ;;  %v3165_v61 = vmax.f32 %v6247_v24, %v3066_v50  ;;  %v4382_v24 = vld [vmem:[%s7081_s0 + $0x7b8] sm:$0xf0]  ;;  %v7194_v50 = vld [vmem:[#allocation2_spill] sm:$0xff] }
 0x3ec   :  { %v4385_v16 = vor.u32 %v4791_v49, %v4382_v24  ;;  %v7196_v5 = vmax.f32 %v7194_v50, %v7195_v57 }
 0x3ed   :  { %v3332_v39 = vpack.c.bf16 %v3300_v15, %v3300_v15  ;;  %v3197_v37 = vmax.f32 %v7192_v25, %v3165_v61  ;;  %v4397_v25 = vor.u32 %v4797_v56, %v4396_v43 }
 0x3ee   :  { %v2738_v4 = vpop.f32.mrf.mxu2  ;;  %v2083_v3 = vpop.f32.mrf.mxu0 }
 0x3ef   :  { %v3067_v41 = vpop.f32.mrf.mxu3  ;;  %3365 = vst.msk [vmem:[%s7084_s4 + $0x1c] sm:$0xf] %vm3357_vm0, %v3332_v39  ;;  %v3233_v58 = vmul.f32 %v6586_v54, %v3197_v37  ;;  %v2739_v21 = vadd.f32 %v2738_v4, %v2410_v53  ;;  %v2412_v63 = vpop.f32.mrf.mxu1 }
 0x3f0   :  { %v2413_v48 = vadd.f32 %v2412_v63, %v2083_v3 }
 0x3f1   :  { %v3269_v0 = vadd.f32 %v6619_v20, %v3233_v58  ;;  %v3068_v34 = vadd.f32 %v3067_v41, %v2739_v21  ;;  %2122 = vmatmul.bf16.gmra.mxu0 %v4373_v7  ;;  %v7197_v21 = vmax.f32 %v5341_v52, %v5811_v8  ;;  %v4404_v52 = vld [vmem:[%s7081_s0 + $0x7e0] sm:$0xf]  ;;  %v4800_v8 = vld [vmem:[%s7081_s0 + $0x7ec] sm:$0xf0] }
 0x3f2   :  { %2451 = vmatmul.bf16.gmra.mxu1 %v4377_v14 }
 0x3f3   :  { %v3301_v33 = vmax.f32 %v3269_v0, 0.0  ;;  %v3166_v35 = vmax.f32 %v6273_v60, %v3068_v34  ;;  %2780 = vmatmul.bf16.gmra.mxu2 %v4381_v44 }
 0x3f4   :  { %3109 = vmatmul.bf16.gmra.mxu3 %v4385_v16 }
 0x3f5   :  { %v3333_v38 = vpack.c.bf16 %v3301_v33, %v3301_v33  ;;  %v3198_v59 = vmax.f32 %v7193_v47, %v3166_v35 }
 0x3f6   :  { %v2741_v36 = vpop.f32.mrf.mxu2  ;;  %v2085_v9 = vpop.f32.mrf.mxu0 }
 0x3f7   :  { %v3070_v11 = vpop.f32.mrf.mxu3  ;;  %3366 = vst.msk [vmem:[%s7084_s4 + $0x20] sm:$0xf] %vm3357_vm0, %v3333_v38  ;;  %v3234_v12 = vmul.f32 %v6586_v54, %v3198_v59  ;;  %v2742_v42 = vadd.f32 %v2741_v36, %v2413_v48  ;;  %v2414_v60 = vpop.f32.mrf.mxu1  ;;  %v4798_v48 = vld [vmem:[%s7081_s0 + $0x7e4] sm:$0xf]  ;;  %v4406_v59 = vld [vmem:[%s7081_s0 + $0x7f0] sm:$0xf0] }
 0x3f8   :  { %v2415_v15 = vadd.f32 %v2414_v60, %v2085_v9  ;;  %v4412_v36 = vld [vmem:[%s7081_s0 + $0x7e8] sm:$0xf]  ;;  %v7199_v60 = vld [vmem:[#allocation24_spill] sm:$0xff] }
 0x3f9   :  { %v3270_v62 = vadd.f32 %v6619_v20, %v3234_v12  ;;  %v3071_v55 = vadd.f32 %v3070_v11, %v2742_v42  ;;  %v4801_v11 = vld [vmem:[%s7081_s0 + $0x7f4] sm:$0xf0]  ;;  %v4799_v12 = vld [vmem:[%s7081_s0 + $0x7ec] sm:$0xf] }
 0x3fa   :  { %v7198_v9 = vld [vmem:[#allocation3_spill] sm:$0xff] }
 0x3fb   :  { %v3302_v28 = vmax.f32 %v3270_v62, 0.0  ;;  %v3167_v51 = vmax.f32 %v6275_v45, %v3071_v55  ;;  %v4398_v45 = vld [vmem:[%s7081_s0 + $0x7d8] sm:$0xf0]  ;;  %v7200_v62 = vmax.f32 %v7198_v9, %v7199_v60 }
 0x3fc   :  { %v4401_v37 = vor.u32 %v4795_v27, %v4398_v45  ;;  %v4413_v45 = vor.u32 %v4801_v11, %v4412_v36 }
 0x3fd   :  { %v3334_v17 = vpack.c.bf16 %v3302_v28, %v3302_v28  ;;  %v3199_v32 = vmax.f32 %v7196_v5, %v3167_v51  ;;  %v4405_v28 = vor.u32 %v4800_v8, %v4404_v52  ;;  %v4409_v51 = vor.u32 %v4798_v48, %v4406_v59  ;;  %v7206_v48 = vld [vmem:[#allocation5_spill] sm:$0xff] }
 0x3fe   :  { %v2743_v61 = vpop.f32.mrf.mxu2  ;;  %v2088_v39 = vpop.f32.mrf.mxu0 }
 0x3ff   :  { %v3072_v19 = vpop.f32.mrf.mxu3  ;;  %3367 = vst.msk [vmem:[%s7084_s4 + $0x24] sm:$0xf] %vm3357_vm0, %v3334_v17  ;;  %v3235_v49 = vmul.f32 %v6586_v54, %v3199_v32  ;;  %v2744_v24 = vadd.f32 %v2743_v61, %v2415_v15  ;;  %v2417_v23 = vpop.f32.mrf.mxu1 }
 0x400   :  { %v2418_v14 = vadd.f32 %v2417_v23, %v2088_v39 }
 0x401   :  { %v3271_v53 = vadd.f32 %v6619_v20, %v3235_v49  ;;  %v3073_v4 = vadd.f32 %v3072_v19, %v2744_v24  ;;  %2127 = vmatmul.bf16.gmra.mxu0 %v4389_v2  ;;  %v7201_v19 = vmax.f32 %v5369_v18, %v5843_v1  ;;  %v7202_v1 = vld [vmem:[#allocation4_spill] sm:$0xff] }
 0x402   :  { %2456 = vmatmul.bf16.gmra.mxu1 %v4393_v29 }
 0x403   :  { %v3303_v41 = vmax.f32 %v3271_v53, 0.0  ;;  %v3168_v7 = vmax.f32 %v6301_v30, %v3073_v4  ;;  %2785 = vmatmul.bf16.gmra.mxu2 %v4397_v25 }
 0x404   :  { %3114 = vmatmul.bf16.gmra.mxu3 %v4401_v37 }
 0x405   :  { %v3335_v58 = vpack.c.bf16 %v3303_v41, %v3303_v41  ;;  %v3200_v3 = vmax.f32 %v7197_v21, %v3168_v7  ;;  %v7203_v41 = vld [vmem:[#allocation25_spill] sm:$0xff] }
 0x406   :  { %v2746_v63 = vpop.f32.mrf.mxu2  ;;  %v2090_v34 = vpop.f32.mrf.mxu0  ;;  %v7204_v7 = vmax.f32 %v7202_v1, %v7203_v41 }
 0x407   :  { %v3075_v44 = vpop.f32.mrf.mxu3  ;;  %3368 = vst.msk [vmem:[%s7084_s4 + $0x28] sm:$0xf] %vm3357_vm0, %v3335_v58  ;;  %v3236_v16 = vmul.f32 %v6586_v54, %v3200_v3  ;;  %v2747_v0 = vadd.f32 %v2746_v63, %v2418_v14  ;;  %v2419_v30 = vpop.f32.mrf.mxu1 }
 0x408   :  { %v2420_v22 = vadd.f32 %v2419_v30, %v2090_v34 }
 0x409   :  { %v3272_v33 = vadd.f32 %v6619_v20, %v3236_v16  ;;  %v3076_v35 = vadd.f32 %v3075_v44, %v2747_v0 }
 0x40b   :  { %v3304_v38 = vmax.f32 %v3272_v33, 0.0  ;;  %v3169_v47 = vmax.f32 %v6303_v6, %v3076_v35  ;;  %v4414_v6 = vld [vmem:[%s7081_s0 + $0x7f8] sm:$0xf0]  ;;  %v7205_v33 = vld [vmem:[#allocation43_spill] sm:$0xff] }
 0x40c   :  { %v4417_v17 = vor.u32 %v4799_v12, %v4414_v6 }
 0x40d   :  { %v3336_v42 = vpack.c.bf16 %v3304_v38, %v3304_v38  ;;  %v3201_v55 = vmax.f32 %v7200_v62, %v3169_v47  ;;  %v7207_v38 = vld [vmem:[#allocation26_spill] sm:$0xff] }
 0x40e   :  { %v2748_v13 = vpop.f32.mrf.mxu2  ;;  %v2093_v56 = vpop.f32.mrf.mxu0  ;;  %v7208_v47 = vmax.f32 %v7206_v48, %v7207_v38 }
 0x40f   :  { %v3077_v46 = vpop.f32.mrf.mxu3  ;;  %3369 = vst.msk [vmem:[%s7084_s4 + $0x2c] sm:$0xf] %vm3357_vm0, %v3336_v42  ;;  %v3237_v40 = vmul.f32 %v6586_v54, %v3201_v55  ;;  %v2749_v43 = vadd.f32 %v2748_v13, %v2420_v22  ;;  %v2422_v27 = vpop.f32.mrf.mxu1  ;;  %v7209_v22 = vld [vmem:[#allocation44_spill] sm:$0xff] }
 0x410   :  { %v2423_v15 = vadd.f32 %v2422_v27, %v2093_v56 }
 0x411   :  { %v3273_v50 = vadd.f32 %v6619_v20, %v3237_v40  ;;  %v3078_v57 = vadd.f32 %v3077_v46, %v2749_v43  ;;  %2132 = vmatmul.bf16.gmra.mxu0 %v4405_v28  ;;  %v7210_v28 = vld [vmem:[#allocation6_spill] sm:$0xff] }
 0x412   :  { %2461 = vmatmul.bf16.gmra.mxu1 %v4409_v51  ;;  %v7211_v51 = vld [vmem:[#allocation27_spill] sm:$0xff] }
 0x413   :  { %v3305_v5 = vmax.f32 %v3273_v50, 0.0  ;;  %v3170_v32 = vmax.f32 %v6329_v10, %v3078_v57  ;;  %2790 = vmatmul.bf16.gmra.mxu2 %v4413_v45  ;;  %v7212_v40 = vmax.f32 %v7210_v28, %v7211_v51 }
 0x414   :  { %3119 = vmatmul.bf16.gmra.mxu3 %v4417_v17 }
 0x415   :  { %v3337_v61 = vpack.c.bf16 %v3305_v5, %v3305_v5  ;;  %v3202_v2 = vmax.f32 %v7201_v19, %v3170_v32  ;;  %v7213_v19 = vld [vmem:[#allocation45_spill] sm:$0xff] }
 0x416   :  { %v2751_v29 = vpop.f32.mrf.mxu2  ;;  %v2095_v23 = vpop.f32.mrf.mxu0 }
 0x417   :  { %v3080_v49 = vpop.f32.mrf.mxu3  ;;  %3370 = vst.msk [vmem:[%s7084_s4 + $0x30] sm:$0xf] %vm3357_vm0, %v3337_v61  ;;  %v3238_v24 = vmul.f32 %v6586_v54, %v3202_v2  ;;  %v2752_v39 = vadd.f32 %v2751_v29, %v2423_v15  ;;  %v2424_v10 = vpop.f32.mrf.mxu1 }
 0x418   :  { %v2425_v58 = vadd.f32 %v2424_v10, %v2095_v23 }
 0x419   :  { %v3274_v25 = vadd.f32 %v6619_v20, %v3238_v24  ;;  %v3081_v37 = vadd.f32 %v3080_v49, %v2752_v39  ;;  %v7214_v24 = vld [vmem:[#allocation7_spill] sm:$0xff]  ;;  %v7215_v39 = vld [vmem:[#allocation28_spill] sm:$0xff] }
 0x41a   :  { %v7216_v23 = vmax.f32 %v7214_v24, %v7215_v39 }
 0x41b   :  { %v3306_v53 = vmax.f32 %v3274_v25, 0.0  ;;  %v3171_v4 = vmax.f32 %v6331_v31, %v3081_v37 }
 0x41d   :  { %v3338_v18 = vpack.c.bf16 %v3306_v53, %v3306_v53  ;;  %v3203_v14 = vmax.f32 %v7204_v7, %v3171_v4 }
 0x41e   :  { %v2753_v21 = vpop.f32.mrf.mxu2  ;;  %v2098_v16 = vpop.f32.mrf.mxu0 }
 0x41f   :  { %v3082_v3 = vpop.f32.mrf.mxu3  ;;  %3371 = vst.msk [vmem:[%s7084_s4 + $0x34] sm:$0xf] %vm3357_vm0, %v3338_v18  ;;  %v3239_v63 = vmul.f32 %v6586_v54, %v3203_v14  ;;  %v2754_v44 = vadd.f32 %v2753_v21, %v2425_v58  ;;  %v2427_v0 = vpop.f32.mrf.mxu1  ;;  %v7217_v58 = vld [vmem:[#allocation46_spill] sm:$0xff] }
 0x420   :  { %v2428_v52 = vadd.f32 %v2427_v0, %v2098_v16 }
 0x421   :  { %v3275_v31 = vadd.f32 %v6619_v20, %v3239_v63  ;;  %v3083_v34 = vadd.f32 %v3082_v3, %v2754_v44  ;;  %v7218_v63 = vld [vmem:[#allocation8_spill] sm:$0xff]  ;;  %v7219_v44 = vld [vmem:[#allocation29_spill] sm:$0xff] }
 0x422   :  { %v7220_v16 = vmax.f32 %v7218_v63, %v7219_v44 }
 0x423   :  { %v3307_v30 = vmax.f32 %v3275_v31, 0.0  ;;  %v3172_v35 = vmax.f32 %v7205_v33, %v3083_v34 }
 0x425   :  { %v3339_v8 = vpack.c.bf16 %v3307_v30, %v3307_v30  ;;  %v3204_v59 = vmax.f32 %v7208_v47, %v3172_v35 }
 0x426   :  { %v2756_v36 = vpop.f32.mrf.mxu2  ;;  %v2100_v42 = vpop.f32.mrf.mxu0 }
 0x427   :  { %v3085_v11 = vpop.f32.mrf.mxu3  ;;  %3372 = vst.msk [vmem:[%s7084_s4 + $0x38] sm:$0xf] %vm3357_vm0, %v3339_v8  ;;  %v3240_v12 = vmul.f32 %v6586_v54, %v3204_v59  ;;  %v2757_v6 = vadd.f32 %v2756_v36, %v2428_v52  ;;  %v2429_v9 = vpop.f32.mrf.mxu1  ;;  %v7221_v59 = vld [vmem:[#allocation47_spill] sm:$0xff] }
 0x428   :  { %v2430_v56 = vadd.f32 %v2429_v9, %v2100_v42  ;;  %v7223_v42 = vld [vmem:[#allocation30_spill] sm:$0xff] }
 0x429   :  { %v3276_v60 = vadd.f32 %v6619_v20, %v3240_v12  ;;  %v3086_v62 = vadd.f32 %v3085_v11, %v2757_v6  ;;  %v7222_v6 = vld [vmem:[#allocation9_spill] sm:$0xff] }
 0x42a   :  { %v7224_v9 = vmax.f32 %v7222_v6, %v7223_v42 }
 0x42b   :  { %v3308_v55 = vmax.f32 %v3276_v60, 0.0  ;;  %v3173_v13 = vmax.f32 %v7209_v22, %v3086_v62 }
 0x42d   :  { %v3340_v46 = vpack.c.bf16 %v3308_v55, %v3308_v55  ;;  %v3205_v43 = vmax.f32 %v7212_v40, %v3173_v13 }
 0x42e   :  { %v2758_v27 = vpop.f32.mrf.mxu2  ;;  %v2103_v57 = vpop.f32.mrf.mxu0 }
 0x42f   :  { %v3087_v45 = vpop.f32.mrf.mxu3  ;;  %3373 = vst.msk [vmem:[%s7084_s4 + $0x3c] sm:$0xf] %vm3357_vm0, %v3340_v46  ;;  %v3241_v17 = vmul.f32 %v6586_v54, %v3205_v43  ;;  %v2759_v50 = vadd.f32 %v2758_v27, %v2430_v56  ;;  %v2432_v5 = vpop.f32.mrf.mxu1  ;;  %v7225_v56 = vld [vmem:[#allocation48_spill] sm:$0xff] }
 0x430   :  { %v2433_v29 = vadd.f32 %v2432_v5, %v2103_v57 }
 0x431   :  { %v3277_v32 = vadd.f32 %v6619_v20, %v3241_v17  ;;  %v3088_v15 = vadd.f32 %v3087_v45, %v2759_v50  ;;  %v7226_v17 = vld [vmem:[#allocation10_spill] sm:$0xff]  ;;  %v7227_v50 = vld [vmem:[#allocation31_spill] sm:$0xff] }
 0x432   :  { %v7228_v57 = vmax.f32 %v7226_v17, %v7227_v50 }
 0x433   :  { %v3309_v61 = vmax.f32 %v3277_v32, 0.0  ;;  %v3174_v2 = vmax.f32 %v7213_v19, %v3088_v15 }
 0x435   :  { %v3341_v49 = vpack.c.bf16 %v3309_v61, %v3309_v61  ;;  %v3206_v10 = vmax.f32 %v7216_v23, %v3174_v2 }
 0x436   :  { %v2761_v25 = vpop.f32.mrf.mxu2  ;;  %v2105_v18 = vpop.f32.mrf.mxu0 }
 0x437   :  { %v3090_v37 = vpop.f32.mrf.mxu3  ;;  %3374 = vst.msk [vmem:[%s7084_s4 + $0x40] sm:$0xf] %vm3357_vm0, %v3341_v49  ;;  %v3242_v53 = vmul.f32 %v6586_v54, %v3206_v10  ;;  %v2762_v4 = vadd.f32 %v2761_v25, %v2433_v29  ;;  %v2434_v1 = vpop.f32.mrf.mxu1  ;;  %v7229_v10 = vld [vmem:[#allocation49_spill] sm:$0xff] }
 0x438   :  { %v2435_v31 = vadd.f32 %v2434_v1, %v2105_v18  ;;  %v7231_v18 = vld [vmem:[#allocation32_spill] sm:$0xff] }
 0x439   :  { %v3278_v41 = vadd.f32 %v6619_v20, %v3242_v53  ;;  %v3091_v7 = vadd.f32 %v3090_v37, %v2762_v4  ;;  %v7230_v4 = vld [vmem:[#allocation11_spill] sm:$0xff] }
 0x43a   :  { %v7232_v1 = vmax.f32 %v7230_v4, %v7231_v18 }
 0x43b   :  { %v3310_v14 = vmax.f32 %v3278_v41, 0.0  ;;  %v3175_v21 = vmax.f32 %v7217_v58, %v3091_v7 }
 0x43d   :  { %v3342_v3 = vpack.c.bf16 %v3310_v14, %v3310_v14  ;;  %v3207_v0 = vmax.f32 %v7220_v16, %v3175_v21 }
 0x43e   :  { %v2763_v34 = vpop.f32.mrf.mxu2  ;;  %v2108_v52 = vpop.f32.mrf.mxu0 }
 0x43f   :  { %v3092_v30 = vpop.f32.mrf.mxu3  ;;  %3375 = vst.msk [vmem:[%s7084_s4 + $0x44] sm:$0xf] %vm3357_vm0, %v3342_v3  ;;  %v3243_v33 = vmul.f32 %v6586_v54, %v3207_v0  ;;  %v2764_v35 = vadd.f32 %v2763_v34, %v2435_v31  ;;  %v2437_v8 = vpop.f32.mrf.mxu1  ;;  %v7233_v31 = vld [vmem:[#allocation50_spill] sm:$0xff] }
 0x440   :  { %v2438_v11 = vadd.f32 %v2437_v8, %v2108_v52 }
 0x441   :  { %v3279_v48 = vadd.f32 %v6619_v20, %v3243_v33  ;;  %v3093_v38 = vadd.f32 %v3092_v30, %v2764_v35  ;;  %v7234_v33 = vld [vmem:[#allocation12_spill] sm:$0xff]  ;;  %v7235_v35 = vld [vmem:[#allocation33_spill] sm:$0xff] }
 0x442   :  { %v7236_v52 = vmax.f32 %v7234_v33, %v7235_v35 }
 0x443   :  { %v3311_v47 = vmax.f32 %v3279_v48, 0.0  ;;  %v3176_v36 = vmax.f32 %v7221_v59, %v3093_v38 }
 0x445   :  { %v3343_v12 = vpack.c.bf16 %v3311_v47, %v3311_v47  ;;  %v3208_v60 = vmax.f32 %v7224_v9, %v3176_v36 }
 0x446   :  { %v2766_v62 = vpop.f32.mrf.mxu2  ;;  %v2110_v46 = vpop.f32.mrf.mxu0 }
 0x447   :  { %v3095_v55 = vpop.f32.mrf.mxu3  ;;  %3376 = vst.msk [vmem:[%s7084_s4 + $0x48] sm:$0xf] %vm3357_vm0, %v3343_v12  ;;  %v3244_v22 = vmul.f32 %v6586_v54, %v3208_v60  ;;  %v2767_v13 = vadd.f32 %v2766_v62, %v2438_v11  ;;  %v2439_v28 = vpop.f32.mrf.mxu1  ;;  %v7237_v60 = vld [vmem:[#allocation51_spill] sm:$0xff] }
 0x448   :  { %v2440_v32 = vadd.f32 %v2439_v28, %v2110_v46  ;;  %v7239_v46 = vld [vmem:[#allocation34_spill] sm:$0xff] }
 0x449   :  { %v3280_v51 = vadd.f32 %v6619_v20, %v3244_v22  ;;  %v3096_v40 = vadd.f32 %v3095_v55, %v2767_v13  ;;  %v7238_v13 = vld [vmem:[#allocation13_spill] sm:$0xff] }
 0x44a   :  { %v7240_v28 = vmax.f32 %v7238_v13, %v7239_v46 }
 0x44b   :  { %v3312_v43 = vmax.f32 %v3280_v51, 0.0  ;;  %v3177_v27 = vmax.f32 %v7225_v56, %v3096_v40 }
 0x44d   :  { %v3344_v45 = vpack.c.bf16 %v3312_v43, %v3312_v43  ;;  %v3209_v5 = vmax.f32 %v7228_v57, %v3177_v27 }
 0x44e   :  { %v2768_v15 = vpop.f32.mrf.mxu2  ;;  %v2113_v29 = vpop.f32.mrf.mxu0 }
 0x44f   :  { %v3097_v61 = vpop.f32.mrf.mxu3  ;;  %3377 = vst.msk [vmem:[%s7084_s4 + $0x4c] sm:$0xf] %vm3357_vm0, %v3344_v45  ;;  %v3245_v19 = vmul.f32 %v6586_v54, %v3209_v5  ;;  %v2769_v2 = vadd.f32 %v2768_v15, %v2440_v32  ;;  %v2442_v49 = vpop.f32.mrf.mxu1  ;;  %v7241_v32 = vld [vmem:[#allocation52_spill] sm:$0xff] }
 0x450   :  { %v2443_v37 = vadd.f32 %v2442_v49, %v2113_v29 }
 0x451   :  { %v3281_v24 = vadd.f32 %v6619_v20, %v3245_v19  ;;  %v3098_v39 = vadd.f32 %v3097_v61, %v2769_v2  ;;  %v7242_v19 = vld [vmem:[#allocation14_spill] sm:$0xff]  ;;  %v7243_v2 = vld [vmem:[#allocation35_spill] sm:$0xff] }
 0x452   :  { %v7244_v29 = vmax.f32 %v7242_v19, %v7243_v2 }
 0x453   :  { %v3313_v23 = vmax.f32 %v3281_v24, 0.0  ;;  %v3178_v25 = vmax.f32 %v7229_v10, %v3098_v39 }
 0x455   :  { %v3345_v53 = vpack.c.bf16 %v3313_v23, %v3313_v23  ;;  %v3210_v41 = vmax.f32 %v7232_v1, %v3178_v25 }
 0x456   :  { %v2771_v7 = vpop.f32.mrf.mxu2  ;;  %v2115_v3 = vpop.f32.mrf.mxu0 }
 0x457   :  { %v3100_v14 = vpop.f32.mrf.mxu3  ;;  %3378 = vst.msk [vmem:[%s7084_s4 + $0x50] sm:$0xf] %vm3357_vm0, %v3345_v53  ;;  %v3246_v58 = vmul.f32 %v6586_v54, %v3210_v41  ;;  %v2772_v21 = vadd.f32 %v2771_v7, %v2443_v37  ;;  %v2444_v63 = vpop.f32.mrf.mxu1  ;;  %v7245_v41 = vld [vmem:[#allocation53_spill] sm:$0xff] }
 0x458   :  { %v2445_v48 = vadd.f32 %v2444_v63, %v2115_v3  ;;  %v7247_v3 = vld [vmem:[#allocation36_spill] sm:$0xff] }
 0x459   :  { %v3282_v44 = vadd.f32 %v6619_v20, %v3246_v58  ;;  %v3101_v16 = vadd.f32 %v3100_v14, %v2772_v21  ;;  %v7246_v21 = vld [vmem:[#allocation15_spill] sm:$0xff] }
 0x45a   :  { %v7248_v63 = vmax.f32 %v7246_v21, %v7247_v3 }
 0x45b   :  { %v3314_v0 = vmax.f32 %v3282_v44, 0.0  ;;  %v3179_v34 = vmax.f32 %v7233_v31, %v3101_v16 }
 0x45d   :  { %v3346_v30 = vpack.c.bf16 %v3314_v0, %v3314_v0  ;;  %v3211_v8 = vmax.f32 %v7236_v52, %v3179_v34 }
 0x45e   :  { %v2773_v38 = vpop.f32.mrf.mxu2  ;;  %v2118_v11 = vpop.f32.mrf.mxu0 }
 0x45f   :  { %v3102_v47 = vpop.f32.mrf.mxu3  ;;  %3379 = vst.msk [vmem:[%s7084_s4 + $0x54] sm:$0xf] %vm3357_vm0, %v3346_v30  ;;  %v3247_v59 = vmul.f32 %v6586_v54, %v3211_v8  ;;  %v2774_v36 = vadd.f32 %v2773_v38, %v2445_v48  ;;  %v2447_v12 = vpop.f32.mrf.mxu1  ;;  %v7249_v48 = vld [vmem:[#allocation54_spill] sm:$0xff] }
 0x460   :  { %v2448_v55 = vadd.f32 %v2447_v12, %v2118_v11 }
 0x461   :  { %v3283_v6 = vadd.f32 %v6619_v20, %v3247_v59  ;;  %v3103_v42 = vadd.f32 %v3102_v47, %v2774_v36  ;;  %v7250_v59 = vld [vmem:[#allocation16_spill] sm:$0xff]  ;;  %v7251_v36 = vld [vmem:[#allocation37_spill] sm:$0xff] }
 0x462   :  { %v7252_v11 = vmax.f32 %v7250_v59, %v7251_v36 }
 0x463   :  { %v3315_v9 = vmax.f32 %v3283_v6, 0.0  ;;  %v3180_v62 = vmax.f32 %v7237_v60, %v3103_v42 }
 0x465   :  { %v3347_v22 = vpack.c.bf16 %v3315_v9, %v3315_v9  ;;  %v3212_v51 = vmax.f32 %v7240_v28, %v3180_v62 }
 0x466   :  { %v2776_v40 = vpop.f32.mrf.mxu2  ;;  %v2120_v45 = vpop.f32.mrf.mxu0 }
 0x467   :  { %v3105_v43 = vpop.f32.mrf.mxu3  ;;  %3380 = vst.msk [vmem:[%s7084_s4 + $0x58] sm:$0xf] %vm3357_vm0, %v3347_v22  ;;  %v3248_v56 = vmul.f32 %v6586_v54, %v3212_v51  ;;  %v2777_v27 = vadd.f32 %v2776_v40, %v2448_v55  ;;  %v2449_v17 = vpop.f32.mrf.mxu1  ;;  %v7253_v51 = vld [vmem:[#allocation55_spill] sm:$0xff] }
 0x468   :  { %v2450_v24 = vadd.f32 %v2449_v17, %v2120_v45  ;;  %v7255_v45 = vld [vmem:[#allocation38_spill] sm:$0xff] }
 0x469   :  { %v3284_v50 = vadd.f32 %v6619_v20, %v3248_v56  ;;  %v3106_v57 = vadd.f32 %v3105_v43, %v2777_v27  ;;  %v7254_v27 = vld [vmem:[#allocation17_spill] sm:$0xff] }
 0x46a   :  { %v7256_v17 = vmax.f32 %v7254_v27, %v7255_v45 }
 0x46b   :  { %v3316_v5 = vmax.f32 %v3284_v50, 0.0  ;;  %v3181_v15 = vmax.f32 %v7241_v32, %v3106_v57 }
 0x46d   :  { %v3348_v61 = vpack.c.bf16 %v3316_v5, %v3316_v5  ;;  %v3213_v49 = vmax.f32 %v7244_v29, %v3181_v15 }
 0x46e   :  { %v2778_v39 = vpop.f32.mrf.mxu2  ;;  %v2123_v37 = vpop.f32.mrf.mxu0 }
 0x46f   :  { %v3107_v23 = vpop.f32.mrf.mxu3  ;;  %3381 = vst.msk [vmem:[%s7084_s4 + $0x5c] sm:$0xf] %vm3357_vm0, %v3348_v61  ;;  %v3249_v10 = vmul.f32 %v6586_v54, %v3213_v49  ;;  %v2779_v25 = vadd.f32 %v2778_v39, %v2450_v24  ;;  %v2452_v53 = vpop.f32.mrf.mxu1  ;;  %v7257_v24 = vld [vmem:[#allocation56_spill] sm:$0xff] }
 0x470   :  { %v2453_v14 = vadd.f32 %v2452_v53, %v2123_v37 }
 0x471   :  { %v3285_v4 = vadd.f32 %v6619_v20, %v3249_v10  ;;  %v3108_v18 = vadd.f32 %v3107_v23, %v2779_v25  ;;  %v7258_v10 = vld [vmem:[#allocation18_spill] sm:$0xff]  ;;  %v7259_v25 = vld [vmem:[#allocation39_spill] sm:$0xff] }
 0x472   :  { %v7260_v37 = vmax.f32 %v7258_v10, %v7259_v25 }
 0x473   :  { %v3317_v1 = vmax.f32 %v3285_v4, 0.0  ;;  %v3182_v7 = vmax.f32 %v7245_v41, %v3108_v18 }
 0x475   :  { %v3349_v58 = vpack.c.bf16 %v3317_v1, %v3317_v1  ;;  %v3214_v44 = vmax.f32 %v7248_v63, %v3182_v7 }
 0x476   :  { %v2781_v16 = vpop.f32.mrf.mxu2  ;;  %v2125_v30 = vpop.f32.mrf.mxu0 }
 0x477   :  { %v3110_v0 = vpop.f32.mrf.mxu3  ;;  %3382 = vst.msk [vmem:[%s7084_s4 + $0x60] sm:$0xf] %vm3357_vm0, %v3349_v58  ;;  %v3250_v31 = vmul.f32 %v6586_v54, %v3214_v44  ;;  %v2782_v34 = vadd.f32 %v2781_v16, %v2453_v14  ;;  %v2454_v33 = vpop.f32.mrf.mxu1  ;;  %v7261_v44 = vld [vmem:[#allocation57_spill] sm:$0xff] }
 0x478   :  { %v2455_v6 = vadd.f32 %v2454_v33, %v2125_v30  ;;  %v7263_v30 = vld [vmem:[#allocation40_spill] sm:$0xff] }
 0x479   :  { %v3286_v35 = vadd.f32 %v6619_v20, %v3250_v31  ;;  %v3111_v52 = vadd.f32 %v3110_v0, %v2782_v34  ;;  %v7262_v34 = vld [vmem:[#allocation19_spill] sm:$0xff] }
 0x47a   :  { %v7264_v33 = vmax.f32 %v7262_v34, %v7263_v30 }
 0x47b   :  { %v3318_v8 = vmax.f32 %v3286_v35, 0.0  ;;  %v3183_v38 = vmax.f32 %v7249_v48, %v3111_v52 }
 0x47d   :  { %v3350_v47 = vpack.c.bf16 %v3318_v8, %v3318_v8  ;;  %v3215_v12 = vmax.f32 %v7252_v11, %v3183_v38 }
 0x47e   :  { %v2783_v42 = vpop.f32.mrf.mxu2  ;;  %v2128_v55 = vpop.f32.mrf.mxu0 }
 0x47f   :  { %v3112_v9 = vpop.f32.mrf.mxu3  ;;  %3383 = vst.msk [vmem:[%s7084_s4 + $0x64] sm:$0xf] %vm3357_vm0, %v3350_v47  ;;  %v3251_v60 = vmul.f32 %v6586_v54, %v3215_v12  ;;  %v2784_v62 = vadd.f32 %v2783_v42, %v2455_v6  ;;  %v2457_v22 = vpop.f32.mrf.mxu1  ;;  %v7265_v6 = vld [vmem:[#allocation58_spill] sm:$0xff] }
 0x480   :  { %v2458_v43 = vadd.f32 %v2457_v22, %v2128_v55 }
 0x481   :  { %v3287_v13 = vadd.f32 %v6619_v20, %v3251_v60  ;;  %v3113_v46 = vadd.f32 %v3112_v9, %v2784_v62  ;;  %v7266_v60 = vld [vmem:[#allocation20_spill] sm:$0xff]  ;;  %v7267_v62 = vld [vmem:[#allocation41_spill] sm:$0xff] }
 0x482   :  { %v7268_v55 = vmax.f32 %v7266_v60, %v7267_v62 }
 0x483   :  { %v3319_v28 = vmax.f32 %v3287_v13, 0.0  ;;  %v3184_v40 = vmax.f32 %v7253_v51, %v3113_v46 }
 0x485   :  { %v3351_v56 = vpack.c.bf16 %v3319_v28, %v3319_v28  ;;  %v3216_v50 = vmax.f32 %v7256_v17, %v3184_v40 }
 0x486   :  { %v2786_v57 = vpop.f32.mrf.mxu2  ;;  %v2130_v61 = vpop.f32.mrf.mxu0 }
 0x487   :  { %v3115_v5 = vpop.f32.mrf.mxu3  ;;  %3384 = vst.msk [vmem:[%s7084_s4 + $0x68] sm:$0xf] %vm3357_vm0, %v3351_v56  ;;  %v3252_v32 = vmul.f32 %v6586_v54, %v3216_v50  ;;  %v2787_v15 = vadd.f32 %v2786_v57, %v2458_v43  ;;  %v2459_v19 = vpop.f32.mrf.mxu1  ;;  %v4836_v54 = vld [vmem:[%s7082_s2] ss:$0 sm:$0xff]  ;;  %v7269_v50 = vld [vmem:[#allocation21_spill] sm:$0xff] }
 0x488   :  { %v2460_v4 = vadd.f32 %v2459_v19, %v2130_v61  ;;  %v7270_v57 = vld [vmem:[#allocation42_spill] sm:$0xff] }
 0x489   :  { %v3288_v2 = vadd.f32 %v6619_v20, %v3252_v32  ;;  %v3116_v29 = vadd.f32 %v3115_v5, %v2787_v15  ;;  %v7271_v5 = vmax.f32 %v7269_v50, %v7270_v57 }
 0x48b   :  { %v3320_v49 = vmax.f32 %v3288_v2, 0.0  ;;  %v3185_v39 = vmax.f32 %v7257_v24, %v3116_v29 }
 0x48d   :  { %v3352_v23 = vpack.c.bf16 %v3320_v49, %v3320_v49  ;;  %v3217_v53 = vmax.f32 %v7260_v37, %v3185_v39 }
 0x48e   :  { %v2788_v18 = vpop.f32.mrf.mxu2  ;;  %v2133_v14 = vpop.f32.mrf.mxu0 }
 0x48f   :  { %v3117_v1 = vpop.f32.mrf.mxu3  ;;  %3385 = vst.msk [vmem:[%s7084_s4 + $0x6c] sm:$0xf] %vm3357_vm0, %v3352_v23  ;;  %v3253_v41 = vmul.f32 %v4836_v54, %v3217_v53  ;;  %v2789_v7 = vadd.f32 %v2788_v18, %v2460_v4  ;;  %v2462_v58 = vpop.f32.mrf.mxu1 }
 0x490   :  { %v2463_v0 = vadd.f32 %v2462_v58, %v2133_v14 }
 0x491   :  { %v3289_v21 = vadd.f32 %v6619_v20, %v3253_v41  ;;  %v3118_v3 = vadd.f32 %v3117_v1, %v2789_v7  ;;  %v4837_v20 = vld [vmem:[%s7083_s3] ss:$0 sm:$0xff] }
 0x493   :  { %v3321_v63 = vmax.f32 %v3289_v21, 0.0  ;;  %v3186_v16 = vmax.f32 %v7261_v44, %v3118_v3 }
 0x495   :  { %v3353_v31 = vpack.c.bf16 %v3321_v63, %v3321_v63  ;;  %v3218_v35 = vmax.f32 %v7264_v33, %v3186_v16 }
 0x496   :  { %v2791_v52 = vpop.f32.mrf.mxu2  ;;  %v2135_v36 = vpop.f32.mrf.mxu0 }
 0x497   :  { %v3120_v8 = vpop.f32.mrf.mxu3  ;;  %3386 = vst.msk [vmem:[%s7084_s4 + $0x70] sm:$0xf] %vm3357_vm0, %v3353_v31  ;;  %v3254_v48 = vmul.f32 %v4836_v54, %v3218_v35  ;;  %v2792_v38 = vadd.f32 %v2791_v52, %v2463_v0  ;;  %v2464_v11 = vpop.f32.mrf.mxu1 }
 0x498   :  { %v2465_v13 = vadd.f32 %v2464_v11, %v2135_v36 }
 0x499   :  { %v3290_v47 = vadd.f32 %v4837_v20, %v3254_v48  ;;  %v3121_v59 = vadd.f32 %v3120_v8, %v2792_v38 }
 0x49b   :  { %v3322_v12 = vmax.f32 %v3290_v47, 0.0  ;;  %v3187_v42 = vmax.f32 %v7265_v6, %v3121_v59 }
 0x49d   :  { %v3354_v9 = vpack.c.bf16 %v3322_v12, %v3322_v12  ;;  %v3219_v22 = vmax.f32 %v7268_v55, %v3187_v42 }
 0x49e   :  { %v2793_v46 = vpop.f32.mrf.mxu2 }
 0x49f   :  { %3387 = vst.msk [vmem:[%s7084_s4 + $0x74] sm:$0xf] %vm3357_vm0, %v3354_v9  ;;  %v3255_v28 = vmul.f32 %v4836_v54, %v3219_v22  ;;  %v2794_v51 = vadd.f32 %v2793_v46, %v2465_v13  ;;  %v3122_v40 = vpop.f32.mrf.mxu3 }
 0x4a1   :  { %v3291_v43 = vadd.f32 %v4837_v20, %v3255_v28  ;;  %v3123_v56 = vadd.f32 %v3122_v40, %v2794_v51 }
 0x4a3   :  { %v3323_v27 = vmax.f32 %v3291_v43, 0.0  ;;  %v3188_v45 = vmax.f32 %v6581_v26, %v3123_v56 }
 0x4a5   :  { %v3355_v17 = vpack.c.bf16 %v3323_v27, %v3323_v27  ;;  %v3220_v32 = vmax.f32 %v7271_v5, %v3188_v45 }
 0x4a7   :  { %3388 = vst.msk [vmem:[%s7084_s4 + $0x78] sm:$0xf] %vm3357_vm0, %v3355_v17  ;;  %v3256_v15 = vmul.f32 %v4836_v54, %v3220_v32 }
 0x4a9   :  { %v3292_v61 = vadd.f32 %v4837_v20, %v3256_v15 }
 0x4ab   :  { %v3324_v19 = vmax.f32 %v3292_v61, 0.0 }
 0x4ad   :  { %v3356_v2 = vpack.c.bf16 %v3324_v19, %v3324_v19 }
 0x4af   :  { %3389 = vst.msk [vmem:[%s7084_s4 + $0x7c] sm:$0xf] %vm3357_vm0, %v3356_v2 }

// kernel: deepseed_forward.5
= control target key start
LH: loop header
LB: loop body
LE: loop exit
PB: predicated region body
PF: predicated region fallthrough
CT: control target
= control target key end

     0   :  { %vm2036_vm0 = vcmask 261120   ;;  %vm2447_vm1 = vcmask 517120   ;;  %vm2475_vm5 = vcmask 1024   ;;  %s4506_s1 = inlined_call_operand.vmem [shape: bf16[3872,64], index: 1, kind: input, shape index: {}]   ;;  %s4507_s0 = inlined_call_operand.vmem [shape: bf16[2,3872], index: 0, kind: input, shape index: {}]   ;;  %s4508_s2 = inlined_call_operand.vmem [shape: f32[1,64], index: 2, kind: input, shape index: {}]   ;;  %s4509_s3 = inlined_call_operand.vmem [shape: f32[1,64], index: 3, kind: input, shape index: {}]   ;;  %s4510_s4 = inlined_call_operand.<no memory space> [shape: f32[1,1], index: 4, kind: input, shape index: {}]   ;;  %s4511_s5 = inlined_call_operand.vmem [shape: f32[2,1], index: 5, kind: output, shape index: {}]  }
   0x1   :  { %v3457_v0 = vld [vmem:[%s4506_s1 + $0x38] sm:$0xff]  ;;  %v3456_v4 = vld [vmem:[%s4506_s1 + $0x30] sm:$0xff]  ;;  %v3455_v8 = vld [vmem:[%s4506_s1 + $0x28] sm:$0xff] }
   0x2   :  { %v3465_v1 = vld [vmem:[%s4506_s1 + $0x78] sm:$0xff]  ;;  %2039 = vmatpush.bf16.msra.mxu0 %v3457_v0  ;;  %v3464_v5 = vld [vmem:[%s4506_s1 + $0x70] sm:$0xff]  ;;  %v3463_v9 = vld [vmem:[%s4506_s1 + $0x68] sm:$0xff] }
   0x3   :  { %v3473_v2 = vld [vmem:[%s4506_s1 + $0xb8] sm:$0xff]  ;;  %2052 = vmatpush.bf16.msra.mxu1 %v3465_v1  ;;  %v3472_v6 = vld [vmem:[%s4506_s1 + $0xb0] sm:$0xff]  ;;  %v3471_v10 = vld [vmem:[%s4506_s1 + $0xa8] sm:$0xff] }
   0x4   :  { %v3481_v3 = vld [vmem:[%s4506_s1 + $0xf8] sm:$0xff]  ;;  %2065 = vmatpush.bf16.msra.mxu2 %v3473_v2  ;;  %v3480_v7 = vld [vmem:[%s4506_s1 + $0xf0] sm:$0xff]  ;;  %v3479_v11 = vld [vmem:[%s4506_s1 + $0xe8] sm:$0xff] }
   0x5   :  { %2078 = vmatpush.bf16.msra.mxu3 %v3481_v3  ;;  %v3454_v12 = vld [vmem:[%s4506_s1 + $0x20] sm:$0xff]  ;;  %v3453_v16 = vld [vmem:[%s4506_s1 + $0x18] sm:$0xff]  ;;  %v3452_v21 = vld [vmem:[%s4506_s1 + $0x10] sm:$0xff] }
   0x6   :  { %2040 = vmatpush.bf16.msra.mxu0 %v3456_v4  ;;  %v3462_v13 = vld [vmem:[%s4506_s1 + $0x60] sm:$0xff]  ;;  %v3461_v17 = vld [vmem:[%s4506_s1 + $0x58] sm:$0xff]  ;;  %v3460_v22 = vld [vmem:[%s4506_s1 + $0x50] sm:$0xff] }
   0x7   :  { %2053 = vmatpush.bf16.msra.mxu1 %v3464_v5  ;;  %v3470_v14 = vld [vmem:[%s4506_s1 + $0xa0] sm:$0xff]  ;;  %v3469_v18 = vld [vmem:[%s4506_s1 + $0x98] sm:$0xff]  ;;  %v3468_v23 = vld [vmem:[%s4506_s1 + $0x90] sm:$0xff] }
   0x8   :  { %2066 = vmatpush.bf16.msra.mxu2 %v3472_v6  ;;  %v3478_v15 = vld [vmem:[%s4506_s1 + $0xe0] sm:$0xff]  ;;  %v3477_v19 = vld [vmem:[%s4506_s1 + $0xd8] sm:$0xff]  ;;  %v3476_v24 = vld [vmem:[%s4506_s1 + $0xd0] sm:$0xff] }
   0x9   :  { %2079 = vmatpush.bf16.msra.mxu3 %v3480_v7  ;;  %v23_v20 = vld [vmem:[%s4507_s0] sm:$0xff]  ;;  %v3451_v25 = vld [vmem:[%s4506_s1 + $0x8] sm:$0xff]  ;;  %v3489_v32 = vld [vmem:[%s4506_s1 + $0x138] sm:$0xff] }
   0xa   :  { %2041 = vmatpush.bf16.msra.mxu0 %v3455_v8  ;;  %516 = vst [vmem:[#allocation1] ss:$9 sm:$0xff] %v23_v20  ;;  %v3459_v26 = vld [vmem:[%s4506_s1 + $0x48] sm:$0xff]  ;;  %v3450_v29 = vld [vmem:[%s4506_s1] sm:$0xff]  ;;  %v3497_v33 = vld [vmem:[%s4506_s1 + $0x178] sm:$0xff] }
   0xb   :  { %2054 = vmatpush.bf16.msra.mxu1 %v3463_v9  ;;  %v3467_v27 = vld [vmem:[%s4506_s1 + $0x88] sm:$0xff]  ;;  %v3458_v30 = vld [vmem:[%s4506_s1 + $0x40] sm:$0xff]  ;;  %v3505_v34 = vld [vmem:[%s4506_s1 + $0x1b8] sm:$0xff] }
   0xc   :  { %2067 = vmatpush.bf16.msra.mxu2 %v3471_v10  ;;  %v3475_v28 = vld [vmem:[%s4506_s1 + $0xc8] sm:$0xff]  ;;  %v3466_v31 = vld [vmem:[%s4506_s1 + $0x80] sm:$0xff]  ;;  %v3513_v36 = vld [vmem:[%s4506_s1 + $0x1f8] sm:$0xff] }
   0xd   :  { %2080 = vmatpush.bf16.msra.mxu3 %v3479_v11  ;;  %v3474_v35 = vld [vmem:[%s4506_s1 + $0xc0] sm:$0xff]  ;;  %v3488_v38 = vld [vmem:[%s4506_s1 + $0x130] sm:$0xff]  ;;  %v3487_v45 = vld [vmem:[%s4506_s1 + $0x128] sm:$0xff] }
   0xe   :  { %2042 = vmatpush.bf16.msra.mxu0 %v3454_v12  ;;  %v3496_v40 = vld [vmem:[%s4506_s1 + $0x170] sm:$0xff]  ;;  %v3495_v46 = vld [vmem:[%s4506_s1 + $0x168] sm:$0xff]  ;;  %v3486_v54 = vld [vmem:[%s4506_s1 + $0x120] sm:$0xff] }
   0xf   :  { %2055 = vmatpush.bf16.msra.mxu1 %v3462_v13  ;;  %v3504_v41 = vld [vmem:[%s4506_s1 + $0x1b0] sm:$0xff]  ;;  %v3503_v47 = vld [vmem:[%s4506_s1 + $0x1a8] sm:$0xff]  ;;  %v3494_v55 = vld [vmem:[%s4506_s1 + $0x160] sm:$0xff] }
  0x10   :  { %2068 = vmatpush.bf16.msra.mxu2 %v3470_v14  ;;  %v3512_v43 = vld [vmem:[%s4506_s1 + $0x1f0] sm:$0xff]  ;;  %v24_v48 = vld [vmem:[%s4507_s0 + $0x8] sm:$0xff]  ;;  %v3502_v56 = vld [vmem:[%s4506_s1 + $0x1a0] sm:$0xff] }
  0x11   :  { %2081 = vmatpush.bf16.msra.mxu3 %v3478_v15  ;;  %v517_v37 = vld [vmem:[#allocation1] sm:$0xff]  ;;  %v519_v39 = vld [vmem:[#allocation1 + $0x12] sm:$0xff]  ;;  %v518_v42 = vld [vmem:[#allocation1 + $0x9] sm:$0xff] }
  0x12   :  { %2043 = vmatpush.bf16.msra.mxu0 %v3453_v16  ;;  %v520_v44 = vld [vmem:[#allocation1 + $0x1b] sm:$0xff]  ;;  %v3511_v49 = vld [vmem:[%s4506_s1 + $0x1e8] sm:$0xff]  ;;  %v3484_v62 = vld [vmem:[%s4506_s1 + $0x110] sm:$0xff] }
  0x13   :  { %2056 = vmatpush.bf16.msra.mxu1 %v3461_v17  ;;  %v523_v50 = vld [vmem:[#allocation1 + $0x36] sm:$0xff]  ;;  %v521_v51 = vld [vmem:[#allocation1 + $0x24] sm:$0xff]  ;;  %v522_v53 = vld [vmem:[#allocation1 + $0x2d] sm:$0xff] }
  0x14   :  { %2069 = vmatpush.bf16.msra.mxu2 %v3469_v18  ;;  %v3867_v52 = vld [vmem:[#allocation1 + $0x3f] sm:$0xff]  ;;  %v3492_v63 = vld [vmem:[%s4506_s1 + $0x150] sm:$0xff]  ;;  %v3483_v2 = vld [vmem:[%s4506_s1 + $0x108] sm:$0xff] }
  0x15   :  { %2082 = vmatpush.bf16.msra.mxu3 %v3477_v19  ;;  %526 = vst [vmem:[#allocation1] ss:$9 sm:$0xff] %v24_v48  ;;  %v3510_v57 = vld [vmem:[%s4506_s1 + $0x1e0] sm:$0xff]  ;;  %v3485_v58 = vld [vmem:[%s4506_s1 + $0x118] sm:$0xff]  ;;  %v3500_v0 = vld [vmem:[%s4506_s1 + $0x190] sm:$0xff] }
  0x16   :  { %2044 = vmatpush.bf16.msra.mxu0 %v3452_v21  ;;  %v3493_v59 = vld [vmem:[%s4506_s1 + $0x158] sm:$0xff]  ;;  %v3508_v1 = vld [vmem:[%s4506_s1 + $0x1d0] sm:$0xff]  ;;  %v3491_v3 = vld [vmem:[%s4506_s1 + $0x148] sm:$0xff] }
  0x17   :  { %2057 = vmatpush.bf16.msra.mxu1 %v3460_v22  ;;  %v3501_v60 = vld [vmem:[%s4506_s1 + $0x198] sm:$0xff]  ;;  %v3499_v4 = vld [vmem:[%s4506_s1 + $0x188] sm:$0xff]  ;;  %v3482_v6 = vld [vmem:[%s4506_s1 + $0x100] sm:$0xff] }
  0x18   :  { %2070 = vmatpush.bf16.msra.mxu2 %v3468_v23  ;;  %v3509_v61 = vld [vmem:[%s4506_s1 + $0x1d8] sm:$0xff]  ;;  %v3507_v5 = vld [vmem:[%s4506_s1 + $0x1c8] sm:$0xff]  ;;  %v3490_v7 = vld [vmem:[%s4506_s1 + $0x140] sm:$0xff] }
  0x19   :  { %2083 = vmatpush.bf16.msra.mxu3 %v3476_v24  ;;  %v3498_v8 = vld [vmem:[%s4506_s1 + $0x180] sm:$0xff]  ;;  %v3521_v9 = vld [vmem:[%s4506_s1 + $0x238] sm:$0xff]  ;;  %v3520_v14 = vld [vmem:[%s4506_s1 + $0x230] sm:$0xff] }
  0x1a   :  { %2045 = vmatpush.bf16.msra.mxu0 %v3451_v25  ;;  %v3529_v10 = vld [vmem:[%s4506_s1 + $0x278] sm:$0xff]  ;;  %v3506_v12 = vld [vmem:[%s4506_s1 + $0x1c0] sm:$0xff]  ;;  %v3528_v15 = vld [vmem:[%s4506_s1 + $0x270] sm:$0xff] }
  0x1b   :  { %2058 = vmatpush.bf16.msra.mxu1 %v3459_v26  ;;  %v3537_v11 = vld [vmem:[%s4506_s1 + $0x2b8] sm:$0xff]  ;;  %v3536_v16 = vld [vmem:[%s4506_s1 + $0x2b0] sm:$0xff]  ;;  %v3519_v18 = vld [vmem:[%s4506_s1 + $0x228] sm:$0xff] }
  0x1c   :  { %2071 = vmatpush.bf16.msra.mxu2 %v3467_v27  ;;  %v3545_v13 = vld [vmem:[%s4506_s1 + $0x2f8] sm:$0xff]  ;;  %v3544_v17 = vld [vmem:[%s4506_s1 + $0x2f0] sm:$0xff]  ;;  %v3527_v19 = vld [vmem:[%s4506_s1 + $0x268] sm:$0xff] }
  0x1d   :  { %2084 = vmatpush.bf16.msra.mxu3 %v3475_v28  ;;  %v3535_v20 = vld [vmem:[%s4506_s1 + $0x2a8] sm:$0xff]  ;;  %v3518_v22 = vld [vmem:[%s4506_s1 + $0x220] sm:$0xff]  ;;  %v3517_v26 = vld [vmem:[%s4506_s1 + $0x218] sm:$0xff] }
  0x1e   :  { %2046 = vmatpush.bf16.msra.mxu0 %v3450_v29  ;;  %v3543_v21 = vld [vmem:[%s4506_s1 + $0x2e8] sm:$0xff]  ;;  %v3526_v23 = vld [vmem:[%s4506_s1 + $0x260] sm:$0xff]  ;;  %v3525_v27 = vld [vmem:[%s4506_s1 + $0x258] sm:$0xff] }
  0x1f   :  { %2059 = vmatpush.bf16.msra.mxu1 %v3458_v30  ;;  %v3534_v24 = vld [vmem:[%s4506_s1 + $0x2a0] sm:$0xff]  ;;  %v3533_v28 = vld [vmem:[%s4506_s1 + $0x298] sm:$0xff]  ;;  %v3516_v30 = vld [vmem:[%s4506_s1 + $0x210] sm:$0xff] }
  0x20   :  { %2072 = vmatpush.bf16.msra.mxu2 %v3466_v31  ;;  %v3542_v25 = vld [vmem:[%s4506_s1 + $0x2e0] sm:$0xff]  ;;  %v3541_v29 = vld [vmem:[%s4506_s1 + $0x2d8] sm:$0xff]  ;;  %v3524_v31 = vld [vmem:[%s4506_s1 + $0x250] sm:$0xff] }
  0x21   :  { %2085 = vmatpush.bf16.msra.mxu3 %v3474_v35  ;;  %2047 = vmatmul.bf16.vlgmr.msra.gmra.mxu0 %v517_v37  ;;  %v3523_v35 = vld [vmem:[%s4506_s1 + $0x248] sm:$0xff]  ;;  %v529_v48 = vld [vmem:[#allocation1 + $0x12] sm:$0xff] }
  0x22   :  { %2091 = vmatpush.bf16.msrb.mxu0 %v3489_v32  ;;  %2060 = vmatmul.bf16.vlgmr.msra.gmra.mxu1 %v518_v42  ;;  %v3532_v32 = vld [vmem:[%s4506_s1 + $0x290] sm:$0xff]  ;;  %v3539_v37 = vld [vmem:[%s4506_s1 + $0x2c8] sm:$0xff] }
  0x23   :  { %2104 = vmatpush.bf16.msrb.mxu1 %v3497_v33  ;;  %2073 = vmatmul.bf16.vlgmr.msra.gmra.mxu2 %v519_v39  ;;  %v3540_v33 = vld [vmem:[%s4506_s1 + $0x2d0] sm:$0xff]  ;;  %v3522_v39 = vld [vmem:[%s4506_s1 + $0x240] sm:$0xff] }
  0x24   :  { %2117 = vmatpush.bf16.msrb.mxu2 %v3505_v34  ;;  %2086 = vmatmul.bf16.vlgmr.msra.gmra.mxu3 %v520_v44  ;;  %v3515_v34 = vld [vmem:[%s4506_s1 + $0x208] sm:$0xff]  ;;  %v25_v42 = vld [vmem:[%s4507_s0 + $0x10] sm:$0xff]  ;;  %v3569_v44 = vld [vmem:[%s4506_s1 + $0x3b8] sm:$0xff] }
  0x25   :  { %2130 = vmatpush.bf16.msrb.mxu3 %v3513_v36  ;;  %v3531_v36 = vld [vmem:[%s4506_s1 + $0x288] sm:$0xff] }
  0x26   :  { %2092 = vmatpush.bf16.msrb.mxu0 %v3488_v38  ;;  %v3514_v38 = vld [vmem:[%s4506_s1 + $0x200] sm:$0xff] }
  0x27   :  { %2105 = vmatpush.bf16.msrb.mxu1 %v3496_v40  ;;  %v3530_v40 = vld [vmem:[%s4506_s1 + $0x280] sm:$0xff] }
  0x28   :  { %2118 = vmatpush.bf16.msrb.mxu2 %v3504_v41  ;;  %v3553_v41 = vld [vmem:[%s4506_s1 + $0x338] sm:$0xff] }
  0x29   :  { %2131 = vmatpush.bf16.msrb.mxu3 %v3512_v43  ;;  %v3561_v43 = vld [vmem:[%s4506_s1 + $0x378] sm:$0xff] }
  0x2a   :  { %2093 = vmatpush.bf16.msrb.mxu0 %v3487_v45  ;;  %v3538_v45 = vld [vmem:[%s4506_s1 + $0x2c0] sm:$0xff] }
  0x2b   :  { %2106 = vmatpush.bf16.msrb.mxu1 %v3495_v46  ;;  %v527_v46 = vld [vmem:[#allocation1] sm:$0xff] }
  0x2c   :  { %2119 = vmatpush.bf16.msrb.mxu2 %v3503_v47  ;;  %v3577_v47 = vld [vmem:[%s4506_s1 + $0x3f8] sm:$0xff] }
  0x2d   :  { %2132 = vmatpush.bf16.msrb.mxu3 %v3511_v49  ;;  %v528_v49 = vld [vmem:[#allocation1 + $0x9] sm:$0xff] }
  0x2e   :  { %2094 = vmatpush.bf16.msrb.mxu0 %v3486_v54  ;;  %v4049_v54 = vld [vmem:[#allocation1 + $0x36] sm:$0xff] }
  0x2f   :  { %2107 = vmatpush.bf16.msrb.mxu1 %v3494_v55  ;;  %v4051_v55 = vld [vmem:[#allocation1 + $0x2d] sm:$0xff] }
  0x30   :  { %2120 = vmatpush.bf16.msrb.mxu2 %v3502_v56  ;;  %v4053_v56 = vld [vmem:[#allocation1 + $0x3f] sm:$0xff] }
  0x31   :  { %2133 = vmatpush.bf16.msrb.mxu3 %v3510_v57  ;;  %v3568_v57 = vld [vmem:[%s4506_s1 + $0x3b0] sm:$0xff] }
  0x32   :  { %2095 = vmatpush.bf16.msrb.mxu0 %v3485_v58  ;;  %v3576_v58 = vld [vmem:[%s4506_s1 + $0x3f0] sm:$0xff] }
  0x33   :  { %2108 = vmatpush.bf16.msrb.mxu1 %v3493_v59  ;;  %v3551_v59 = vld [vmem:[%s4506_s1 + $0x328] sm:$0xff] }
  0x34   :  { %2121 = vmatpush.bf16.msrb.mxu2 %v3501_v60  ;;  %v3559_v60 = vld [vmem:[%s4506_s1 + $0x368] sm:$0xff] }
  0x35   :  { %2134 = vmatpush.bf16.msrb.mxu3 %v3509_v61  ;;  %v3567_v61 = vld [vmem:[%s4506_s1 + $0x3a8] sm:$0xff] }
  0x36   :  { %2096 = vmatpush.bf16.msrb.mxu0 %v3484_v62  ;;  %v3575_v62 = vld [vmem:[%s4506_s1 + $0x3e8] sm:$0xff] }
  0x37   :  { %2109 = vmatpush.bf16.msrb.mxu1 %v3492_v63  ;;  %v3550_v63 = vld [vmem:[%s4506_s1 + $0x320] sm:$0xff] }
  0x38   :  { %2122 = vmatpush.bf16.msrb.mxu2 %v3500_v0  ;;  %v3558_v0 = vld [vmem:[%s4506_s1 + $0x360] sm:$0xff] }
  0x39   :  { %2135 = vmatpush.bf16.msrb.mxu3 %v3508_v1  ;;  %v3566_v1 = vld [vmem:[%s4506_s1 + $0x3a0] sm:$0xff] }
  0x3a   :  { %2097 = vmatpush.bf16.msrb.mxu0 %v3483_v2  ;;  %v3574_v2 = vld [vmem:[%s4506_s1 + $0x3e0] sm:$0xff] }
  0x3b   :  { %2110 = vmatpush.bf16.msrb.mxu1 %v3491_v3  ;;  %v3549_v3 = vld [vmem:[%s4506_s1 + $0x318] sm:$0xff] }
  0x3c   :  { %2123 = vmatpush.bf16.msrb.mxu2 %v3499_v4  ;;  %v3557_v4 = vld [vmem:[%s4506_s1 + $0x358] sm:$0xff] }
  0x3d   :  { %2136 = vmatpush.bf16.msrb.mxu3 %v3507_v5  ;;  %v3565_v5 = vld [vmem:[%s4506_s1 + $0x398] sm:$0xff] }
  0x3e   :  { %2098 = vmatpush.bf16.msrb.mxu0 %v3482_v6  ;;  %v3573_v6 = vld [vmem:[%s4506_s1 + $0x3d8] sm:$0xff] }
  0x3f   :  { %2111 = vmatpush.bf16.msrb.mxu1 %v3490_v7  ;;  %v3548_v7 = vld [vmem:[%s4506_s1 + $0x310] sm:$0xff] }
  0x40   :  { %2124 = vmatpush.bf16.msrb.mxu2 %v3498_v8  ;;  %v3556_v8 = vld [vmem:[%s4506_s1 + $0x350] sm:$0xff] }
  0x41   :  { %2137 = vmatpush.bf16.msrb.mxu3 %v3506_v12  ;;  %2099 = vmatmul.bf16.vlgmr.msrb.gmra.mxu0 %v521_v51  ;;  %v530_v51 = vld [vmem:[#allocation1 + $0x1b] sm:$0xff]  ;;  %v3555_v12 = vld [vmem:[%s4506_s1 + $0x348] sm:$0xff] }
  0x42   :  { %2143 = vmatpush.bf16.msra.mxu0 %v3521_v9  ;;  %2112 = vmatmul.bf16.vlgmr.msrb.gmra.mxu1 %v522_v53  ;;  %v4047_v53 = vld [vmem:[#allocation1 + $0x24] sm:$0xff]  ;;  %v3564_v9 = vld [vmem:[%s4506_s1 + $0x390] sm:$0xff] }
  0x43   :  { %2156 = vmatpush.bf16.msra.mxu1 %v3529_v10  ;;  %2125 = vmatmul.bf16.vlgmr.msrb.gmra.mxu2 %v523_v50  ;;  %v3552_v50 = vld [vmem:[%s4506_s1 + $0x330] sm:$0xff]  ;;  %536 = vst [vmem:[#allocation1] ss:$9 sm:$0xff] %v25_v42 }
  0x44   :  { %2169 = vmatpush.bf16.msra.mxu2 %v3537_v11  ;;  %2138 = vmatmul.bf16.vlgmr.msrb.gmra.mxu3 %v3867_v52  ;;  %v3560_v52 = vld [vmem:[%s4506_s1 + $0x370] sm:$0xff]  ;;  %v3547_v11 = vld [vmem:[%s4506_s1 + $0x308] sm:$0xff] }
  0x45   :  { %2182 = vmatpush.bf16.msra.mxu3 %v3545_v13  ;;  %v3572_v10 = vld [vmem:[%s4506_s1 + $0x3d0] sm:$0xff]  ;;  %v3563_v13 = vld [vmem:[%s4506_s1 + $0x388] sm:$0xff] }
  0x46   :  { %2144 = vmatpush.bf16.msra.mxu0 %v3520_v14  ;;  %v3571_v14 = vld [vmem:[%s4506_s1 + $0x3c8] sm:$0xff]  ;;  %v3604_v42 = vld [vmem:[%s4506_s1 + $0x4d0] sm:$0xff] }
  0x47   :  { %2157 = vmatpush.bf16.msra.mxu1 %v3528_v15  ;;  %v3546_v15 = vld [vmem:[%s4506_s1 + $0x300] sm:$0xff] }
  0x48   :  { %2170 = vmatpush.bf16.msra.mxu2 %v3536_v16  ;;  %v3554_v16 = vld [vmem:[%s4506_s1 + $0x340] sm:$0xff] }
  0x49   :  { %2183 = vmatpush.bf16.msra.mxu3 %v3544_v17  ;;  %v3585_v17 = vld [vmem:[%s4506_s1 + $0x438] sm:$0xff] }
  0x4a   :  { %2145 = vmatpush.bf16.msra.mxu0 %v3519_v18  ;;  %v3562_v18 = vld [vmem:[%s4506_s1 + $0x380] sm:$0xff] }
  0x4b   :  { %2158 = vmatpush.bf16.msra.mxu1 %v3527_v19  ;;  %v3593_v19 = vld [vmem:[%s4506_s1 + $0x478] sm:$0xff] }
  0x4c   :  { %2171 = vmatpush.bf16.msra.mxu2 %v3535_v20  ;;  %v3601_v20 = vld [vmem:[%s4506_s1 + $0x4b8] sm:$0xff] }
  0x4d   :  { %2184 = vmatpush.bf16.msra.mxu3 %v3543_v21  ;;  %v3570_v21 = vld [vmem:[%s4506_s1 + $0x3c0] sm:$0xff] }
  0x4e   :  { %2146 = vmatpush.bf16.msra.mxu0 %v3518_v22  ;;  %v3609_v22 = vld [vmem:[%s4506_s1 + $0x4f8] sm:$0xff] }
  0x4f   :  { %2159 = vmatpush.bf16.msra.mxu1 %v3526_v23  ;;  %v3584_v23 = vld [vmem:[%s4506_s1 + $0x430] sm:$0xff] }
  0x50   :  { %2172 = vmatpush.bf16.msra.mxu2 %v3534_v24  ;;  %v3592_v24 = vld [vmem:[%s4506_s1 + $0x470] sm:$0xff] }
  0x51   :  { %2185 = vmatpush.bf16.msra.mxu3 %v3542_v25  ;;  %v3600_v25 = vld [vmem:[%s4506_s1 + $0x4b0] sm:$0xff] }
  0x52   :  { %2147 = vmatpush.bf16.msra.mxu0 %v3517_v26  ;;  %v3608_v26 = vld [vmem:[%s4506_s1 + $0x4f0] sm:$0xff] }
  0x53   :  { %2160 = vmatpush.bf16.msra.mxu1 %v3525_v27  ;;  %v3583_v27 = vld [vmem:[%s4506_s1 + $0x428] sm:$0xff] }
  0x54   :  { %2173 = vmatpush.bf16.msra.mxu2 %v3533_v28  ;;  %v3591_v28 = vld [vmem:[%s4506_s1 + $0x468] sm:$0xff] }
  0x55   :  { %2186 = vmatpush.bf16.msra.mxu3 %v3541_v29  ;;  %v3599_v29 = vld [vmem:[%s4506_s1 + $0x4a8] sm:$0xff] }
  0x56   :  { %2148 = vmatpush.bf16.msra.mxu0 %v3516_v30  ;;  %v3607_v30 = vld [vmem:[%s4506_s1 + $0x4e8] sm:$0xff] }
  0x57   :  { %2161 = vmatpush.bf16.msra.mxu1 %v3524_v31  ;;  %v3582_v31 = vld [vmem:[%s4506_s1 + $0x420] sm:$0xff] }
  0x58   :  { %2174 = vmatpush.bf16.msra.mxu2 %v3532_v32  ;;  %v3590_v32 = vld [vmem:[%s4506_s1 + $0x460] sm:$0xff] }
  0x59   :  { %2187 = vmatpush.bf16.msra.mxu3 %v3540_v33  ;;  %v3598_v33 = vld [vmem:[%s4506_s1 + $0x4a0] sm:$0xff] }
  0x5a   :  { %2149 = vmatpush.bf16.msra.mxu0 %v3515_v34  ;;  %v3606_v34 = vld [vmem:[%s4506_s1 + $0x4e0] sm:$0xff] }
  0x5b   :  { %2162 = vmatpush.bf16.msra.mxu1 %v3523_v35  ;;  %v3581_v35 = vld [vmem:[%s4506_s1 + $0x418] sm:$0xff] }
  0x5c   :  { %2175 = vmatpush.bf16.msra.mxu2 %v3531_v36  ;;  %v3589_v36 = vld [vmem:[%s4506_s1 + $0x458] sm:$0xff] }
  0x5d   :  { %2188 = vmatpush.bf16.msra.mxu3 %v3539_v37  ;;  %v3597_v37 = vld [vmem:[%s4506_s1 + $0x498] sm:$0xff] }
  0x5e   :  { %2150 = vmatpush.bf16.msra.mxu0 %v3514_v38  ;;  %v3605_v38 = vld [vmem:[%s4506_s1 + $0x4d8] sm:$0xff] }
  0x5f   :  { %2163 = vmatpush.bf16.msra.mxu1 %v3522_v39  ;;  %v3580_v39 = vld [vmem:[%s4506_s1 + $0x410] sm:$0xff] }
  0x60   :  { %2176 = vmatpush.bf16.msra.mxu2 %v3530_v40  ;;  %v3588_v40 = vld [vmem:[%s4506_s1 + $0x450] sm:$0xff] }
  0x61   :  { %2189 = vmatpush.bf16.msra.mxu3 %v3538_v45  ;;  %2151 = vmatmul.bf16.vlgmr.msra.gmra.mxu0 %v527_v46  ;;  %v3595_v45 = vld [vmem:[%s4506_s1 + $0x488] sm:$0xff] }
  0x62   :  { %2195 = vmatpush.bf16.msrb.mxu0 %v3553_v41  ;;  %2164 = vmatmul.bf16.vlgmr.msra.gmra.mxu1 %v528_v49  ;;  %v3596_v41 = vld [vmem:[%s4506_s1 + $0x490] sm:$0xff]  ;;  %v3603_v46 = vld [vmem:[%s4506_s1 + $0x4c8] sm:$0xff]  ;;  %v3594_v49 = vld [vmem:[%s4506_s1 + $0x480] sm:$0xff] }
  0x63   :  { %2208 = vmatpush.bf16.msrb.mxu1 %v3561_v43  ;;  %2177 = vmatmul.bf16.vlgmr.msra.gmra.mxu2 %v529_v48  ;;  %v3579_v43 = vld [vmem:[%s4506_s1 + $0x408] sm:$0xff]  ;;  %v3586_v48 = vld [vmem:[%s4506_s1 + $0x440] sm:$0xff] }
  0x64   :  { %2221 = vmatpush.bf16.msrb.mxu2 %v3569_v44  ;;  %2190 = vmatmul.bf16.vlgmr.msra.gmra.mxu3 %v530_v51  ;;  %v3587_v44 = vld [vmem:[%s4506_s1 + $0x448] sm:$0xff]  ;;  %v3625_v51 = vld [vmem:[%s4506_s1 + $0x578] sm:$0xff] }
  0x65   :  { %2234 = vmatpush.bf16.msrb.mxu3 %v3577_v47  ;;  %v3578_v47 = vld [vmem:[%s4506_s1 + $0x400] sm:$0xff] }
  0x66   :  { %2196 = vmatpush.bf16.msrb.mxu0 %v3552_v50  ;;  %v3617_v50 = vld [vmem:[%s4506_s1 + $0x538] sm:$0xff] }
  0x67   :  { %2209 = vmatpush.bf16.msrb.mxu1 %v3560_v52  ;;  %v26_v52 = vld [vmem:[%s4507_s0 + $0x18] sm:$0x7f] }
  0x68   :  { %2222 = vmatpush.bf16.msrb.mxu2 %v3568_v57  ;;  %v3641_v57 = vld [vmem:[%s4506_s1 + $0x5f8] sm:$0xff] }
  0x69   :  { %2235 = vmatpush.bf16.msrb.mxu3 %v3576_v58  ;;  %v538_v58 = vld [vmem:[#allocation1 + $0x9] sm:$0xff] }
  0x6a   :  { %2197 = vmatpush.bf16.msrb.mxu0 %v3551_v59  ;;  %v540_v59 = vld [vmem:[#allocation1 + $0x1b] sm:$0xff] }
  0x6b   :  { %2210 = vmatpush.bf16.msrb.mxu1 %v3559_v60  ;;  %v3616_v60 = vld [vmem:[%s4506_s1 + $0x530] sm:$0xff] }
  0x6c   :  { %2223 = vmatpush.bf16.msrb.mxu2 %v3567_v61  ;;  %v3624_v61 = vld [vmem:[%s4506_s1 + $0x570] sm:$0xff] }
  0x6d   :  { %2236 = vmatpush.bf16.msrb.mxu3 %v3575_v62  ;;  %v3632_v62 = vld [vmem:[%s4506_s1 + $0x5b0] sm:$0xff] }
  0x6e   :  { %2198 = vmatpush.bf16.msrb.mxu0 %v3550_v63  ;;  %v4257_v63 = vld [vmem:[#allocation1 + $0x24] sm:$0xff] }
  0x6f   :  { %2211 = vmatpush.bf16.msrb.mxu1 %v3558_v0  ;;  %v4259_v0 = vld [vmem:[#allocation1 + $0x36] sm:$0xff] }
  0x70   :  { %2224 = vmatpush.bf16.msrb.mxu2 %v3566_v1  ;;  %v4261_v1 = vld [vmem:[#allocation1 + $0x2d] sm:$0xff] }
  0x71   :  { %2237 = vmatpush.bf16.msrb.mxu3 %v3574_v2  ;;  %v4263_v2 = vld [vmem:[#allocation1 + $0x3f] sm:$0xff] }
  0x72   :  { %2199 = vmatpush.bf16.msrb.mxu0 %v3549_v3  ;;  %v3640_v3 = vld [vmem:[%s4506_s1 + $0x5f0] sm:$0xff] }
  0x73   :  { %2212 = vmatpush.bf16.msrb.mxu1 %v3557_v4  ;;  %v3615_v4 = vld [vmem:[%s4506_s1 + $0x528] sm:$0xff] }
  0x74   :  { %2225 = vmatpush.bf16.msrb.mxu2 %v3565_v5  ;;  %v3623_v5 = vld [vmem:[%s4506_s1 + $0x568] sm:$0xff] }
  0x75   :  { %2238 = vmatpush.bf16.msrb.mxu3 %v3573_v6  ;;  %v3631_v6 = vld [vmem:[%s4506_s1 + $0x5a8] sm:$0xff] }
  0x76   :  { %2200 = vmatpush.bf16.msrb.mxu0 %v3548_v7  ;;  %v3692_v7 = vld [vmem:[%s4508_s2] ss:$0 sm:$0xff] }
  0x77   :  { %2213 = vmatpush.bf16.msrb.mxu1 %v3556_v8  ;;  %v3639_v8 = vld [vmem:[%s4506_s1 + $0x5e8] sm:$0xff] }
  0x78   :  { %2226 = vmatpush.bf16.msrb.mxu2 %v3564_v9  ;;  %v3614_v9 = vld [vmem:[%s4506_s1 + $0x520] sm:$0xff] }
  0x79   :  { %2239 = vmatpush.bf16.msrb.mxu3 %v3572_v10 }
  0x7a   :  { %2201 = vmatpush.bf16.msrb.mxu0 %v3547_v11  ;;  %v3622_v11 = vld [vmem:[%s4506_s1 + $0x560] sm:$0xff] }
  0x7b   :  { %2214 = vmatpush.bf16.msrb.mxu1 %v3555_v12  ;;  %v3630_v12 = vld [vmem:[%s4506_s1 + $0x5a0] sm:$0xff] }
  0x7c   :  { %2227 = vmatpush.bf16.msrb.mxu2 %v3563_v13 }
  0x7d   :  { %2240 = vmatpush.bf16.msrb.mxu3 %v3571_v14 }
  0x7e   :  { %2202 = vmatpush.bf16.msrb.mxu0 %v3546_v15  ;;  %v3638_v15 = vld [vmem:[%s4506_s1 + $0x5e0] sm:$0xff] }
  0x7f   :  { %2215 = vmatpush.bf16.msrb.mxu1 %v3554_v16 }
  0x80   :  { %2228 = vmatpush.bf16.msrb.mxu2 %v3562_v18  ;;  %v3621_v18 = vld [vmem:[%s4506_s1 + $0x558] sm:$0xff] }
  0x81   :  { %2241 = vmatpush.bf16.msrb.mxu3 %v3570_v21  ;;  %2203 = vmatmul.bf16.vlgmr.msrb.gmra.mxu0 %v4047_v53  ;;  %v3633_v53 = vld [vmem:[%s4506_s1 + $0x5b8] sm:$0xff] }
  0x82   :  { %2247 = vmatpush.bf16.msra.mxu0 %v3585_v17  ;;  %2216 = vmatmul.bf16.vlgmr.msrb.gmra.mxu1 %v4051_v55  ;;  %v537_v55 = vld [vmem:[#allocation1] sm:$0xff]  ;;  %v3613_v17 = vld [vmem:[%s4506_s1 + $0x518] sm:$0xff] }
  0x83   :  { %2260 = vmatpush.bf16.msra.mxu1 %v3593_v19  ;;  %2229 = vmatmul.bf16.vlgmr.msrb.gmra.mxu2 %v4049_v54  ;;  %v3602_v54 = vld [vmem:[%s4506_s1 + $0x4c0] sm:$0xff]  ;;  %v3629_v19 = vld [vmem:[%s4506_s1 + $0x598] sm:$0xff] }
  0x84   :  { %2273 = vmatpush.bf16.msra.mxu2 %v3601_v20  ;;  %2242 = vmatmul.bf16.vlgmr.msrb.gmra.mxu3 %v4053_v56  ;;  %v539_v56 = vld [vmem:[#allocation1 + $0x12] sm:$0xff] }
  0x85   :  { %2286 = vmatpush.bf16.msra.mxu3 %v3609_v22  ;;  %546 = vst [vmem:[#allocation1] ss:$9 sm:$0xff] %v26_v52  ;;  %v3637_v20 = vld [vmem:[%s4506_s1 + $0x5d8] sm:$0xff]  ;;  %v3612_v22 = vld [vmem:[%s4506_s1 + $0x510] sm:$0xff]  ;;  %v3671_v52 = vld [vmem:[%s4506_s1 + $0x6e8] sm:$0xff] }
  0x86   :  { %2248 = vmatpush.bf16.msra.mxu0 %v3584_v23 }
  0x87   :  { %2261 = vmatpush.bf16.msra.mxu1 %v3592_v24 }
  0x88   :  { %2274 = vmatpush.bf16.msra.mxu2 %v3600_v25  ;;  %v3620_v25 = vld [vmem:[%s4506_s1 + $0x550] sm:$0xff] }
  0x89   :  { %2287 = vmatpush.bf16.msra.mxu3 %v3608_v26  ;;  %v3628_v26 = vld [vmem:[%s4506_s1 + $0x590] sm:$0xff] }
  0x8a   :  { %2249 = vmatpush.bf16.msra.mxu0 %v3583_v27 }
  0x8b   :  { %2262 = vmatpush.bf16.msra.mxu1 %v3591_v28 }
  0x8c   :  { %2275 = vmatpush.bf16.msra.mxu2 %v3599_v29  ;;  %v3636_v29 = vld [vmem:[%s4506_s1 + $0x5d0] sm:$0xff] }
  0x8d   :  { %2288 = vmatpush.bf16.msra.mxu3 %v3607_v30 }
  0x8e   :  { %2250 = vmatpush.bf16.msra.mxu0 %v3582_v31  ;;  %v3611_v31 = vld [vmem:[%s4506_s1 + $0x508] sm:$0xff] }
  0x8f   :  { %2263 = vmatpush.bf16.msra.mxu1 %v3590_v32  ;;  %v3619_v32 = vld [vmem:[%s4506_s1 + $0x548] sm:$0xff] }
  0x90   :  { %2276 = vmatpush.bf16.msra.mxu2 %v3598_v33  ;;  %v3627_v33 = vld [vmem:[%s4506_s1 + $0x588] sm:$0xff] }
  0x91   :  { %2289 = vmatpush.bf16.msra.mxu3 %v3606_v34  ;;  %v3635_v34 = vld [vmem:[%s4506_s1 + $0x5c8] sm:$0xff] }
  0x92   :  { %2251 = vmatpush.bf16.msra.mxu0 %v3581_v35 }
  0x93   :  { %2264 = vmatpush.bf16.msra.mxu1 %v3589_v36  ;;  %v3610_v36 = vld [vmem:[%s4506_s1 + $0x500] sm:$0xff] }
  0x94   :  { %2277 = vmatpush.bf16.msra.mxu2 %v3597_v37  ;;  %v3618_v37 = vld [vmem:[%s4506_s1 + $0x540] sm:$0xff] }
  0x95   :  { %2290 = vmatpush.bf16.msra.mxu3 %v3605_v38  ;;  %v3626_v38 = vld [vmem:[%s4506_s1 + $0x580] sm:$0xff] }
  0x96   :  { %2252 = vmatpush.bf16.msra.mxu0 %v3580_v39  ;;  %v3649_v39 = vld [vmem:[%s4506_s1 + $0x638] sm:$0xff] }
  0x97   :  { %2265 = vmatpush.bf16.msra.mxu1 %v3588_v40  ;;  %v3657_v40 = vld [vmem:[%s4506_s1 + $0x678] sm:$0xff] }
  0x98   :  { %2278 = vmatpush.bf16.msra.mxu2 %v3596_v41 }
  0x99   :  { %2291 = vmatpush.bf16.msra.mxu3 %v3604_v42  ;;  %v3665_v42 = vld [vmem:[%s4506_s1 + $0x6b8] sm:$0xff] }
  0x9a   :  { %2253 = vmatpush.bf16.msra.mxu0 %v3579_v43  ;;  %v3634_v43 = vld [vmem:[%s4506_s1 + $0x5c0] sm:$0xff] }
  0x9b   :  { %2266 = vmatpush.bf16.msra.mxu1 %v3587_v44  ;;  %v3673_v44 = vld [vmem:[%s4506_s1 + $0x6f8] sm:$0xff] }
  0x9c   :  { %2279 = vmatpush.bf16.msra.mxu2 %v3595_v45  ;;  %v3648_v45 = vld [vmem:[%s4506_s1 + $0x630] sm:$0xff] }
  0x9d   :  { %2292 = vmatpush.bf16.msra.mxu3 %v3603_v46  ;;  %v3656_v46 = vld [vmem:[%s4506_s1 + $0x670] sm:$0xff] }
  0x9e   :  { %2254 = vmatpush.bf16.msra.mxu0 %v3578_v47  ;;  %v2048_v10 = vpop.f32.mrf.mxu0  ;;  %v3664_v47 = vld [vmem:[%s4506_s1 + $0x6b0] sm:$0xff] }
  0x9f   :  { %2267 = vmatpush.bf16.msra.mxu1 %v3586_v48  ;;  %v2049_v13 = vadd.f32 %v3692_v7, %v2048_v10  ;;  %v2061_v14 = vpop.f32.mrf.mxu1  ;;  %v3672_v48 = vld [vmem:[%s4506_s1 + $0x6f0] sm:$0xff] }
  0xa0   :  { %2280 = vmatpush.bf16.msra.mxu2 %v3594_v49  ;;  %v3647_v49 = vld [vmem:[%s4506_s1 + $0x628] sm:$0xff]  ;;  %v3668_v10 = vld [vmem:[%s4506_s1 + $0x6d0] sm:$0xff] }
  0xa1   :  { %2293 = vmatpush.bf16.msra.mxu3 %v3602_v54  ;;  %2255 = vmatmul.bf16.vlgmr.msra.gmra.mxu0 %v537_v55  ;;  %v2062_v16 = vadd.f32 %v2061_v14, %v2049_v13  ;;  %v3654_v54 = vld [vmem:[%s4506_s1 + $0x660] sm:$0xff]  ;;  %v3659_v13 = vld [vmem:[%s4506_s1 + $0x688] sm:$0xff] }
  0xa2   :  { %2299 = vmatpush.bf16.msrb.mxu0 %v3617_v50  ;;  %2268 = vmatmul.bf16.vlgmr.msra.gmra.mxu1 %v538_v58  ;;  %v3655_v50 = vld [vmem:[%s4506_s1 + $0x668] sm:$0xff]  ;;  %v3662_v55 = vld [vmem:[%s4506_s1 + $0x6a0] sm:$0xff] }
  0xa3   :  { %2312 = vmatpush.bf16.msrb.mxu1 %v3625_v51  ;;  %2281 = vmatmul.bf16.vlgmr.msra.gmra.mxu2 %v539_v56  ;;  %v3663_v51 = vld [vmem:[%s4506_s1 + $0x6a8] sm:$0xff] }
  0xa4   :  { %2325 = vmatpush.bf16.msrb.mxu2 %v3633_v53  ;;  %2294 = vmatmul.bf16.vlgmr.msra.gmra.mxu3 %v540_v59  ;;  %v3646_v53 = vld [vmem:[%s4506_s1 + $0x620] sm:$0xff] }
  0xa5   :  { %2338 = vmatpush.bf16.msrb.mxu3 %v3641_v57  ;;  %v3670_v59 = vld [vmem:[%s4506_s1 + $0x6e0] sm:$0xff] }
  0xa6   :  { %2300 = vmatpush.bf16.msrb.mxu0 %v3616_v60  ;;  %v2074_v21 = vpop.f32.mrf.mxu2  ;;  %v2050_v24 = vpop.f32.mrf.mxu0  ;;  %v3645_v60 = vld [vmem:[%s4506_s1 + $0x618] sm:$0xff] }
  0xa7   :  { %2313 = vmatpush.bf16.msrb.mxu1 %v3624_v61  ;;  %v2075_v23 = vadd.f32 %v2074_v21, %v2062_v16  ;;  %v2087_v27 = vpop.f32.mrf.mxu3  ;;  %v2063_v28 = vpop.f32.mrf.mxu1  ;;  %v3642_v16 = vld [vmem:[%s4506_s1 + $0x600] sm:$0xff]  ;;  %v3689_v21 = vld [vmem:[%s4506_s1 + $0x778] sm:$0xff] }
  0xa8   :  { %2326 = vmatpush.bf16.msrb.mxu2 %v3632_v62  ;;  %v3653_v62 = vld [vmem:[%s4506_s1 + $0x658] sm:$0xff] }
  0xa9   :  { %2339 = vmatpush.bf16.msrb.mxu3 %v3640_v3  ;;  %v2088_v30 = vadd.f32 %v2087_v27, %v2075_v23  ;;  %v3644_v3 = vld [vmem:[%s4506_s1 + $0x610] sm:$0xff]  ;;  %v547_v23 = vld [vmem:[#allocation1] sm:$0xff] }
  0xaa   :  { %2301 = vmatpush.bf16.msrb.mxu0 %v3615_v4  ;;  %v3652_v4 = vld [vmem:[%s4506_s1 + $0x650] sm:$0xff]  ;;  %v550_v28 = vld [vmem:[#allocation1 + $0x1b] sm:$0xff] }
  0xab   :  { %2314 = vmatpush.bf16.msrb.mxu1 %v3623_v5  ;;  %v3660_v5 = vld [vmem:[%s4506_s1 + $0x690] sm:$0xff] }
  0xac   :  { %2327 = vmatpush.bf16.msrb.mxu2 %v3631_v6  ;;  %v549_v24 = vld [vmem:[#allocation1 + $0x12] sm:$0xff] }
  0xad   :  { %2340 = vmatpush.bf16.msrb.mxu3 %v3639_v8  ;;  %v3680_v27 = vld [vmem:[%s4506_s1 + $0x730] sm:$0xff] }
  0xae   :  { %2302 = vmatpush.bf16.msrb.mxu0 %v3614_v9  ;;  %v2076_v35 = vpop.f32.mrf.mxu2 }
  0xaf   :  { %2315 = vmatpush.bf16.msrb.mxu1 %v3622_v11  ;;  %v2089_v41 = vpop.f32.mrf.mxu3  ;;  %v3643_v11 = vld [vmem:[%s4506_s1 + $0x608] sm:$0xff]  ;;  %v3678_v35 = vld [vmem:[%s4506_s1 + $0x720] sm:$0xff] }
  0xb0   :  { %2328 = vmatpush.bf16.msrb.mxu2 %v3630_v12  ;;  %v3651_v12 = vld [vmem:[%s4506_s1 + $0x648] sm:$0xff] }
  0xb1   :  { %2341 = vmatpush.bf16.msrb.mxu3 %v3638_v15  ;;  %v3667_v15 = vld [vmem:[%s4506_s1 + $0x6c8] sm:$0xff] }
  0xb2   :  { %2303 = vmatpush.bf16.msrb.mxu0 %v3613_v17  ;;  %v3650_v17 = vld [vmem:[%s4506_s1 + $0x640] sm:$0xff] }
  0xb3   :  { %2316 = vmatpush.bf16.msrb.mxu1 %v3621_v18  ;;  %v3658_v18 = vld [vmem:[%s4506_s1 + $0x680] sm:$0xff] }
  0xb4   :  { %2329 = vmatpush.bf16.msrb.mxu2 %v3629_v19 }
  0xb5   :  { %2342 = vmatpush.bf16.msrb.mxu3 %v3637_v20  ;;  %v3681_v20 = vld [vmem:[%s4506_s1 + $0x738] sm:$0xff] }
  0xb6   :  { %2304 = vmatpush.bf16.msrb.mxu0 %v3612_v22  ;;  %v3666_v22 = vld [vmem:[%s4506_s1 + $0x6c0] sm:$0xff] }
  0xb7   :  { %2317 = vmatpush.bf16.msrb.mxu1 %v3620_v25  ;;  %v548_v25 = vld [vmem:[#allocation1 + $0x9] sm:$0xff] }
  0xb8   :  { %2330 = vmatpush.bf16.msrb.mxu2 %v3628_v26  ;;  %v3691_v26 = vld [vmem:[%s4506_s1 + $0x788] sm:$0xff] }
  0xb9   :  { %2343 = vmatpush.bf16.msrb.mxu3 %v3636_v29  ;;  %v3688_v29 = vld [vmem:[%s4506_s1 + $0x770] sm:$0xff] }
  0xba   :  { %2305 = vmatpush.bf16.msrb.mxu0 %v3611_v31  ;;  %v3679_v31 = vld [vmem:[%s4506_s1 + $0x728] sm:$0xff] }
  0xbb   :  { %2318 = vmatpush.bf16.msrb.mxu1 %v3619_v32  ;;  %v3687_v32 = vld [vmem:[%s4506_s1 + $0x768] sm:$0xff] }
  0xbc   :  { %2331 = vmatpush.bf16.msrb.mxu2 %v3627_v33 }
  0xbd   :  { %2344 = vmatpush.bf16.msrb.mxu3 %v3635_v34 }
  0xbe   :  { %2306 = vmatpush.bf16.msrb.mxu0 %v3610_v36  ;;  %v2100_v56 = vpop.f32.mrf.mxu0  ;;  %v3686_v36 = vld [vmem:[%s4506_s1 + $0x760] sm:$0xff] }
  0xbf   :  { %2319 = vmatpush.bf16.msrb.mxu1 %v3618_v37  ;;  %v2113_v57 = vpop.f32.mrf.mxu1  ;;  %v2101_v58 = vadd.f32 %v2100_v56, %v2088_v30  ;;  %v3690_v30 = vld [vmem:[%s4506_s1 + $0x780] sm:$0xff] }
  0xc0   :  { %2332 = vmatpush.bf16.msrb.mxu2 %v3626_v38  ;;  %v551_v56 = vld [vmem:[#allocation1 + $0x24] sm:$0xff] }
  0xc1   :  { %2345 = vmatpush.bf16.msrb.mxu3 %v3634_v43  ;;  %2307 = vmatmul.bf16.vlgmr.msrb.gmra.mxu0 %v4257_v63  ;;  %v2114_v61 = vadd.f32 %v2113_v57, %v2101_v58  ;;  %v3661_v63 = vld [vmem:[%s4506_s1 + $0x698] sm:$0xff]  ;;  %v552_v57 = vld [vmem:[#allocation1 + $0x2d] sm:$0xff] }
  0xc2   :  { %2351 = vmatpush.bf16.msra.mxu0 %v3649_v39  ;;  %2320 = vmatmul.bf16.vlgmr.msrb.gmra.mxu1 %v4261_v1  ;;  %v3669_v1 = vld [vmem:[%s4506_s1 + $0x6d8] sm:$0xff] }
  0xc3   :  { %2364 = vmatpush.bf16.msra.mxu1 %v3657_v40  ;;  %2333 = vmatmul.bf16.vlgmr.msrb.gmra.mxu2 %v4259_v0  ;;  %v3677_v39 = vld [vmem:[%s4506_s1 + $0x718] sm:$0xff] }
  0xc4   :  { %2377 = vmatpush.bf16.msra.mxu2 %v3665_v42  ;;  %2346 = vmatmul.bf16.vlgmr.msrb.gmra.mxu3 %v4263_v2  ;;  %v3685_v40 = vld [vmem:[%s4506_s1 + $0x758] sm:$0xff] }
  0xc5   :  { %2390 = vmatpush.bf16.msra.mxu3 %v3673_v44  ;;  %v553_v43 = vld [vmem:[#allocation1 + $0x36] sm:$0xff] }
  0xc6   :  { %2352 = vmatpush.bf16.msra.mxu0 %v3648_v45  ;;  %v2126_v0 = vpop.f32.mrf.mxu2  ;;  %v2102_v7 = vpop.f32.mrf.mxu0 }
  0xc7   :  { %2365 = vmatpush.bf16.msra.mxu1 %v3656_v46  ;;  %v2127_v2 = vadd.f32 %v2126_v0, %v2114_v61  ;;  %v2139_v6 = vpop.f32.mrf.mxu3  ;;  %v2115_v9 = vpop.f32.mrf.mxu1  ;;  %v3676_v46 = vld [vmem:[%s4506_s1 + $0x710] sm:$0xff] }
  0xc8   :  { %2378 = vmatpush.bf16.msra.mxu2 %v3664_v47 }
  0xc9   :  { %2391 = vmatpush.bf16.msra.mxu3 %v3672_v48  ;;  %v2140_v8 = vadd.f32 %v2139_v6, %v2127_v2  ;;  %v3684_v48 = vld [vmem:[%s4506_s1 + $0x750] sm:$0xff] }
  0xca   :  { %2353 = vmatpush.bf16.msra.mxu0 %v3647_v49 }
  0xcb   :  { %2366 = vmatpush.bf16.msra.mxu1 %v3655_v50  ;;  %v3675_v50 = vld [vmem:[%s4506_s1 + $0x708] sm:$0xff] }
  0xcc   :  { %2379 = vmatpush.bf16.msra.mxu2 %v3663_v51  ;;  %v3683_v51 = vld [vmem:[%s4506_s1 + $0x748] sm:$0xff] }
  0xcd   :  { %2392 = vmatpush.bf16.msra.mxu3 %v3671_v52 }
  0xce   :  { %2354 = vmatpush.bf16.msra.mxu0 %v3646_v53  ;;  %v2128_v14 = vpop.f32.mrf.mxu2  ;;  %v3674_v53 = vld [vmem:[%s4506_s1 + $0x700] sm:$0xff] }
  0xcf   :  { %2367 = vmatpush.bf16.msra.mxu1 %v3654_v54  ;;  %v2141_v19 = vpop.f32.mrf.mxu3 }
  0xd0   :  { %2380 = vmatpush.bf16.msra.mxu2 %v3662_v55  ;;  %v3682_v55 = vld [vmem:[%s4506_s1 + $0x740] sm:$0xff] }
  0xd1   :  { %2393 = vmatpush.bf16.msra.mxu3 %v3670_v59 }
  0xd2   :  { %2355 = vmatpush.bf16.msra.mxu0 %v3645_v60 }
  0xd3   :  { %2368 = vmatpush.bf16.msra.mxu1 %v3653_v62 }
  0xd4   :  { %2381 = vmatpush.bf16.msra.mxu2 %v3661_v63 }
  0xd5   :  { %2394 = vmatpush.bf16.msra.mxu3 %v3669_v1 }
  0xd6   :  { %2356 = vmatpush.bf16.msra.mxu0 %v3644_v3 }
  0xd7   :  { %2369 = vmatpush.bf16.msra.mxu1 %v3652_v4 }
  0xd8   :  { %2382 = vmatpush.bf16.msra.mxu2 %v3660_v5 }
  0xd9   :  { %2395 = vmatpush.bf16.msra.mxu3 %v3668_v10 }
  0xda   :  { %2357 = vmatpush.bf16.msra.mxu0 %v3643_v11 }
  0xdb   :  { %2370 = vmatpush.bf16.msra.mxu1 %v3651_v12 }
  0xdc   :  { %2383 = vmatpush.bf16.msra.mxu2 %v3659_v13 }
  0xdd   :  { %2396 = vmatpush.bf16.msra.mxu3 %v3667_v15 }
  0xde   :  { %2358 = vmatpush.bf16.msra.mxu0 %v3642_v16  ;;  %v2152_v33 = vpop.f32.mrf.mxu0 }
  0xdf   :  { %2371 = vmatpush.bf16.msra.mxu1 %v3650_v17  ;;  %v2153_v34 = vadd.f32 %v2152_v33, %v2140_v8  ;;  %v2165_v37 = vpop.f32.mrf.mxu1 }
  0xe0   :  { %2384 = vmatpush.bf16.msra.mxu2 %v3658_v18 }
  0xe1   :  { %2397 = vmatpush.bf16.msra.mxu3 %v3666_v22  ;;  %2359 = vmatmul.bf16.vlgmr.msra.gmra.mxu0 %v547_v23  ;;  %v2166_v38 = vadd.f32 %v2165_v37, %v2153_v34 }
  0xe2   :  { %2403 = vmatpush.bf16.msrb.mxu0 %v3681_v20  ;;  %2372 = vmatmul.bf16.vlgmr.msra.gmra.mxu1 %v548_v25 }
  0xe3   :  { %2416 = vmatpush.bf16.msrb.mxu1 %v3689_v21  ;;  %2385 = vmatmul.bf16.vlgmr.msra.gmra.mxu2 %v549_v24 }
  0xe4   :  { %2435 = vmatpush.bf16.msrb.mxu2 %v3691_v26  ;;  %2398 = vmatmul.bf16.vlgmr.msra.gmra.mxu3 %v550_v28 }
  0xe6   :  { %2404 = vmatpush.bf16.msrb.mxu0 %v3680_v27  ;;  %v2178_v41 = vpop.f32.mrf.mxu2  ;;  %v2154_v44 = vpop.f32.mrf.mxu0 }
  0xe7   :  { %2417 = vmatpush.bf16.msrb.mxu1 %v3688_v29  ;;  %v2179_v42 = vadd.f32 %v2178_v41, %v2166_v38  ;;  %v2191_v45 = vpop.f32.mrf.mxu3  ;;  %v2167_v49 = vpop.f32.mrf.mxu1 }
  0xe8   :  { %2436 = vmatpush.bf16.msrb.mxu2 %v3690_v30  ;;  %v3693_v49 = vld [vmem:[%s4509_s3] ss:$0 sm:$0xff] }
  0xe9   :  { %v2192_v47 = vadd.f32 %v2191_v45, %v2179_v42 }
  0xea   :  { %2405 = vmatpush.bf16.msrb.mxu0 %v3679_v31  ;;  %v10_v31 = vstv %s4510_s4 }
  0xeb   :  { %2418 = vmatpush.bf16.msrb.mxu1 %v3687_v32  ;;  %11 = vst [vmem:[#allocation2] sm:$0x1] %v10_v31 }
  0xee   :  { %2406 = vmatpush.bf16.msrb.mxu0 %v3678_v35  ;;  %v2180_v52 = vpop.f32.mrf.mxu2 }
  0xef   :  { %2419 = vmatpush.bf16.msrb.mxu1 %v3686_v36  ;;  %v2193_v54 = vpop.f32.mrf.mxu3 }
  0xf2   :  { %2407 = vmatpush.bf16.msrb.mxu0 %v3677_v39 }
  0xf3   :  { %2420 = vmatpush.bf16.msrb.mxu1 %v3685_v40  ;;  %3449 = vmatmul.msk.bf16.vlgmr.msrb.gmra.mxu2 %vm2036_vm0, %v553_v43 }
  0xf6   :  { %2408 = vmatpush.bf16.msrb.mxu0 %v3676_v46 }
  0xf7   :  { %2421 = vmatpush.bf16.msrb.mxu1 %v3684_v48 }
  0xfa   :  { %2409 = vmatpush.bf16.msrb.mxu0 %v3675_v50 }
  0xfb   :  { %2422 = vmatpush.bf16.msrb.mxu1 %v3683_v51 }
  0xfe   :  { %2410 = vmatpush.bf16.msrb.mxu0 %v3674_v53  ;;  %v2204_v58 = vpop.f32.mrf.mxu0 }
  0xff   :  { %2423 = vmatpush.bf16.msrb.mxu1 %v3682_v55  ;;  %v2205_v59 = vadd.f32 %v2204_v58, %v2192_v47  ;;  %v2217_v60 = vpop.f32.mrf.mxu1  ;;  %v3694_v55 = vld [vmem:[#allocation2] ss:$0 sm:$0xff] }
 0x101   :  { %2411 = vmatmul.bf16.vlgmr.msrb.gmra.mxu0 %v551_v56  ;;  %v2218_v61 = vadd.f32 %v2217_v60, %v2205_v59 }
 0x102   :  { %2424 = vmatmul.bf16.vlgmr.msrb.gmra.mxu1 %v552_v57 }
 0x106   :  { %v2230_v62 = vpop.f32.mrf.mxu2  ;;  %v2206_v1 = vpop.f32.mrf.mxu0 }
 0x107   :  { %v2231_v63 = vadd.f32 %v2230_v62, %v2218_v61  ;;  %v2243_v0 = vpop.f32.mrf.mxu3  ;;  %v2219_v2 = vpop.f32.mrf.mxu1 }
 0x109   :  { %v2244_v3 = vadd.f32 %v2243_v0, %v2231_v63 }
 0x10e   :  { %v2232_v4 = vpop.f32.mrf.mxu2 }
 0x10f   :  { %v2245_v5 = vpop.f32.mrf.mxu3 }
 0x11e   :  { %v2256_v6 = vpop.f32.mrf.mxu0 }
 0x11f   :  { %v2257_v7 = vadd.f32 %v2256_v6, %v2244_v3  ;;  %v2269_v8 = vpop.f32.mrf.mxu1 }
 0x121   :  { %v2270_v9 = vadd.f32 %v2269_v8, %v2257_v7 }
 0x126   :  { %v2282_v10 = vpop.f32.mrf.mxu2  ;;  %v2258_v12 = vpop.f32.mrf.mxu0 }
 0x127   :  { %v2295_v11 = vpop.f32.mrf.mxu3  ;;  %v2271_v13 = vpop.f32.mrf.mxu1  ;;  %v2283_v25 = vadd.f32 %v2282_v10, %v2270_v9 }
 0x129   :  { %v2296_v27 = vadd.f32 %v2295_v11, %v2283_v25 }
 0x12e   :  { %v2284_v14 = vpop.f32.mrf.mxu2 }
 0x12f   :  { %v2297_v15 = vpop.f32.mrf.mxu3 }
 0x13e   :  { %v2308_v16 = vpop.f32.mrf.mxu0 }
 0x13f   :  { %v2321_v17 = vpop.f32.mrf.mxu1  ;;  %v2309_v28 = vadd.f32 %v2308_v16, %v2296_v27 }
 0x141   :  { %v2322_v34 = vadd.f32 %v2321_v17, %v2309_v28 }
 0x146   :  { %v2334_v18 = vpop.f32.mrf.mxu2  ;;  %v2310_v20 = vpop.f32.mrf.mxu0 }
 0x147   :  { %v2347_v19 = vpop.f32.mrf.mxu3  ;;  %v2323_v21 = vpop.f32.mrf.mxu1  ;;  %v2335_v35 = vadd.f32 %v2334_v18, %v2322_v34 }
 0x149   :  { %v2348_v37 = vadd.f32 %v2347_v19, %v2335_v35 }
 0x14e   :  { %v2336_v22 = vpop.f32.mrf.mxu2 }
 0x14f   :  { %v2349_v23 = vpop.f32.mrf.mxu3 }
 0x15e   :  { %v2360_v24 = vpop.f32.mrf.mxu0 }
 0x15f   :  { %v2373_v26 = vpop.f32.mrf.mxu1  ;;  %v2361_v39 = vadd.f32 %v2360_v24, %v2348_v37 }
 0x161   :  { %v2374_v40 = vadd.f32 %v2373_v26, %v2361_v39 }
 0x166   :  { %v2386_v29 = vpop.f32.mrf.mxu2  ;;  %v2362_v30 = vpop.f32.mrf.mxu0 }
 0x167   :  { %v2399_v32 = vpop.f32.mrf.mxu3  ;;  %v2375_v33 = vpop.f32.mrf.mxu1  ;;  %v2387_v42 = vadd.f32 %v2386_v29, %v2374_v40 }
 0x169   :  { %v2400_v43 = vadd.f32 %v2399_v32, %v2387_v42 }
 0x16e   :  { %v2388_v36 = vpop.f32.mrf.mxu2 }
 0x16f   :  { %v2401_v38 = vpop.f32.mrf.mxu3 }
 0x176   :  { %v2438_v41 = vpop.f32.mrf.mxu2 }
 0x17e   :  { %v2412_v44 = vpop.f32.mrf.mxu0  ;;  %v2440_v47 = vpop.f32.mrf.mxu2 }
 0x17f   :  { %v2413_v45 = vadd.f32 %v2412_v44, %v2400_v43  ;;  %v2425_v46 = vpop.f32.mrf.mxu1 }
 0x181   :  { %v2426_v48 = vadd.f32 %v2425_v46, %v2413_v45 }
 0x183   :  { %v2439_v50 = vadd.f32 %v2438_v41, %v2426_v48 }
 0x185   :  { %v2446_v51 = vmul.f32 %v3693_v49, %v2439_v50 }
 0x186   :  { %v2414_v52 = vpop.f32.mrf.mxu0 }
 0x187   :  { %v2427_v53 = vpop.f32.mrf.mxu1  ;;  %v2448_v54 = vsel %vm2447_vm1, %v2446_v51, 0.0 }
 0x188   :  { %2449 = vadd.xlane.f32.xlu0 %v2448_v54 }
 0x1fb   :  { %v2450_v56 = vpop.xlane.xlu0 %2449 }
 0x1fc   :  { %v2455_v57 = vadd.f32 %v3694_v55, %v2450_v56 }
 0x1fe   :  { %v2456_v58 = vsub.f32 0.0, %v2455_v57 }
 0x200   :  { %v2457_v59 = vmul.f32 1.442695, %v2456_v58 }
 0x202   :  { %3695 = vpow2.f32 %v2457_v59 }
 0x208   :  { %v3696_v60 = vpop.eup %3695 }
 0x209   :  { %v2459_v61 = vadd.f32 1.0, %v3696_v60 }
 0x20b   :  { %3697 = vrcp.f32 %v2459_v61  ;;  %v2471_v1 = vand.u32 2147483648, %v2459_v61  ;;  %v2469_v3 = vand.u32 2147483647, %v2459_v61  ;;  %vm2465_vm3 = vweird.f32 %v2459_v61 }
 0x20d   :  { %v2472_v5 = vor.u32 1.1754944e-38, %v2471_v1  ;;  %vm2470_vm6 = vcmp.eq.f32.partialorder %v2469_v3, 8.507059e+37 }
 0x211   :  { %v3698_v62 = vpop.eup %3697 }
 0x212   :  { %v2461_v63 = vmul.f32 %v3698_v62, %v2459_v61  ;;  %vm2466_vm2 = vweird.f32 %v3698_v62 }
 0x213   :  { %vm2467_vm4 = vmor %vm2465_vm3, %vm2466_vm2 }
 0x214   :  { %v2462_v0 = vsub.f32 1.0, %v2461_v63 }
 0x216   :  { %v2463_v2 = vmul.f32 %v3698_v62, %v2462_v0 }
 0x218   :  { %v2464_v4 = vadd.f32 %v3698_v62, %v2463_v2 }
 0x21a   :  { %v2468_v6 = vsel %vm2467_vm4, %v3698_v62, %v2464_v4 }
 0x21b   :  { %v2473_v7 = vsel %vm2470_vm6, %v2472_v5, %v2468_v6 }
 0x21c   :  { %2476 = vst.msk [vmem:[%s4511_s5] sm:$0x3] %vm2475_vm5, %v2473_v7 }

</bundles_post_ra>
